<compile_context>
chip_gen: v6e
topology: v6e:2x2x1
jax: 0.10.0
libtpu: 0.0.40
codegen_flags: <defaults>
</compile_context>

<pallas_src>
import jax
import jax.numpy as jnp
from jax import lax
from jax.experimental import pallas as pl
from jax.experimental.pallas import tpu as pltpu

C_OUT = 64    # fixed by the PyTorch module (both convs output 64 channels)
_PAD_L = 8    # left zero-pad of the scratch (sublane-aligned interior store);
              # only column _PAD_L-1 is ever read as the left halo.


def _lat_layer_kernel(x_ref, w1_ref, b1_ref, w2_ref, b2_ref, o_ref, mid_ref):
    # x_ref:   (1, 1, TH+4, W+2, Cin) row tile of the padded NHWC input
    #                                 (2-row halo top/bottom, 1-col halo left/right)
    # w1_ref:  (9*Cin, 64)  conv1 taps flattened into K (im2col tap order dy,dx,cin)
    # b1_ref:  (1, 64)
    # w2_ref:  (9*64, 64)
    # b2_ref:  (1, 64)
    # o_ref:   (1, TH, W, 64)
    # mid_ref: VMEM scratch (TH+2, W+_PAD_L+1, 64) -- ReLU rows of this tile plus
    #          a 1-row halo; W-direction halo columns kept zero.
    TH = o_ref.shape[1]
    W = o_ref.shape[2]
    Cin = x_ref.shape[4]
    t = pl.program_id(1)

    # ---- conv1 (3x3, SAME) as ONE MXU matmul: im2col along K = 9*Cin ----
    # Slice the ref per tap (no materialization of the whole padded block).
    taps1 = [
        x_ref[0, 0, dy:dy + TH + 2, dx:dx + W, :].reshape((TH + 2) * W, Cin)
        for dy in range(3) for dx in range(3)
    ]
    lhs1 = jnp.concatenate(taps1, axis=-1)                      # ((TH+2)*W, 9*Cin)
    # TODO(synk): cast matmul operands to bf16 (f32 accumulate) for ~2x MXU
    # throughput on v6e/v7x; kept f32 here for tight parity with the reference.
    h = jnp.dot(lhs1, w1_ref[...], preferred_element_type=jnp.float32)
    h = jnp.maximum(h + b1_ref[...], 0.0)                       # ((TH+2)*W, 64)

    # Halo rows of `mid` that fall outside the real image must be zero (conv2's
    # SAME padding), not conv1-of-zero-rows (which would contain the bias).
    j = lax.broadcasted_iota(jnp.int32, (TH + 2, 1, 1), 0)
    img_row = t * TH + j - 1
    h_total = pl.num_programs(1) * TH
    h3 = jnp.where((img_row >= 0) & (img_row < h_total),
                   h.reshape(TH + 2, W, C_OUT), 0.0)

    # Stage the ReLU activation.  Interior store lands at sublane offset 8
    # (aligned, unmasked).  Only the two thin halo columns conv2 reads are
    # zeroed, every step (cheap; no reliance on a first-step init, which would
    # break when the batch axis is split across TensorCores).
    zcol = jnp.zeros((TH + 2, 1, C_OUT), jnp.float32)
    mid_ref[:, _PAD_L - 1:_PAD_L, :] = zcol                     # left halo col
    mid_ref[:, _PAD_L + W:_PAD_L + W + 1, :] = zcol             # right halo col
    mid_ref[:, _PAD_L:_PAD_L + W, :] = h3

    # ---- conv2 (3x3, SAME) as ONE MXU matmul: im2col along K = 576 ----
    taps2 = [
        mid_ref[dy:dy + TH, _PAD_L - 1 + dx:_PAD_L - 1 + dx + W, :].reshape(TH * W, C_OUT)
        for dy in range(3) for dx in range(3)
    ]
    lhs2 = jnp.concatenate(taps2, axis=-1)                      # (TH*W, 576)
    out = jnp.dot(lhs2, w2_ref[...], preferred_element_type=jnp.float32) + b2_ref[...]
    o_ref[0] = out.reshape(TH, W, C_OUT).astype(o_ref.dtype)


def _estimate_step_vmem(TH, W, Cin):
    f32 = 4
    in_blk = (TH + 4) * (W + 2) * Cin * f32
    out_blk = TH * W * C_OUT * f32
    scratch = (TH + 2) * (W + _PAD_L + 1) * C_OUT * f32
    weights = (9 * Cin * C_OUT + 9 * C_OUT * C_OUT + 2 * C_OUT) * f32
    lhs1 = (TH + 2) * W * 9 * Cin * f32
    lhs2 = TH * W * 9 * C_OUT * f32
    h = (TH + 2) * W * C_OUT * f32
    # in/out blocks and (conservatively) weights are double-buffered by the pipeline
    return 2 * (in_blk + out_blk + weights) + scratch + lhs1 + lhs2 + 2 * h


def _pick_row_tile(H, W, Cin, budget_bytes=16 << 20, max_rows=64):
    """Largest divisor of H (<= max_rows) whose per-step working set fits the budget."""
    for th in range(min(H, max_rows), 0, -1):
        if H % th == 0 and _estimate_step_vmem(th, W, Cin) <= budget_bytes:
            return th
    return 1


def lat_layer(x, w1, b1, w2, b2, *, row_tile=None):
    """x: (B, Cin, H, W) NCHW. w1: (3,3,Cin,64) HWIO, b1: (64,), w2: (3,3,64,64), b2: (64,)."""
    B, Cin, H, W = x.shape
    TH = row_tile if row_tile is not None else _pick_row_tile(H, W, Cin)
    assert H % TH == 0, "row tile must divide H"
    nT = H // TH

    # NHWC, spatially pre-padded: 2 rows top/bottom (two chained 3x3 convs need a
    # 2-row input halo per output row tile), 1 col left/right (conv1 only; conv2's
    # W halo lives in the zero columns of the VMEM scratch).
    x_nhwc = jnp.transpose(x, (0, 2, 3, 1))
    x_pad = jnp.pad(x_nhwc, ((0, 0), (2, 2), (1, 1), (0, 0)))           # (B, H+4, W+2, Cin)
    # Pre-cut overlapping row tiles (duplicates only 4 halo rows per tile) so the
    # grid can use plain Blocked BlockSpecs.
    x_tiles = jnp.stack([x_pad[:, t * TH:t * TH + TH + 4] for t in range(nT)], axis=1)
    # -> (B, nT, TH+4, W+2, Cin)

    w1k = w1.reshape(9 * Cin, C_OUT)     # (dy, dx, cin) flattening == im2col tap order
    w2k = w2.reshape(9 * C_OUT, C_OUT)
    b1k = b1.reshape(1, C_OUT)
    b2k = b2.reshape(1, C_OUT)

    est = _estimate_step_vmem(TH, W, Cin)
    vmem_limit = int(min(max(3 * est, 32 << 20), 56 << 20))

    # Note: weight/bias specs use constant index_maps so the blocks stay resident
    # across grid steps (single-buffering them via pipeline_mode is a further
    # ~0.3 MiB saving, omitted here for portability).
    out_nhwc = pl.pallas_call(
        _lat_layer_kernel,
        out_shape=jax.ShapeDtypeStruct((B, H, W, C_OUT), x.dtype),
        grid_spec=pltpu.PrefetchScalarGridSpec(
            num_scalar_prefetch=0,
            grid=(B, nT),
            in_specs=[
                pl.BlockSpec((1, 1, TH + 4, W + 2, Cin), lambda b, t: (b, t, 0, 0, 0)),
                pl.BlockSpec((9 * Cin, C_OUT), lambda b, t: (0, 0)),
                pl.BlockSpec((1, C_OUT), lambda b, t: (0, 0)),
                pl.BlockSpec((9 * C_OUT, C_OUT), lambda b, t: (0, 0)),
                pl.BlockSpec((1, C_OUT), lambda b, t: (0, 0)),
            ],
            out_specs=pl.BlockSpec((1, TH, W, C_OUT), lambda b, t: (b, t, 0, 0)),
            scratch_shapes=[pltpu.VMEM((TH + 2, W + _PAD_L + 1, C_OUT), jnp.float32)],
        ),
        compiler_params=pltpu.CompilerParams(
            dimension_semantics=("parallel", "parallel"),
            vmem_limit_bytes=vmem_limit,
        ),
    )(x_tiles, w1k, b1k, w2k, b2k)

    return jnp.transpose(out_nhwc, (0, 3, 1, 2))                # back to NCHW


def init_params(key, in_channel):
    """Deterministic init mirroring nn.Conv2d default (uniform +-1/sqrt(fan_in))."""
    k1, k2, k3, k4 = jax.random.split(key, 4)
    bd1 = 1.0 / ((in_channel * 9) ** 0.5)
    bd2 = 1.0 / ((C_OUT * 9) ** 0.5)
    # weights stored as (kh, kw, Cin, Cout) = HWIO
    w1 = jax.random.uniform(k1, (3, 3, in_channel, C_OUT), jnp.float32, -bd1, bd1)
    b1 = jax.random.uniform(k2, (C_OUT,), jnp.float32, -bd1, bd1)
    w2 = jax.random.uniform(k3, (3, 3, C_OUT, C_OUT), jnp.float32, -bd2, bd2)
    b2 = jax.random.uniform(k4, (C_OUT,), jnp.float32, -bd2, bd2)
    return w1, b1, w2, b2


def _ref_forward(x, w1, b1, w2, b2):
    dn = ("NCHW", "HWIO", "NCHW")
    hp = lax.Precision.HIGHEST
    y = lax.conv_general_dilated(x, w1, (1, 1), "SAME", dimension_numbers=dn, precision=hp)
    y = jnp.maximum(y + b1[None, :, None, None], 0.0)
    y = lax.conv_general_dilated(y, w2, (1, 1), "SAME", dimension_numbers=dn, precision=hp)
    return y + b2[None, :, None, None]


if __name__ == "__main__":
    key = jax.random.PRNGKey(0)
    kx, kp = jax.random.split(key)

    B, Cin, H, W = 2, 4, 16, 16
    x = jax.random.normal(kx, (B, Cin, H, W), jnp.float32)
    w1, b1, w2, b2 = init_params(kp, Cin)

    ref = _ref_forward(x, w1, b1, w2, b2)

    # Default heuristic row tile (single tile at this size).
    out = jax.block_until_ready(lat_layer(x, w1, b1, w2, b2))
    assert out.shape == (B, C_OUT, H, W)
    assert jnp.allclose(out, ref, atol=2e-3, rtol=2e-3), float(jnp.max(jnp.abs(out - ref)))

    # Force two row tiles to exercise the halo / boundary-masking path.
    out2 = jax.block_until_ready(lat_layer(x, w1, b1, w2, b2, row_tile=8))
    assert jnp.allclose(out2, ref, atol=2e-3, rtol=2e-3), float(jnp.max(jnp.abs(out2 - ref)))

    print("KERNEL_OK")
</pallas_src>

<mosaic_0001>
module attributes {stable_mosaic.version = 11 : i64} {
  func.func @_lat_layer_kernel(%arg0: i32, %arg1: i32, %arg2: memref<1x1x20x18x4xf32, #tpu.memory_space<vmem>>, %arg3: memref<36x64xf32, #tpu.memory_space<vmem>>, %arg4: memref<1x64xf32, #tpu.memory_space<vmem>>, %arg5: memref<576x64xf32, #tpu.memory_space<vmem>>, %arg6: memref<1x64xf32, #tpu.memory_space<vmem>>, %arg7: memref<1x16x16x64xf32, #tpu.memory_space<vmem>>, %arg8: memref<18x25x64xf32, #tpu.memory_space<vmem>>) attributes {dimension_semantics = [#tpu.dimension_semantics<parallel>, #tpu.dimension_semantics<parallel>], iteration_bounds = array<i64: 2, 1>, scalar_prefetch = 0 : i64, scratch_operands = 1 : i64, tpu.core_type = #tpu.core_type<tc>, window_params = [{transform_indices = @transform_0, window_bounds = array<i64: 1, 1, 20, 18, 4>}, {pipeline_mode = #tpu.pipeline_mode<synchronous>, transform_indices = @transform_1, window_bounds = array<i64: 36, 64>}, {pipeline_mode = #tpu.pipeline_mode<synchronous>, transform_indices = @transform_2, window_bounds = array<i64: 1, 64>}, {pipeline_mode = #tpu.pipeline_mode<synchronous>, transform_indices = @transform_3, window_bounds = array<i64: 576, 64>}, {pipeline_mode = #tpu.pipeline_mode<synchronous>, transform_indices = @transform_4, window_bounds = array<i64: 1, 64>}, {transform_indices = @transform_5, window_bounds = array<i64: 1, 16, 16, 64>}]} {
    %c0 = arith.constant 0 : index
    %c0_0 = arith.constant 0 : index
    %c0_1 = arith.constant 0 : index
    %c0_2 = arith.constant 0 : index
    %c0_3 = arith.constant 0 : index
    %0 = vector.load %arg2[%c0, %c0_0, %c0_1, %c0_2, %c0_3] : memref<1x1x20x18x4xf32, #tpu.memory_space<vmem>>, vector<1x1x18x16x4xf32>
    %1 = vector.shape_cast %0 : vector<1x1x18x16x4xf32> to vector<18x16x4xf32>
    %2 = vector.shape_cast %1 : vector<18x16x4xf32> to vector<288x4xf32>
    %c0_4 = arith.constant 0 : index
    %c0_5 = arith.constant 0 : index
    %c0_6 = arith.constant 0 : index
    %c1 = arith.constant 1 : index
    %c0_7 = arith.constant 0 : index
    %3 = vector.load %arg2[%c0_4, %c0_5, %c0_6, %c1, %c0_7] : memref<1x1x20x18x4xf32, #tpu.memory_space<vmem>>, vector<1x1x18x16x4xf32>
    %4 = vector.shape_cast %3 : vector<1x1x18x16x4xf32> to vector<18x16x4xf32>
    %5 = vector.shape_cast %4 : vector<18x16x4xf32> to vector<288x4xf32>
    %c0_8 = arith.constant 0 : index
    %c0_9 = arith.constant 0 : index
    %c0_10 = arith.constant 0 : index
    %c2 = arith.constant 2 : index
    %c0_11 = arith.constant 0 : index
    %6 = vector.load %arg2[%c0_8, %c0_9, %c0_10, %c2, %c0_11] : memref<1x1x20x18x4xf32, #tpu.memory_space<vmem>>, vector<1x1x18x16x4xf32>
    %7 = vector.shape_cast %6 : vector<1x1x18x16x4xf32> to vector<18x16x4xf32>
    %8 = vector.shape_cast %7 : vector<18x16x4xf32> to vector<288x4xf32>
    %c0_12 = arith.constant 0 : index
    %c0_13 = arith.constant 0 : index
    %c1_14 = arith.constant 1 : index
    %c0_15 = arith.constant 0 : index
    %c0_16 = arith.constant 0 : index
    %9 = vector.load %arg2[%c0_12, %c0_13, %c1_14, %c0_15, %c0_16] : memref<1x1x20x18x4xf32, #tpu.memory_space<vmem>>, vector<1x1x18x16x4xf32>
    %10 = vector.shape_cast %9 : vector<1x1x18x16x4xf32> to vector<18x16x4xf32>
    %11 = vector.shape_cast %10 : vector<18x16x4xf32> to vector<288x4xf32>
    %c0_17 = arith.constant 0 : index
    %c0_18 = arith.constant 0 : index
    %c1_19 = arith.constant 1 : index
    %c1_20 = arith.constant 1 : index
    %c0_21 = arith.constant 0 : index
    %12 = vector.load %arg2[%c0_17, %c0_18, %c1_19, %c1_20, %c0_21] : memref<1x1x20x18x4xf32, #tpu.memory_space<vmem>>, vector<1x1x18x16x4xf32>
    %13 = vector.shape_cast %12 : vector<1x1x18x16x4xf32> to vector<18x16x4xf32>
    %14 = vector.shape_cast %13 : vector<18x16x4xf32> to vector<288x4xf32>
    %c0_22 = arith.constant 0 : index
    %c0_23 = arith.constant 0 : index
    %c1_24 = arith.constant 1 : index
    %c2_25 = arith.constant 2 : index
    %c0_26 = arith.constant 0 : index
    %15 = vector.load %arg2[%c0_22, %c0_23, %c1_24, %c2_25, %c0_26] : memref<1x1x20x18x4xf32, #tpu.memory_space<vmem>>, vector<1x1x18x16x4xf32>
    %16 = vector.shape_cast %15 : vector<1x1x18x16x4xf32> to vector<18x16x4xf32>
    %17 = vector.shape_cast %16 : vector<18x16x4xf32> to vector<288x4xf32>
    %c0_27 = arith.constant 0 : index
    %c0_28 = arith.constant 0 : index
    %c2_29 = arith.constant 2 : index
    %c0_30 = arith.constant 0 : index
    %c0_31 = arith.constant 0 : index
    %18 = vector.load %arg2[%c0_27, %c0_28, %c2_29, %c0_30, %c0_31] : memref<1x1x20x18x4xf32, #tpu.memory_space<vmem>>, vector<1x1x18x16x4xf32>
    %19 = vector.shape_cast %18 : vector<1x1x18x16x4xf32> to vector<18x16x4xf32>
    %20 = vector.shape_cast %19 : vector<18x16x4xf32> to vector<288x4xf32>
    %c0_32 = arith.constant 0 : index
    %c0_33 = arith.constant 0 : index
    %c2_34 = arith.constant 2 : index
    %c1_35 = arith.constant 1 : index
    %c0_36 = arith.constant 0 : index
    %21 = vector.load %arg2[%c0_32, %c0_33, %c2_34, %c1_35, %c0_36] : memref<1x1x20x18x4xf32, #tpu.memory_space<vmem>>, vector<1x1x18x16x4xf32>
    %22 = vector.shape_cast %21 : vector<1x1x18x16x4xf32> to vector<18x16x4xf32>
    %23 = vector.shape_cast %22 : vector<18x16x4xf32> to vector<288x4xf32>
    %c0_37 = arith.constant 0 : index
    %c0_38 = arith.constant 0 : index
    %c2_39 = arith.constant 2 : index
    %c2_40 = arith.constant 2 : index
    %c0_41 = arith.constant 0 : index
    %24 = vector.load %arg2[%c0_37, %c0_38, %c2_39, %c2_40, %c0_41] : memref<1x1x20x18x4xf32, #tpu.memory_space<vmem>>, vector<1x1x18x16x4xf32>
    %25 = vector.shape_cast %24 : vector<1x1x18x16x4xf32> to vector<18x16x4xf32>
    %26 = vector.shape_cast %25 : vector<18x16x4xf32> to vector<288x4xf32>
    %27 = tpu.concatenate %2, %5, %8, %11, %14, %17, %20, %23, %26 in 1 : vector<288x4xf32>, vector<288x4xf32>, vector<288x4xf32>, vector<288x4xf32>, vector<288x4xf32>, vector<288x4xf32>, vector<288x4xf32>, vector<288x4xf32>, vector<288x4xf32> -> vector<288x36xf32>
    %c0_42 = arith.constant 0 : index
    %c0_43 = arith.constant 0 : index
    %28 = vector.load %arg3[%c0_42, %c0_43] : memref<36x64xf32, #tpu.memory_space<vmem>>, vector<36x64xf32>
    %cst = arith.constant dense<0.000000e+00> : vector<288x64xf32>
    %29 = tpu.matmul %27, %28, %cst {dimension_numbers = #tpu.dot_dimension_numbers<[1], [0], [0], [1], [0, 0, 1, 1], [], []>} : vector<288x36xf32>, vector<36x64xf32>, vector<288x64xf32> -> vector<288x64xf32>
    %c0_44 = arith.constant 0 : index
    %c0_45 = arith.constant 0 : index
    %30 = vector.load %arg4[%c0_44, %c0_45] : memref<1x64xf32, #tpu.memory_space<vmem>>, vector<1x64xf32>
    %31 = vector.broadcast %30 : vector<1x64xf32> to vector<288x64xf32>
    %32 = arith.addf %29, %31 : vector<288x64xf32>
    %cst_46 = arith.constant 0.000000e+00 : f32
    %33 = vector.broadcast %cst_46 : f32 to vector<288x64xf32>
    %34 = arith.maximumf %32, %33 : vector<288x64xf32>
    %35 = tpu.iota {dimensions = array<i32: 0>} : vector<18x1x1xi32>
    %c16_i32 = arith.constant 16 : i32
    %36 = arith.muli %arg1, %c16_i32 : i32
    %37 = vector.broadcast %36 : i32 to vector<18x1x1xi32>
    %38 = arith.addi %37, %35 : vector<18x1x1xi32>
    %c1_i32 = arith.constant 1 : i32
    %39 = vector.broadcast %c1_i32 : i32 to vector<18x1x1xi32>
    %40 = arith.subi %38, %39 : vector<18x1x1xi32>
    %c0_i32 = arith.constant 0 : i32
    %41 = vector.broadcast %c0_i32 : i32 to vector<18x1x1xi32>
    %42 = arith.cmpi sge, %40, %41 : vector<18x1x1xi32>
    %c16_i32_47 = arith.constant 16 : i32
    %43 = vector.broadcast %c16_i32_47 : i32 to vector<18x1x1xi32>
    %44 = arith.cmpi slt, %40, %43 : vector<18x1x1xi32>
    %45 = arith.andi %42, %44 : vector<18x1x1xi1>
    %46 = vector.shape_cast %34 : vector<288x64xf32> to vector<18x16x64xf32>
    %cst_48 = arith.constant 0.000000e+00 : f32
    %47 = vector.shape_cast %45 : vector<18x1x1xi1> to vector<18x1x1xi1>
    %48 = vector.broadcast %47 : vector<18x1x1xi1> to vector<18x16x64xi1>
    %49 = vector.broadcast %cst_48 : f32 to vector<18x16x64xf32>
    %50 = arith.select %48, %46, %49 : vector<18x16x64xi1>, vector<18x16x64xf32>
    %cst_49 = arith.constant 0.000000e+00 : f32
    %51 = vector.broadcast %cst_49 : f32 to vector<18x1x64xf32>
    %c0_50 = arith.constant 0 : index
    %c7 = arith.constant 7 : index
    %c0_51 = arith.constant 0 : index
    %52 = vector.load %arg8[%c0_50, %c7, %c0_51] : memref<18x25x64xf32, #tpu.memory_space<vmem>>, vector<18x1x64xf32>
    tpu.vector_store %arg8[%c0_50, %c7, %c0_51], %51 {strides = array<i32>} : memref<18x25x64xf32, #tpu.memory_space<vmem>>, vector<18x1x64xf32>,
    %c0_52 = arith.constant 0 : index
    %c24 = arith.constant 24 : index
    %c0_53 = arith.constant 0 : index
    %53 = vector.load %arg8[%c0_52, %c24, %c0_53] : memref<18x25x64xf32, #tpu.memory_space<vmem>>, vector<18x1x64xf32>
    tpu.vector_store %arg8[%c0_52, %c24, %c0_53], %51 {strides = array<i32>} : memref<18x25x64xf32, #tpu.memory_space<vmem>>, vector<18x1x64xf32>,
    %c0_54 = arith.constant 0 : index
    %c8 = arith.constant 8 : index
    %c0_55 = arith.constant 0 : index
    %54 = vector.load %arg8[%c0_54, %c8, %c0_55] : memref<18x25x64xf32, #tpu.memory_space<vmem>>, vector<18x16x64xf32>
    tpu.vector_store %arg8[%c0_54, %c8, %c0_55], %50 {strides = array<i32>} : memref<18x25x64xf32, #tpu.memory_space<vmem>>, vector<18x16x64xf32>,
    %c0_56 = arith.constant 0 : index
    %c7_57 = arith.constant 7 : index
    %c0_58 = arith.constant 0 : index
    %55 = vector.load %arg8[%c0_56, %c7_57, %c0_58] : memref<18x25x64xf32, #tpu.memory_space<vmem>>, vector<16x16x64xf32>
    %56 = vector.shape_cast %55 : vector<16x16x64xf32> to vector<256x64xf32>
    %c0_59 = arith.constant 0 : index
    %c8_60 = arith.constant 8 : index
    %c0_61 = arith.constant 0 : index
    %57 = vector.load %arg8[%c0_59, %c8_60, %c0_61] : memref<18x25x64xf32, #tpu.memory_space<vmem>>, vector<16x16x64xf32>
    %58 = vector.shape_cast %57 : vector<16x16x64xf32> to vector<256x64xf32>
    %c0_62 = arith.constant 0 : index
    %c9 = arith.constant 9 : index
    %c0_63 = arith.constant 0 : index
    %59 = vector.load %arg8[%c0_62, %c9, %c0_63] : memref<18x25x64xf32, #tpu.memory_space<vmem>>, vector<16x16x64xf32>
    %60 = vector.shape_cast %59 : vector<16x16x64xf32> to vector<256x64xf32>
    %c1_64 = arith.constant 1 : index
    %c7_65 = arith.constant 7 : index
    %c0_66 = arith.constant 0 : index
    %61 = vector.load %arg8[%c1_64, %c7_65, %c0_66] : memref<18x25x64xf32, #tpu.memory_space<vmem>>, vector<16x16x64xf32>
    %62 = vector.shape_cast %61 : vector<16x16x64xf32> to vector<256x64xf32>
    %c1_67 = arith.constant 1 : index
    %c8_68 = arith.constant 8 : index
    %c0_69 = arith.constant 0 : index
    %63 = vector.load %arg8[%c1_67, %c8_68, %c0_69] : memref<18x25x64xf32, #tpu.memory_space<vmem>>, vector<16x16x64xf32>
    %64 = vector.shape_cast %63 : vector<16x16x64xf32> to vector<256x64xf32>
    %c1_70 = arith.constant 1 : index
    %c9_71 = arith.constant 9 : index
    %c0_72 = arith.constant 0 : index
    %65 = vector.load %arg8[%c1_70, %c9_71, %c0_72] : memref<18x25x64xf32, #tpu.memory_space<vmem>>, vector<16x16x64xf32>
    %66 = vector.shape_cast %65 : vector<16x16x64xf32> to vector<256x64xf32>
    %c2_73 = arith.constant 2 : index
    %c7_74 = arith.constant 7 : index
    %c0_75 = arith.constant 0 : index
    %67 = vector.load %arg8[%c2_73, %c7_74, %c0_75] : memref<18x25x64xf32, #tpu.memory_space<vmem>>, vector<16x16x64xf32>
    %68 = vector.shape_cast %67 : vector<16x16x64xf32> to vector<256x64xf32>
    %c2_76 = arith.constant 2 : index
    %c8_77 = arith.constant 8 : index
    %c0_78 = arith.constant 0 : index
    %69 = vector.load %arg8[%c2_76, %c8_77, %c0_78] : memref<18x25x64xf32, #tpu.memory_space<vmem>>, vector<16x16x64xf32>
    %70 = vector.shape_cast %69 : vector<16x16x64xf32> to vector<256x64xf32>
    %c2_79 = arith.constant 2 : index
    %c9_80 = arith.constant 9 : index
    %c0_81 = arith.constant 0 : index
    %71 = vector.load %arg8[%c2_79, %c9_80, %c0_81] : memref<18x25x64xf32, #tpu.memory_space<vmem>>, vector<16x16x64xf32>
    %72 = vector.shape_cast %71 : vector<16x16x64xf32> to vector<256x64xf32>
    %73 = tpu.concatenate %56, %58, %60, %62, %64, %66, %68, %70, %72 in 1 : vector<256x64xf32>, vector<256x64xf32>, vector<256x64xf32>, vector<256x64xf32>, vector<256x64xf32>, vector<256x64xf32>, vector<256x64xf32>, vector<256x64xf32>, vector<256x64xf32> -> vector<256x576xf32>
    %c0_82 = arith.constant 0 : index
    %c0_83 = arith.constant 0 : index
    %74 = vector.load %arg5[%c0_82, %c0_83] : memref<576x64xf32, #tpu.memory_space<vmem>>, vector<576x64xf32>
    %cst_84 = arith.constant dense<0.000000e+00> : vector<256x64xf32>
    %75 = tpu.matmul %73, %74, %cst_84 {dimension_numbers = #tpu.dot_dimension_numbers<[1], [0], [0], [1], [0, 0, 1, 1], [], []>} : vector<256x576xf32>, vector<576x64xf32>, vector<256x64xf32> -> vector<256x64xf32>
    %c0_85 = arith.constant 0 : index
    %c0_86 = arith.constant 0 : index
    %76 = vector.load %arg6[%c0_85, %c0_86] : memref<1x64xf32, #tpu.memory_space<vmem>>, vector<1x64xf32>
    %77 = vector.broadcast %76 : vector<1x64xf32> to vector<256x64xf32>
    %78 = arith.addf %75, %77 : vector<256x64xf32>
    %79 = vector.shape_cast %78 : vector<256x64xf32> to vector<16x16x64xf32>
    %c0_87 = arith.constant 0 : index
    %c0_88 = arith.constant 0 : index
    %c0_89 = arith.constant 0 : index
    %c0_90 = arith.constant 0 : index
    %80 = vector.load %arg7[%c0_87, %c0_88, %c0_89, %c0_90] : memref<1x16x16x64xf32, #tpu.memory_space<vmem>>, vector<1x16x16x64xf32>
    %81 = vector.shape_cast %80 : vector<1x16x16x64xf32> to vector<16x16x64xf32>
    %82 = vector.shape_cast %79 : vector<16x16x64xf32> to vector<1x16x16x64xf32>
    tpu.vector_store %arg7[%c0_87, %c0_88, %c0_89, %c0_90], %82 {strides = array<i32>} : memref<1x16x16x64xf32, #tpu.memory_space<vmem>>, vector<1x16x16x64xf32>,
    return
  }
  func.func @transform_0(%arg0: i32, %arg1: i32) -> (i32, i32, i32, i32, i32) {
    %c0_i32 = arith.constant 0 : i32
    %c0_i32_0 = arith.constant 0 : i32
    %c0_i32_1 = arith.constant 0 : i32
    %c0_i32_2 = arith.constant 0 : i32
    return %arg0, %arg1, %c0_i32, %c0_i32_0, %c0_i32_1 : i32, i32, i32, i32, i32
  }
  func.func @transform_1(%arg0: i32, %arg1: i32) -> (i32, i32) {
    %c0_i32 = arith.constant 0 : i32
    %c0_i32_0 = arith.constant 0 : i32
    %c0_i32_1 = arith.constant 0 : i32
    return %c0_i32, %c0_i32_0 : i32, i32
  }
  func.func @transform_2(%arg0: i32, %arg1: i32) -> (i32, i32) {
    %c0_i32 = arith.constant 0 : i32
    %c0_i32_0 = arith.constant 0 : i32
    %c0_i32_1 = arith.constant 0 : i32
    return %c0_i32, %c0_i32_0 : i32, i32
  }
  func.func @transform_3(%arg0: i32, %arg1: i32) -> (i32, i32) {
    %c0_i32 = arith.constant 0 : i32
    %c0_i32_0 = arith.constant 0 : i32
    %c0_i32_1 = arith.constant 0 : i32
    return %c0_i32, %c0_i32_0 : i32, i32
  }
  func.func @transform_4(%arg0: i32, %arg1: i32) -> (i32, i32) {
    %c0_i32 = arith.constant 0 : i32
    %c0_i32_0 = arith.constant 0 : i32
    %c0_i32_1 = arith.constant 0 : i32
    return %c0_i32, %c0_i32_0 : i32, i32
  }
  func.func @transform_5(%arg0: i32, %arg1: i32) -> (i32, i32, i32, i32) {
    %c0_i32 = arith.constant 0 : i32
    %c0_i32_0 = arith.constant 0 : i32
    %c0_i32_1 = arith.constant 0 : i32
    return %arg0, %arg1, %c0_i32, %c0_i32_0 : i32, i32, i32, i32
  }
}

</mosaic_0001>

<bundles_post_ra>
// kernel: tpu_custom_call.1
= control target key start
LH: loop header
LB: loop body
LE: loop exit
PB: predicated region body
PF: predicated region fallthrough
CT: control target
= control target key end

     0   :  { %10 = vsyncpa [#allocation4], 0  ;;  %s8436_s0 = inlined_call_operand.vmem [shape: f32[2,1,20,18,4], index: 0, kind: input, shape index: {}]   ;;  %s8437_s1 = inlined_call_operand.vmem [shape: f32[36,64], index: 1, kind: input, shape index: {}]   ;;  %s8438_s2 = inlined_call_operand.vmem [shape: f32[1,64], index: 2, kind: input, shape index: {}]   ;;  %s8439_s3 = inlined_call_operand.vmem [shape: f32[576,64], index: 3, kind: input, shape index: {}]   ;;  %s8440_s4 = inlined_call_operand.vmem [shape: f32[1,64], index: 4, kind: input, shape index: {}]   ;;  %s8441_s5 = inlined_call_operand.hbm [shape: f32[2,16,16,64], index: 5, kind: output, shape index: {}]  }
   0x1   :  { %12 = vsyncpa [#allocation4 + $0x1], 0  ;;  %s5612_s18 = smov 0   ;;  %s5614_s19 = smov 0  }
   0x2   :  { %s5616_s20 = smov 0   ;;  %s5618_s21 = smov 0  }
   0x3   :  { %s5620_s22 = smov 0   ;;  %s5622_s23 = smov 0  }
   0x4 LB: > { %s4578_s24 = sadd.s32 4294967295, %s5568_s23   ;;  %s4579_s25 = sadd.s32 4294967294, %s5568_s23   ;;  %s5568_s23 = sphi %s5622_s23, %s18_s23   ;;  %s5564_s22 = sphi %s5620_s22, %s8536_s22   ;;  %s5560_s21 = sphi %s5618_s21, %s8535_s21   ;;  %s5556_s20 = sphi %s5616_s20, %s8534_s20   ;;  %s5552_s19 = sphi %s5614_s19, %s8533_s19   ;;  %s5548_s18 = sphi %s5612_s18, %s8532_s18  }
   0x5   : > { %s30_s26 = sadd.s32 1, %s5564_s22  ;;  %s151_s27 = sadd.s32 1, %s5556_s20 }
   0x6   : > { %p32_p0 = scmp.ge.s32.totalorder %s30_s26, 2  ;;  %p161_p1 = scmp.ne.s32.totalorder %s5556_s20, %s5552_s19 }
   0x7   : > { %p162_p2 = scmp.eq.s32.totalorder %s4578_s24, 1  ;;  %p167_p3 = scmp.ne.s32.totalorder %s5552_s19, %s5548_s18 }
   0x8   : > { %s8538_s26 = smov (%p32_p0, %s30_s26), 0  ;;  %p168_p5 = scmp.eq.s32.totalorder %s4579_s25, 1 }
   0x9   : > { %p5652_p4 = por %p162_p2, %p161_p1  ;;  %s146_s29 = ssub.s32 %s5564_s22, %s8538_s26 }
   0xa   : > { %p4582_p6 = scmp.ge.s32.totalorder %s5568_s23, 1  ;;  %p149_p7 = scmp.eq.s32.totalorder %s146_s29, 0 }
   0xb   : > { %p5659_p8 = por %p168_p5, %p167_p3  ;;  %p210_p9 = scmp.lt.s32.totalorder %s5568_s23, 3 }
   0xc   : > { %s5665_s6 = scalar_select %p149_p7, %s5556_s20, %s151_s27  }
   0xd   : > { %p211_p10 = pnand %p4582_p6, %p210_p9 }
   0xf   : > { %214 = sbr.rel (%p211_p10) target bundleno = 1277 (0x4fd), region = 40 }
  0x14   : > { %p242_p11 = scmp.lt.s32.totalorder %s5560_s21, 1  ;;  %s5570_s12 = smov 4   ;;  %vm2147_vm0 = vcmask 1043456   ;;  %vm1730_vm1 = vcmask 31744   ;;  %vm1767_vm2 = vcmask 64512   ;;  %vm1804_vm3 = vcmask 97280  }
  0x15   : > { %s5571_s13 = smov 8   ;;  %s5572_s14 = smov 12   ;;  %vm1841_vm4 = vcmask 130048   ;;  %vm1878_vm5 = vcmask 162816   ;;  %vm1915_vm6 = vcmask 195584   ;;  %vm1952_vm7 = vcmask 228352  }
  0x16   : > { %s243_s7 = scalar_select %p242_p11, %s5560_s21, 1  ;;  %vm1989_vm8 = vcmask 261120   ;;  %vm2038_vm9 = vcmask 293888   ;;  %vm2630_vm10 = vcmask 523264   ;;  %vm2593_vm11 = vcmask 516096  }
  0x17   : > { %s5573_s15 = smov 16   ;;  %s5574_s16 = smov 20  }
  0x18   : > { %s5103_s8 = smul.u32 480, %s243_s7  ;;  %s5575_s29 = smov 24  }
  0x19   : > { %s5576_s24 = smov 28   ;;  %s5577_s25 = smov 32  }
  0x1a   : > { %s5672_s11 = scalar_lea.vmem %s8436_s0, %s5103_s8  ;;  %s239_s8 = sand.u32 1, %s5552_s19  }
  0x1b   : > { %v5675_v0 = vld [vmem:[%s5672_s11 + $0x19] sm:$0xff]  ;;  %v288_v1 = vld [vmem:[%s5672_s11 + $0x1] sm:$0xff]  ;;  %v289_v3 = vld [vmem:[%s5672_s11 + $0x9] sm:$0xff]  ;;  %s4877_s10 = sshll.u32 %s5560_s21, 12  ;;  %s5580_s17 = smov [#allocation3]  }
  0x1c   : > { %618 = vrot.lane.b32.xlu1 %v5675_v0, %s5570_s12  ;;  %614 = vrot.lane.b32.xlu0 %v288_v1, %s5570_s12  ;;  %v5682_v2 = vld [vmem:[%s5672_s11 + $0x21] sm:$0xff]  ;;  %v5689_v4 = vld [vmem:[%s5672_s11 + $0x39] sm:$0xff] }
  0x1d   : > { %v5692_v5 = vld [vmem:[%s5672_s11 + $0x31] sm:$0xff]  ;;  %v5702_v7 = vld [vmem:[%s5672_s11 + $0x49] sm:$0xff]  ;;  %v5712_v9 = vld [vmem:[%s5672_s11 + $0x61] sm:$0xff] }
  0x1e   : > { %v5699_v6 = vld [vmem:[%s5672_s11 + $0x51] sm:$0xff]  ;;  %v5709_v8 = vld [vmem:[%s5672_s11 + $0x69] sm:$0xff]  ;;  %v5719_v10 = vld [vmem:[%s5672_s11 + $0x81] sm:$0xff] }
  0x1f   : > { %v5722_v11 = vld [vmem:[%s5672_s11 + $0x79] sm:$0xff]  ;;  %v5732_v13 = vld [vmem:[%s5672_s11 + $0x91] sm:$0xff]  ;;  %v5742_v15 = vld [vmem:[%s5672_s11 + $0xa9] sm:$0xff] }
  0x20   : > { %620 = vrot.lane.b32.xlu1 %v5682_v2, %s5570_s12  ;;  %616 = vrot.lane.b32.xlu0 %v289_v3, %s5570_s12  ;;  %v5729_v12 = vld [vmem:[%s5672_s11 + $0x99] sm:$0xff]  ;;  %v5739_v14 = vld [vmem:[%s5672_s11 + $0xb1] sm:$0xff] }
  0x21   : > { %v305_v16 = vld [vmem:[%s5672_s11 + $0xc9] sm:$0xff]  ;;  %v5750_v17 = vld [vmem:[%s5672_s11 + $0xc1] sm:$0xff]  ;;  %v306_v19 = vld [vmem:[%s5672_s11 + $0xd9] sm:$0xff] }
  0x22   : > { %v307_v18 = vld [vmem:[%s5672_s11 + $0xe1] sm:$0xff]  ;;  %v309_v20 = vld [vmem:[%s5672_s11 + $0xf9] sm:$0xff]  ;;  %v308_v21 = vld [vmem:[%s5672_s11 + $0xf1] sm:$0xff] }
  0x23   : > { %v311_v22 = vld [vmem:[%s5672_s11 + $0x111] sm:$0xff]  ;;  %v310_v23 = vld [vmem:[%s5672_s11 + $0x109] sm:$0xff]  ;;  %v312_v25 = vld [vmem:[%s5672_s11 + $0x121] sm:$0xff] }
  0x24   : > { %624 = vrot.lane.b32.xlu1 %v5689_v4, %s5570_s12  ;;  %622 = vrot.lane.b32.xlu0 %v5692_v5, %s5570_s12  ;;  %v313_v24 = vld [vmem:[%s5672_s11 + $0x129] sm:$0xff]  ;;  %v315_v26 = vld [vmem:[%s5672_s11 + $0x141] sm:$0xff] }
  0x25   : > { %v314_v27 = vld [vmem:[%s5672_s11 + $0x139] sm:$0xff]  ;;  %v316_v29 = vld [vmem:[%s5672_s11 + $0x151] sm:$0xff]  ;;  %v318_v31 = vld [vmem:[%s5672_s11 + $0x169] sm:$0xff] }
  0x26   : > { %v317_v28 = vld [vmem:[%s5672_s11 + $0x159] sm:$0xff]  ;;  %v319_v30 = vld [vmem:[%s5672_s11 + $0x171] sm:$0xff]  ;;  %v321_v32 = vld [vmem:[%s5672_s11 + $0x189] sm:$0xff] }
  0x27   : > { %v320_v33 = vld [vmem:[%s5672_s11 + $0x181] sm:$0xff]  ;;  %v322_v35 = vld [vmem:[%s5672_s11 + $0x199] sm:$0xff]  ;;  %v325_v36 = vld [vmem:[%s5672_s11 + $0xa] sm:$0xff] }
  0x28   : > { %628 = vrot.lane.b32.xlu1 %v5699_v6, %s5570_s12  ;;  %626 = vrot.lane.b32.xlu0 %v5702_v7, %s5570_s12  ;;  %v323_v34 = vld [vmem:[%s5672_s11 + $0x1a1] sm:$0xff]  ;;  %v5809_v41 = vld [vmem:[%s5672_s11 + $0x32] sm:$0xff] }
  0x29   : > { %v324_v37 = vld [vmem:[%s5672_s11 + $0x2] sm:$0xff]  ;;  %v5799_v39 = vld [vmem:[%s5672_s11 + $0x1a] sm:$0xff]  ;;  %v5816_v42 = vld [vmem:[%s5672_s11 + $0x52] sm:$0xff] }
  0x2a   : > { %v5796_v38 = vld [vmem:[%s5672_s11 + $0x22] sm:$0xff]  ;;  %v5806_v40 = vld [vmem:[%s5672_s11 + $0x3a] sm:$0xff]  ;;  %v5819_v43 = vld [vmem:[%s5672_s11 + $0x4a] sm:$0xff] }
  0x2b   : > { %v5826_v44 = vld [vmem:[%s5672_s11 + $0x6a] sm:$0xff]  ;;  %v5829_v45 = vld [vmem:[%s5672_s11 + $0x62] sm:$0xff]  ;;  %v5839_v47 = vld [vmem:[%s5672_s11 + $0x7a] sm:$0xff] }
  0x2c   : > { %632 = vrot.lane.b32.xlu1 %v5709_v8, %s5570_s12  ;;  %630 = vrot.lane.b32.xlu0 %v5712_v9, %s5570_s12  ;;  %v5836_v46 = vld [vmem:[%s5672_s11 + $0x82] sm:$0xff]  ;;  %v5846_v48 = vld [vmem:[%s5672_s11 + $0x9a] sm:$0xff] }
  0x2d   : > { %v5849_v49 = vld [vmem:[%s5672_s11 + $0x92] sm:$0xff]  ;;  %v5859_v51 = vld [vmem:[%s5672_s11 + $0xaa] sm:$0xff]  ;;  %v5869_v53 = vld [vmem:[%s5672_s11 + $0xc2] sm:$0xff] }
  0x2e   : > { %v5856_v50 = vld [vmem:[%s5672_s11 + $0xb2] sm:$0xff]  ;;  %v5866_v52 = vld [vmem:[%s5672_s11 + $0xca] sm:$0xff]  ;;  %v5876_v54 = vld [vmem:[%s5672_s11 + $0xe2] sm:$0xff] }
  0x2f   : > { %v5879_v55 = vld [vmem:[%s5672_s11 + $0xda] sm:$0xff]  ;;  %v344_v57 = vld [vmem:[%s5672_s11 + $0xf2] sm:$0xff]  ;;  %v346_v59 = vld [vmem:[%s5672_s11 + $0x10a] sm:$0xff] }
  0x30   : > { %636 = vrot.lane.b32.xlu1 %v5719_v10, %s5570_s12  ;;  %634 = vrot.lane.b32.xlu0 %v5722_v11, %s5570_s12  ;;  %v345_v56 = vld [vmem:[%s5672_s11 + $0xfa] sm:$0xff]  ;;  %v347_v58 = vld [vmem:[%s5672_s11 + $0x112] sm:$0xff] }
  0x31   : > { %v349_v62 = vld [vmem:[%s5672_s11 + $0x12a] sm:$0xff]  ;;  %v348_v63 = vld [vmem:[%s5672_s11 + $0x122] sm:$0xff] }
  0x34   : > { %640 = vrot.lane.b32.xlu1 %v5729_v12, %s5570_s12  ;;  %638 = vrot.lane.b32.xlu0 %v5732_v13, %s5570_s12 }
  0x38   : > { %644 = vrot.lane.b32.xlu1 %v5739_v14, %s5570_s12  ;;  %642 = vrot.lane.b32.xlu0 %v5742_v15, %s5570_s12 }
  0x3c   : > { %648 = vrot.lane.b32.xlu1 %v305_v16, %s5570_s12  ;;  %646 = vrot.lane.b32.xlu0 %v5750_v17, %s5570_s12  ;;  %v351_v16 = vld [vmem:[%s5672_s11 + $0x142] sm:$0xff] }
  0x40   : > { %652 = vrot.lane.b32.xlu1 %v307_v18, %s5570_s12  ;;  %650 = vrot.lane.b32.xlu0 %v306_v19, %s5570_s12  ;;  %v350_v18 = vld [vmem:[%s5672_s11 + $0x13a] sm:$0xff] }
  0x44   : > { %656 = vrot.lane.b32.xlu1 %v309_v20, %s5570_s12  ;;  %654 = vrot.lane.b32.xlu0 %v308_v21, %s5570_s12  ;;  %v352_v21 = vld [vmem:[%s5672_s11 + $0x152] sm:$0xff] }
  0x48   : > { %660 = vrot.lane.b32.xlu1 %v311_v22, %s5570_s12  ;;  %658 = vrot.lane.b32.xlu0 %v310_v23, %s5570_s12 }
  0x4c   : > { %664 = vrot.lane.b32.xlu1 %v313_v24, %s5570_s12  ;;  %662 = vrot.lane.b32.xlu0 %v312_v25, %s5570_s12  ;;  %v5919_v24 = vld [vmem:[%s5672_s11 + $0x18] sm:$0xff] }
  0x50   : > { %668 = vrot.lane.b32.xlu1 %v315_v26, %s5570_s12  ;;  %666 = vrot.lane.b32.xlu0 %v314_v27, %s5570_s12  ;;  %v5929_v27 = vld [vmem:[%s5672_s11 + $0x20] sm:$0xff] }
  0x54   : > { %672 = vrot.lane.b32.xlu1 %v317_v28, %s5570_s12  ;;  %670 = vrot.lane.b32.xlu0 %v316_v29, %s5570_s12 }
  0x58   : > { %676 = vrot.lane.b32.xlu1 %v319_v30, %s5570_s12  ;;  %674 = vrot.lane.b32.xlu0 %v318_v31, %s5570_s12  ;;  %v2030_v30 = vld [vmem:[%s8437_s1 + $0x20] sm:$0xf] }
  0x59   : > { %4959 = vmatprep.subr.msk.mxu0 %vm2147_vm0, %v2030_v30 }
  0x5a   : > { %4960 = vmatpush3.msk.msra.mxu0 %vm2147_vm0, %v2030_v30 }
  0x5c   : > { %680 = vrot.lane.b32.xlu1 %v321_v32, %s5570_s12  ;;  %678 = vrot.lane.b32.xlu0 %v320_v33, %s5570_s12  ;;  %v5951_v32 = vld [vmem:[%s5672_s11 + $0x30] sm:$0xff]  ;;  %v2029_v33 = vld [vmem:[%s8437_s1 + $0x18] sm:$0xff] }
  0x5d   : > { %4961 = vmatprep.subr.mxu0 %v2029_v33 }
  0x5e   : > { %4962 = vmatpush3.msra.mxu0 %v2029_v33  ;;  %v6028_v33 = vld [vmem:[%s5672_s11 + $0x50] sm:$0xff] }
  0x60   : > { %684 = vrot.lane.b32.xlu1 %v323_v34, %s5570_s12  ;;  %682 = vrot.lane.b32.xlu0 %v322_v35, %s5570_s12  ;;  %s5579_s12 = smov 64  }
  0x64   : > { %760 = vrot.lane.b32.xlu1 %v325_v36, %s5571_s13  ;;  %758 = vrot.lane.b32.xlu0 %v324_v37, %s5571_s13  ;;  %v5968_v36 = vld [vmem:[%s5672_s11 + $0x38] sm:$0xff]  ;;  %v2027_v37 = vld [vmem:[%s8437_s1 + $0x8] sm:$0xff] }
  0x68   : > { %764 = vrot.lane.b32.xlu1 %v5796_v38, %s5571_s13  ;;  %762 = vrot.lane.b32.xlu0 %v5799_v39, %s5571_s13 }
  0x6c   : > { %768 = vrot.lane.b32.xlu1 %v5806_v40, %s5571_s13  ;;  %766 = vrot.lane.b32.xlu0 %v5809_v41, %s5571_s13 }
  0x70   : > { %772 = vrot.lane.b32.xlu1 %v5816_v42, %s5571_s13  ;;  %770 = vrot.lane.b32.xlu0 %v5819_v43, %s5571_s13 }
  0x74   : > { %776 = vrot.lane.b32.xlu1 %v5826_v44, %s5571_s13  ;;  %774 = vrot.lane.b32.xlu0 %v5829_v45, %s5571_s13 }
  0x78   : > { %780 = vrot.lane.b32.xlu1 %v5836_v46, %s5571_s13  ;;  %778 = vrot.lane.b32.xlu0 %v5839_v47, %s5571_s13 }
  0x7c   : > { %784 = vrot.lane.b32.xlu1 %v5846_v48, %s5571_s13  ;;  %782 = vrot.lane.b32.xlu0 %v5849_v49, %s5571_s13 }
  0x80   : > { %788 = vrot.lane.b32.xlu1 %v5856_v50, %s5571_s13  ;;  %786 = vrot.lane.b32.xlu0 %v5859_v51, %s5571_s13 }
  0x84   : > { %792 = vrot.lane.b32.xlu1 %v5866_v52, %s5571_s13  ;;  %790 = vrot.lane.b32.xlu0 %v5869_v53, %s5571_s13 }
  0x88   : > { %796 = vrot.lane.b32.xlu1 %v5876_v54, %s5571_s13  ;;  %794 = vrot.lane.b32.xlu0 %v5879_v55, %s5571_s13 }
  0x8c   : > { %800 = vrot.lane.b32.xlu1 %v345_v56, %s5571_s13  ;;  %798 = vrot.lane.b32.xlu0 %v344_v57, %s5571_s13  ;;  %v2026_v56 = vld [vmem:[%s8437_s1] sm:$0xff] }
  0x8e   : > { %v5891_v60 = vpop.permute.xlu1 %618  ;;  %v5893_v61 = vpop.permute.xlu0 %614 }
  0x90   : > { %804 = vrot.lane.b32.xlu1 %v347_v58, %s5571_s13  ;;  %802 = vrot.lane.b32.xlu0 %v346_v59, %s5571_s13 }
  0x92   : > { %v5899_v1 = vpop.permute.xlu1 %620  ;;  %v5901_v3 = vpop.permute.xlu0 %616 }
  0x94   : > { %808 = vrot.lane.b32.xlu1 %v349_v62, %s5571_s13  ;;  %806 = vrot.lane.b32.xlu0 %v348_v63, %s5571_s13 }
  0x96   : > { %v5907_v19 = vpop.permute.xlu1 %624  ;;  %v5909_v20 = vpop.permute.xlu0 %622 }
  0x98   : > { %812 = vrot.lane.b32.xlu1 %v351_v16, %s5571_s13  ;;  %810 = vrot.lane.b32.xlu0 %v350_v18, %s5571_s13 }
  0x9a   : > { %v5914_v22 = vpop.permute.xlu1 %628  ;;  %v5916_v23 = vpop.permute.xlu0 %626 }
  0x9c   : > { %902 = vrot.lane.b32.xlu1 %v5919_v24, %s5572_s14  ;;  %814 = vrot.lane.b32.xlu0 %v352_v21, %s5571_s13  ;;  %v6017_v21 = vld [vmem:[%s5672_s11 + $0x48] sm:$0xff] }
  0x9e   : > { %v5924_v25 = vpop.permute.xlu1 %632  ;;  %v5926_v26 = vpop.permute.xlu0 %630 }
  0xa0   : > { %1046 = vrot.lane.b32.xlu1 %v5675_v0, %s5573_s15  ;;  %904 = vrot.lane.b32.xlu0 %v5929_v27, %s5572_s14 }
  0xa2   : > { %v5935_v28 = vpop.permute.xlu1 %636  ;;  %v5937_v29 = vpop.permute.xlu0 %634 }
  0xa4   : > { %1190 = vrot.lane.b32.xlu1 %v5799_v39, %s5574_s16  ;;  %1048 = vrot.lane.b32.xlu0 %v5682_v2, %s5573_s15  ;;  %v2028_v2 = vld [vmem:[%s8437_s1 + $0x10] sm:$0xff] }
  0xa5   : > { %4963 = vmatprep.subr.mxu0 %v2028_v2 }
  0xa6   : > { %v5946_v0 = vpop.permute.xlu1 %640  ;;  %v5948_v31 = vpop.permute.xlu0 %638  ;;  %4964 = vmatpush3.msra.mxu0 %v2028_v2 }
  0xa7   : > { %8446 = vst [vmem:[#allocation6_spill] sm:$0xff] %v5946_v0  ;;  %8447 = vst [vmem:[#allocation7_spill] sm:$0xff] %v5948_v31  ;;  %4965 = vmatprep.subr.mxu0 %v2027_v37 }
  0xa8   : > { %1334 = vrot.lane.b32.xlu1 %v5951_v32, %s5575_s29  ;;  %1192 = vrot.lane.b32.xlu0 %v5796_v38, %s5574_s16 }
  0xa9   : > { %4966 = vmatpush3.msra.mxu0 %v2027_v37 }
  0xaa   : > { %v5963_v34 = vpop.permute.xlu1 %644  ;;  %v5965_v35 = vpop.permute.xlu0 %642  ;;  %4967 = vmatprep.subr.mxu0 %v2026_v56 }
  0xab   : > { %8448 = vst [vmem:[#allocation8_spill] sm:$0xff] %v5963_v34  ;;  %8449 = vst [vmem:[#allocation9_spill] sm:$0xff] %v5965_v35  ;;  %4968 = vmatpush3.msra.mxu0 %v2026_v56 }
  0xac   : > { %1336 = vrot.lane.b32.xlu1 %v5968_v36, %s5575_s29  ;;  %906 = vrot.lane.b32.xlu0 %v5951_v32, %s5572_s14 }
  0xae   : > { %v5977_v38 = vpop.permute.xlu1 %648  ;;  %v5979_v39 = vpop.permute.xlu0 %646 }
  0xaf   : > { %8450 = vst [vmem:[#allocation10_spill] sm:$0xff] %v5977_v38  ;;  %8451 = vst [vmem:[#allocation11_spill] sm:$0xff] %v5979_v39 }
  0xb0   : > { %908 = vrot.lane.b32.xlu1 %v5968_v36, %s5572_s14  ;;  %1478 = vrot.lane.b32.xlu0 %v5692_v5, %s5576_s24 }
  0xb2   : > { %v5988_v57 = vpop.permute.xlu1 %652  ;;  %v5990_v58 = vpop.permute.xlu0 %650 }
  0xb3   : > { %8452 = vst [vmem:[#allocation12_spill] sm:$0xff] %v5988_v57  ;;  %8453 = vst [vmem:[#allocation13_spill] sm:$0xff] %v5990_v58 }
  0xb4   : > { %1480 = vrot.lane.b32.xlu1 %v5689_v4, %s5576_s24  ;;  %1050 = vrot.lane.b32.xlu0 %v5692_v5, %s5573_s15 }
  0xb6   : > { %v5996_v59 = vpop.permute.xlu1 %656  ;;  %v5998_v62 = vpop.permute.xlu0 %654 }
  0xb7   : > { %8454 = vst [vmem:[#allocation14_spill] sm:$0xff] %v5996_v59  ;;  %8455 = vst [vmem:[#allocation15_spill] sm:$0xff] %v5998_v62  ;;  %v6125_v62 = vld [vmem:[%s5672_s11 + $0x78] sm:$0xff] }
  0xb8   : > { %1052 = vrot.lane.b32.xlu1 %v5689_v4, %s5573_s15  ;;  %1622 = vrot.lane.b32.xlu0 %v5809_v41, %s5577_s25 }
  0xba   : > { %v6004_v63 = vpop.permute.xlu1 %660  ;;  %v6006_v16 = vpop.permute.xlu0 %658 }
  0xbb   : > { %8456 = vst [vmem:[#allocation16_spill] sm:$0xff] %v6004_v63  ;;  %8457 = vst [vmem:[#allocation17_spill] sm:$0xff] %v6006_v16 }
  0xbc   : > { %1624 = vrot.lane.b32.xlu1 %v5806_v40, %s5577_s25  ;;  %1194 = vrot.lane.b32.xlu0 %v5809_v41, %s5574_s16 }
  0xbe   : > { %v6012_v5 = vpop.permute.xlu1 %664  ;;  %v6014_v18 = vpop.permute.xlu0 %662 }
  0xbf   : > { %8458 = vst [vmem:[#allocation18_spill] sm:$0xff] %v6012_v5  ;;  %8459 = vst [vmem:[#allocation19_spill] sm:$0xff] %v6014_v18 }
  0xc0   : > { %1338 = vrot.lane.b32.xlu1 %v6017_v21, %s5575_s29  ;;  %1196 = vrot.lane.b32.xlu0 %v5806_v40, %s5574_s16 }
  0xc2   : > { %v6023_v4 = vpop.permute.xlu1 %668  ;;  %v6025_v30 = vpop.permute.xlu0 %666 }
  0xc3   : > { %8460 = vst [vmem:[#allocation20_spill] sm:$0xff] %v6023_v4  ;;  %8461 = vst [vmem:[#allocation21_spill] sm:$0xff] %v6025_v30 }
  0xc4   : > { %1482 = vrot.lane.b32.xlu1 %v5702_v7, %s5576_s24  ;;  %1340 = vrot.lane.b32.xlu0 %v6028_v33, %s5575_s29 }
  0xc6   : > { %v6034_v41 = vpop.permute.xlu1 %672  ;;  %v6036_v2 = vpop.permute.xlu0 %670 }
  0xc7   : > { %8462 = vst [vmem:[#allocation22_spill] sm:$0xff] %v6034_v41  ;;  %8463 = vst [vmem:[#allocation23_spill] sm:$0xff] %v6036_v2 }
  0xc8   : > { %1626 = vrot.lane.b32.xlu1 %v5819_v43, %s5577_s25  ;;  %1484 = vrot.lane.b32.xlu0 %v5699_v6, %s5576_s24 }
  0xca   : > { %v6042_v40 = vpop.permute.xlu1 %676  ;;  %v6044_v37 = vpop.permute.xlu0 %674 }
  0xcb   : > { %8464 = vst [vmem:[#allocation24_spill] sm:$0xff] %v6042_v40  ;;  %8465 = vst [vmem:[#allocation25_spill] sm:$0xff] %v6044_v37 }
  0xcc   : > { %910 = vrot.lane.b32.xlu1 %v6017_v21, %s5572_s14  ;;  %1628 = vrot.lane.b32.xlu0 %v5816_v42, %s5577_s25 }
  0xce   : > { %v6050_v56 = vpop.permute.xlu1 %680  ;;  %v6052_v2 = vpop.permute.xlu0 %678 }
  0xcf   : > { %8466 = vst [vmem:[#allocation26_spill] sm:$0xff] %v6050_v56  ;;  %8467 = vst [vmem:[#allocation27_spill] sm:$0xff] %v6052_v2  ;;  %v6071_v2 = vld [vmem:[%s5672_s11 + $0x60] sm:$0xff] }
  0xd0   : > { %1054 = vrot.lane.b32.xlu1 %v5702_v7, %s5573_s15  ;;  %912 = vrot.lane.b32.xlu0 %v6028_v33, %s5572_s14 }
  0xd2   : > { %v6058_v40 = vpop.permute.xlu1 %684  ;;  %v6060_v37 = vpop.permute.xlu0 %682 }
  0xd3   : > { %8468 = vst [vmem:[#allocation28_spill] sm:$0xff] %v6058_v40  ;;  %8469 = vst [vmem:[#allocation29_spill] sm:$0xff] %v6060_v37 }
  0xd4   : > { %1198 = vrot.lane.b32.xlu1 %v5819_v43, %s5574_s16  ;;  %1056 = vrot.lane.b32.xlu0 %v5699_v6, %s5573_s15  ;;  %v6082_v43 = vld [vmem:[%s5672_s11 + $0x68] sm:$0xff] }
  0xd6   : > { %v6066_v41 = vpop.permute.xlu1 %760  ;;  %v6068_v56 = vpop.permute.xlu0 %758 }
  0xd8   : > { %1342 = vrot.lane.b32.xlu1 %v6071_v2, %s5575_s29  ;;  %1200 = vrot.lane.b32.xlu0 %v5816_v42, %s5574_s16 }
  0xda   : > { %v6077_v7 = vpop.permute.xlu1 %764  ;;  %v6079_v40 = vpop.permute.xlu0 %762 }
  0xdc   : > { %1486 = vrot.lane.b32.xlu1 %v5712_v9, %s5576_s24  ;;  %1344 = vrot.lane.b32.xlu0 %v6082_v43, %s5575_s29 }
  0xde   : > { %v6088_v6 = vpop.permute.xlu1 %768  ;;  %v6090_v37 = vpop.permute.xlu0 %766 }
  0xe0   : > { %1630 = vrot.lane.b32.xlu1 %v5829_v45, %s5577_s25  ;;  %1488 = vrot.lane.b32.xlu0 %v5709_v8, %s5576_s24 }
  0xe2   : > { %v6096_v42 = vpop.permute.xlu1 %772  ;;  %v6098_v4 = vpop.permute.xlu0 %770 }
  0xe4   : > { %914 = vrot.lane.b32.xlu1 %v6071_v2, %s5572_s14  ;;  %1632 = vrot.lane.b32.xlu0 %v5826_v44, %s5577_s25 }
  0xe6   : > { %v6104_v30 = vpop.permute.xlu1 %776  ;;  %v6106_v5 = vpop.permute.xlu0 %774 }
  0xe8   : > { %1058 = vrot.lane.b32.xlu1 %v5712_v9, %s5573_s15  ;;  %916 = vrot.lane.b32.xlu0 %v6082_v43, %s5572_s14 }
  0xea   : > { %v6112_v18 = vpop.permute.xlu1 %780  ;;  %v6114_v63 = vpop.permute.xlu0 %778 }
  0xec   : > { %1202 = vrot.lane.b32.xlu1 %v5829_v45, %s5574_s16  ;;  %1060 = vrot.lane.b32.xlu0 %v5709_v8, %s5573_s15  ;;  %v6136_v45 = vld [vmem:[%s5672_s11 + $0x80] sm:$0xff] }
  0xee   : > { %v6120_v16 = vpop.permute.xlu1 %784  ;;  %v6122_v59 = vpop.permute.xlu0 %782 }
  0xef   : > { %8470 = vst [vmem:[#allocation30_spill] sm:$0xff] %v6120_v16  ;;  %8471 = vst [vmem:[#allocation31_spill] sm:$0xff] %v6122_v59 }
  0xf0   : > { %1346 = vrot.lane.b32.xlu1 %v6125_v62, %s5575_s29  ;;  %1204 = vrot.lane.b32.xlu0 %v5826_v44, %s5574_s16 }
  0xf2   : > { %v6131_v9 = vpop.permute.xlu1 %788  ;;  %v6133_v57 = vpop.permute.xlu0 %786 }
  0xf3   : > { %8472 = vst [vmem:[#allocation32_spill] sm:$0xff] %v6131_v9  ;;  %8473 = vst [vmem:[#allocation33_spill] sm:$0xff] %v6133_v57  ;;  %v6215_v57 = vld [vmem:[%s5672_s11 + $0xa8] sm:$0xff] }
  0xf4   : > { %1490 = vrot.lane.b32.xlu1 %v5722_v11, %s5576_s24  ;;  %1348 = vrot.lane.b32.xlu0 %v6136_v45, %s5575_s29 }
  0xf6   : > { %v6142_v8 = vpop.permute.xlu1 %792  ;;  %v6144_v58 = vpop.permute.xlu0 %790 }
  0xf7   : > { %8474 = vst [vmem:[#allocation34_spill] sm:$0xff] %v6142_v8  ;;  %8475 = vst [vmem:[#allocation35_spill] sm:$0xff] %v6144_v58 }
  0xf8   : > { %1634 = vrot.lane.b32.xlu1 %v5839_v47, %s5577_s25  ;;  %1492 = vrot.lane.b32.xlu0 %v5719_v10, %s5576_s24 }
  0xfa   : > { %v6150_v44 = vpop.permute.xlu1 %796  ;;  %v6152_v38 = vpop.permute.xlu0 %794 }
  0xfb   : > { %8476 = vst [vmem:[#allocation36_spill] sm:$0xff] %v6150_v44  ;;  %8477 = vst [vmem:[#allocation37_spill] sm:$0xff] %v6152_v38 }
  0xfc   : > { %918 = vrot.lane.b32.xlu1 %v6125_v62, %s5572_s14  ;;  %1636 = vrot.lane.b32.xlu0 %v5836_v46, %s5577_s25 }
  0xfe   : > { %v6158_v8 = vpop.permute.xlu1 %800  ;;  %v6160_v58 = vpop.permute.xlu0 %798 }
  0xff   : > { %8478 = vst [vmem:[#allocation38_spill] sm:$0xff] %v6158_v8  ;;  %8479 = vst [vmem:[#allocation39_spill] sm:$0xff] %v6160_v58  ;;  %v6179_v58 = vld [vmem:[%s5672_s11 + $0x90] sm:$0xff] }
 0x100   : > { %1062 = vrot.lane.b32.xlu1 %v5722_v11, %s5573_s15  ;;  %920 = vrot.lane.b32.xlu0 %v6136_v45, %s5572_s14  ;;  %8484 = vst [vmem:[#allocation44_spill] sm:$0xff] %v6179_v58 }
 0x102   : > { %v6166_v44 = vpop.permute.xlu1 %804  ;;  %v6168_v38 = vpop.permute.xlu0 %802 }
 0x103   : > { %8480 = vst [vmem:[#allocation40_spill] sm:$0xff] %v6166_v44  ;;  %8481 = vst [vmem:[#allocation41_spill] sm:$0xff] %v6168_v38 }
 0x104   : > { %1206 = vrot.lane.b32.xlu1 %v5839_v47, %s5574_s16  ;;  %1064 = vrot.lane.b32.xlu0 %v5719_v10, %s5573_s15  ;;  %v6190_v47 = vld [vmem:[%s5672_s11 + $0x98] sm:$0xff] }
 0x105   : > { %8487 = vst [vmem:[#allocation47_spill] sm:$0xff] %v6190_v47 }
 0x106   : > { %v6174_v39 = vpop.permute.xlu1 %808  ;;  %v6176_v8 = vpop.permute.xlu0 %806 }
 0x107   : > { %8482 = vst [vmem:[#allocation42_spill] sm:$0xff] %v6174_v39  ;;  %8483 = vst [vmem:[#allocation43_spill] sm:$0xff] %v6176_v8 }
 0x108   : > { %1350 = vrot.lane.b32.xlu1 %v6179_v58, %s5575_s29  ;;  %1208 = vrot.lane.b32.xlu0 %v5836_v46, %s5574_s16 }
 0x10a   : > { %v6185_v11 = vpop.permute.xlu1 %812  ;;  %v6187_v44 = vpop.permute.xlu0 %810 }
 0x10b   : > { %8485 = vst [vmem:[#allocation45_spill] sm:$0xff] %v6185_v11  ;;  %8486 = vst [vmem:[#allocation46_spill] sm:$0xff] %v6187_v44 }
 0x10c   : > { %1494 = vrot.lane.b32.xlu1 %v5732_v13, %s5576_s24  ;;  %1352 = vrot.lane.b32.xlu0 %v6190_v47, %s5575_s29 }
 0x10e   : > { %v903_v10 = vpop.permute.xlu1 %902  ;;  %v6196_v39 = vpop.permute.xlu0 %814 }
 0x10f   : > { %8488 = vst [vmem:[#allocation48_spill] sm:$0xff] %v6196_v39 }
 0x110   : > { %1638 = vrot.lane.b32.xlu1 %v5849_v49, %s5577_s25  ;;  %1496 = vrot.lane.b32.xlu0 %v5729_v12, %s5576_s24 }
 0x112   : > { %v1047_v46 = vpop.permute.xlu1 %1046  ;;  %v905_v11 = vpop.permute.xlu0 %904 }
 0x114   : > { %922 = vrot.lane.b32.xlu1 %v6179_v58, %s5572_s14  ;;  %1640 = vrot.lane.b32.xlu0 %v5846_v48, %s5577_s25 }
 0x116   : > { %v1191_v44 = vpop.permute.xlu1 %1190  ;;  %v1049_v8 = vpop.permute.xlu0 %1048 }
 0x118   : > { %1066 = vrot.lane.b32.xlu1 %v5732_v13, %s5573_s15  ;;  %924 = vrot.lane.b32.xlu0 %v6190_v47, %s5572_s14  ;;  %v252_v13 = vld [vmem:[%s5672_s11] sm:$0xff]  ;;  %v253_v47 = vld [vmem:[%s5672_s11 + $0x8] sm:$0xff] }
 0x11a   : > { %v1335_v39 = vpop.permute.xlu1 %1334  ;;  %v1193_v38 = vpop.permute.xlu0 %1192 }
 0x11c   : > { %1210 = vrot.lane.b32.xlu1 %v5849_v49, %s5574_s16  ;;  %1068 = vrot.lane.b32.xlu0 %v5729_v12, %s5573_s15  ;;  %v6223_v49 = vld [vmem:[%s5672_s11 + $0xb0] sm:$0xff]  ;;  %v1731_v12 = vsel %vm1730_vm1, %v252_v13, %v5893_v61  ;;  %v1732_v61 = vsel %vm1730_vm1, %v253_v47, %v5901_v3 }
 0x11e   : > { %v1337_v9 = vpop.permute.xlu1 %1336  ;;  %v907_v34 = vpop.permute.xlu0 %906 }
 0x120   : > { %1354 = vrot.lane.b32.xlu1 %v6215_v57, %s5575_s29  ;;  %1212 = vrot.lane.b32.xlu0 %v5846_v48, %s5574_s16  ;;  %v1768_v48 = vsel %vm1767_vm2, %v1731_v12, %v6068_v56  ;;  %v1769_v56 = vsel %vm1767_vm2, %v1732_v61, %v6066_v41 }
 0x121   : > { %v1805_v0 = vsel %vm1804_vm3, %v1768_v48, %v903_v10 }
 0x122   : > { %v909_v35 = vpop.permute.xlu1 %908  ;;  %v1479_v16 = vpop.permute.xlu0 %1478  ;;  %v1842_v31 = vsel %vm1841_vm4, %v1805_v0, %v1047_v46  ;;  %v1806_v0 = vsel %vm1804_vm3, %v1769_v56, %v905_v11  ;;  %v6275_v56 = vld [vmem:[%s5672_s11 + $0xc0] sm:$0xff] }
 0x123   : > { %v1879_v13 = vsel %vm1878_vm5, %v1842_v31, %v1191_v44  ;;  %v1843_v31 = vsel %vm1841_vm4, %v1806_v0, %v1049_v8 }
 0x124   : > { %1498 = vrot.lane.b32.xlu1 %v5742_v15, %s5576_s24  ;;  %1356 = vrot.lane.b32.xlu0 %v6223_v49, %s5575_s29  ;;  %v1916_v10 = vsel %vm1915_vm6, %v1879_v13, %v1335_v39  ;;  %v1880_v47 = vsel %vm1878_vm5, %v1843_v31, %v1193_v38 }
 0x125   : > { %v1953_v46 = vsel %vm1952_vm7, %v1916_v10, %v1479_v16  ;;  %v1917_v39 = vsel %vm1915_vm6, %v1880_v47, %v1337_v9  ;;  %v1733_v9 = vsel %vm1730_vm1, %v5919_v24, %v5891_v60  ;;  %v1734_v60 = vsel %vm1730_vm1, %v5929_v27, %v5899_v1  ;;  %v6292_v27 = vld [vmem:[%s5672_s11 + $0xc8] sm:$0xff] }
 0x126   : > { %v1481_v59 = vpop.permute.xlu1 %1480  ;;  %v1051_v58 = vpop.permute.xlu0 %1050 }
 0x127   : > { %v1954_v16 = vsel %vm1952_vm7, %v1917_v39, %v1481_v59  ;;  %v4635_v39 = vld [vmem:[%s5672_s11 + $0xc1] sm:$0xff] }
 0x128   : > { %1642 = vrot.lane.b32.xlu1 %v5859_v51, %s5577_s25  ;;  %1500 = vrot.lane.b32.xlu0 %v5739_v14, %s5576_s24 }
 0x12a   : > { %v1053_v12 = vpop.permute.xlu1 %1052  ;;  %v1623_v3 = vpop.permute.xlu0 %1622 }
 0x12b   : > { %v1990_v44 = vsel %vm1989_vm8, %v1953_v46, %v1623_v3 }
 0x12c   : > { %926 = vrot.lane.b32.xlu1 %v6215_v57, %s5572_s14  ;;  %1644 = vrot.lane.b32.xlu0 %v5856_v50, %s5577_s25 }
 0x12d   : > { %4969 = vmatprep.mubr.msk.f32.mxu0 %vm2038_vm9, %v1990_v44 }
 0x12e   : > { %v1625_v41 = vpop.permute.xlu1 %1624  ;;  %v1195_v11 = vpop.permute.xlu0 %1194 }
 0x12f   : > { %v1991_v8 = vsel %vm1989_vm8, %v1954_v16, %v1625_v41 }
 0x130   : > { %1070 = vrot.lane.b32.xlu1 %v5742_v15, %s5573_s15  ;;  %928 = vrot.lane.b32.xlu0 %v6223_v49, %s5572_s14  ;;  %v1770_v15 = vsel %vm1767_vm2, %v1733_v9, %v6079_v40 }
 0x131   : > { %4970 = vmatmul.mubr.msk.f32.vlgmr.msra.gmra.mxu0 %vm2038_vm9, %v1991_v8  ;;  %v1807_v59 = vsel %vm1804_vm3, %v1770_v15, %v907_v34 }
 0x132   : > { %v1339_v38 = vpop.permute.xlu1 %1338  ;;  %v1197_v48 = vpop.permute.xlu0 %1196  ;;  %v1844_v10 = vsel %vm1841_vm4, %v1807_v59, %v1051_v58 }
 0x134   : > { %1214 = vrot.lane.b32.xlu1 %v5859_v51, %s5574_s16  ;;  %1072 = vrot.lane.b32.xlu0 %v5739_v14, %s5573_s15  ;;  %v1881_v51 = vsel %vm1878_vm5, %v1844_v10, %v1195_v11  ;;  %v1771_v14 = vsel %vm1767_vm2, %v1734_v60, %v6077_v7  ;;  %v4743_v10 = vld [vmem:[%s5672_s11 + $0xd9] sm:$0xff] }
 0x135   : > { %v1918_v24 = vsel %vm1915_vm6, %v1881_v51, %v1339_v38  ;;  %v1808_v34 = vsel %vm1804_vm3, %v1771_v14, %v909_v35  ;;  %v4742_v35 = vld [vmem:[%s5672_s11 + $0xc9] sm:$0xff]  ;;  %v1735_v38 = vsel %vm1730_vm1, %v5951_v32, %v5909_v20  ;;  %v1736_v20 = vsel %vm1730_vm1, %v5968_v36, %v5907_v19  ;;  %v6346_v14 = vld [vmem:[%s5672_s11 + $0xe0] sm:$0xff] }
 0x136   : > { %v1483_v61 = vpop.permute.xlu1 %1482  ;;  %v1341_v13 = vpop.permute.xlu0 %1340  ;;  %v1845_v0 = vsel %vm1841_vm4, %v1808_v34, %v1053_v12  ;;  %v1773_v32 = vsel %vm1767_vm2, %v1736_v20, %v6088_v6  ;;  %v4781_v20 = vld [vmem:[%s5672_s11 + $0xf2] sm:$0xff] }
 0x137   : > { %v1955_v58 = vsel %vm1952_vm7, %v1918_v24, %v1483_v61  ;;  %v1882_v3 = vsel %vm1878_vm5, %v1845_v0, %v1197_v48  ;;  %v1772_v48 = vsel %vm1767_vm2, %v1735_v38, %v6090_v37  ;;  %v6328_v61 = vld [vmem:[%s5672_s11 + $0xd8] sm:$0xff] }
 0x138   : > { %1358 = vrot.lane.b32.xlu1 %v6275_v56, %s5575_s29  ;;  %1216 = vrot.lane.b32.xlu0 %v5856_v50, %s5574_s16  ;;  %v1919_v50 = vsel %vm1915_vm6, %v1882_v3, %v1341_v13 }
 0x13a   : > { %v1627_v40 = vpop.permute.xlu1 %1626  ;;  %v1485_v1 = vpop.permute.xlu0 %1484 }
 0x13b   : > { %v1992_v46 = vsel %vm1989_vm8, %v1955_v58, %v1627_v40  ;;  %v1956_v7 = vsel %vm1952_vm7, %v1919_v50, %v1485_v1  ;;  %v4744_v58 = vld [vmem:[%s5672_s11 + $0xe1] sm:$0xff] }
 0x13c   : > { %1502 = vrot.lane.b32.xlu1 %v5750_v17, %s5576_s24  ;;  %1360 = vrot.lane.b32.xlu0 %v6292_v27, %s5575_s29 }
 0x13d   : > { %4972 = vmatprep.mubr.msk.f32.mxu0 %vm2038_vm9, %v1992_v46 }
 0x13e   : > { %v911_v31 = vpop.permute.xlu1 %910  ;;  %v1629_v12 = vpop.permute.xlu0 %1628 }
 0x13f   : > { %v1993_v44 = vsel %vm1989_vm8, %v1956_v7, %v1629_v12  ;;  %v1809_v9 = vsel %vm1804_vm3, %v1772_v48, %v911_v31 }
 0x140   : > { %1646 = vrot.lane.b32.xlu1 %v5869_v53, %s5577_s25  ;;  %1504 = vrot.lane.b32.xlu0 %v4742_v35, %s5576_s24 }
 0x141   : > { %4973 = vmatmul.mubr.msk.f32.gmra.mxu0 %vm2038_vm9, %v1993_v44  ;;  %v1737_v44 = vsel %vm1730_vm1, %v6017_v21, %v5916_v23  ;;  %v1738_v23 = vsel %vm1730_vm1, %v6028_v33, %v5914_v22 }
 0x142   : > { %v1055_v17 = vpop.permute.xlu1 %1054  ;;  %v913_v47 = vpop.permute.xlu0 %912  ;;  %v1775_v21 = vsel %vm1767_vm2, %v1738_v23, %v6096_v42 }
 0x143   : > { %v1846_v13 = vsel %vm1841_vm4, %v1809_v9, %v1055_v17  ;;  %v1810_v60 = vsel %vm1804_vm3, %v1773_v32, %v913_v47  ;;  %v4674_v17 = vld [vmem:[%s5672_s11 + $0xe2] sm:$0xff]  ;;  %v6398_v9 = vld [vmem:[%s5672_s11 + $0xf8] sm:$0xff] }
 0x144   : > { %930 = vrot.lane.b32.xlu1 %v6275_v56, %s5572_s14  ;;  %1648 = vrot.lane.b32.xlu0 %v5866_v52, %s5577_s25 }
 0x146   : > { %v1199_v16 = vpop.permute.xlu1 %1198  ;;  %v1057_v41 = vpop.permute.xlu0 %1056 }
 0x147   : > { %v1847_v24 = vsel %vm1841_vm4, %v1810_v60, %v1057_v41  ;;  %v6381_v41 = vld [vmem:[%s5672_s11 + $0xf0] sm:$0xff] }
 0x148   : > { %1074 = vrot.lane.b32.xlu1 %v4635_v39, %s5573_s15  ;;  %932 = vrot.lane.b32.xlu0 %v6292_v27, %s5572_s14 }
 0x14a   : > { %v1343_v11 = vpop.permute.xlu1 %1342  ;;  %v1201_v8 = vpop.permute.xlu0 %1200 }
 0x14c   : > { %1218 = vrot.lane.b32.xlu1 %v5869_v53, %s5574_s16  ;;  %1076 = vrot.lane.b32.xlu0 %v4742_v35, %s5573_s15  ;;  %v1883_v53 = vsel %vm1878_vm5, %v1846_v13, %v1199_v16 }
 0x14d   : > { %v1920_v37 = vsel %vm1915_vm6, %v1883_v53, %v1343_v11  ;;  %v4746_v53 = vld [vmem:[%s5672_s11 + $0xf9] sm:$0xff] }
 0x14e   : > { %v1487_v15 = vpop.permute.xlu1 %1486  ;;  %v1345_v59 = vpop.permute.xlu0 %1344 }
 0x14f   : > { %v1957_v51 = vsel %vm1952_vm7, %v1920_v37, %v1487_v15 }
 0x150   : > { %1362 = vrot.lane.b32.xlu1 %v6328_v61, %s5575_s29  ;;  %1220 = vrot.lane.b32.xlu0 %v5866_v52, %s5574_s16  ;;  %v1884_v52 = vsel %vm1878_vm5, %v1847_v24, %v1201_v8  ;;  %v4745_v8 = vld [vmem:[%s5672_s11 + $0xf1] sm:$0xff] }
 0x151   : > { %v1921_v6 = vsel %vm1915_vm6, %v1884_v52, %v1345_v59 }
 0x152   : > { %v1631_v19 = vpop.permute.xlu1 %1630  ;;  %v1489_v36 = vpop.permute.xlu0 %1488 }
 0x153   : > { %v1994_v34 = vsel %vm1989_vm8, %v1957_v51, %v1631_v19  ;;  %v1958_v40 = vsel %vm1952_vm7, %v1921_v6, %v1489_v36  ;;  %v4782_v51 = vld [vmem:[%s5672_s11 + $0xfa] sm:$0xff] }
 0x154   : > { %1506 = vrot.lane.b32.xlu1 %v4743_v10, %s5576_s24  ;;  %1364 = vrot.lane.b32.xlu0 %v6346_v14, %s5575_s29 }
 0x155   : > { %4975 = vmatprep.mubr.msk.f32.mxu0 %vm2038_vm9, %v1994_v34 }
 0x156   : > { %v915_v1 = vpop.permute.xlu1 %914  ;;  %v1633_v0 = vpop.permute.xlu0 %1632 }
 0x157   : > { %v1995_v46 = vsel %vm1989_vm8, %v1958_v40, %v1633_v0 }
 0x158   : > { %1650 = vrot.lane.b32.xlu1 %v5879_v55, %s5577_s25  ;;  %1508 = vrot.lane.b32.xlu0 %v4744_v58, %s5576_s24 }
 0x159   : > { %4976 = vmatmul.mubr.msk.f32.gmra.mxu0 %vm2038_vm9, %v1995_v46 }
 0x15a   : > { %v1059_v3 = vpop.permute.xlu1 %1058  ;;  %v917_v50 = vpop.permute.xlu0 %916 }
 0x15b   : > { %v1812_v38 = vsel %vm1804_vm3, %v1775_v21, %v917_v50  ;;  %v5578_v21 = vmov 0.0  }
 0x15c   : > { %934 = vrot.lane.b32.xlu1 %v6328_v61, %s5572_s14  ;;  %1652 = vrot.lane.b32.xlu0 %v5876_v54, %s5577_s25  ;;  %v1774_v54 = vsel %vm1767_vm2, %v1737_v44, %v6098_v4  ;;  %v6450_v44 = vld [vmem:[%s5672_s11 + $0x110] sm:$0xff]  ;;  %2632 = vst.msk [vmem:[#allocation2 + $0x10] sm:$0xff] %vm2630_vm10, %v5578_v21  ;;  %2631 = vst.msk [vmem:[#allocation2 + $0x8] sm:$0xff] %vm2630_vm10, %v5578_v21 }
 0x15d   : > { %v1811_v47 = vsel %vm1804_vm3, %v1774_v54, %v915_v1  ;;  %2665 = vst.msk [vmem:[#allocation2 + $0x228] sm:$0xff] %vm2630_vm10, %v5578_v21  ;;  %2666 = vst.msk [vmem:[#allocation2 + $0x230] sm:$0xff] %vm2630_vm10, %v5578_v21  ;;  %3772 = vmatprep.subr.mxu1 %v5578_v21  ;;  %3997 = vmatprep.subr.mxu0 %v5578_v21 }
 0x15e   : > { %v1203_v35 = vpop.permute.xlu1 %1202  ;;  %v1061_v7 = vpop.permute.xlu0 %1060  ;;  %v1848_v11 = vsel %vm1841_vm4, %v1811_v47, %v1059_v3  ;;  %v6431_v3 = vld [vmem:[%s5672_s11 + $0x108] sm:$0xff]  ;;  %2595 = vst.msk [vmem:[#allocation2 + $0x27] sm:$0x1] %vm2593_vm11, %v5578_v21  ;;  %2594 = vst.msk [vmem:[#allocation2 + $0x7] sm:$0x1] %vm2593_vm11, %v5578_v21 }
 0x15f   : > { %v1849_v15 = vsel %vm1841_vm4, %v1812_v38, %v1061_v7  ;;  %v6445_v7 = vld [vmem:[%s5672_s11 + $0x109] sm:$0xff]  ;;  %2596 = vst.msk [vmem:[#allocation2 + $0x47] sm:$0x1] %vm2593_vm11, %v5578_v21  ;;  %2597 = vst.msk [vmem:[#allocation2 + $0x67] sm:$0x1] %vm2593_vm11, %v5578_v21 }
 0x160   : > { %1078 = vrot.lane.b32.xlu1 %v4743_v10, %s5573_s15  ;;  %936 = vrot.lane.b32.xlu0 %v6346_v14, %s5572_s14  ;;  %2598 = vst.msk [vmem:[#allocation2 + $0x87] sm:$0x1] %vm2593_vm11, %v5578_v21  ;;  %2599 = vst.msk [vmem:[#allocation2 + $0xa7] sm:$0x1] %vm2593_vm11, %v5578_v21 }
 0x161   : > { %2600 = vst.msk [vmem:[#allocation2 + $0xc7] sm:$0x1] %vm2593_vm11, %v5578_v21  ;;  %2601 = vst.msk [vmem:[#allocation2 + $0xe7] sm:$0x1] %vm2593_vm11, %v5578_v21 }
 0x162   : > { %v1347_v31 = vpop.permute.xlu1 %1346  ;;  %v1205_v12 = vpop.permute.xlu0 %1204  ;;  %2602 = vst.msk [vmem:[#allocation2 + $0x107] sm:$0x1] %vm2593_vm11, %v5578_v21  ;;  %2603 = vst.msk [vmem:[#allocation2 + $0x127] sm:$0x1] %vm2593_vm11, %v5578_v21 }
 0x163   : > { %v1886_v13 = vsel %vm1878_vm5, %v1849_v15, %v1205_v12  ;;  %2604 = vst.msk [vmem:[#allocation2 + $0x147] sm:$0x1] %vm2593_vm11, %v5578_v21  ;;  %2605 = vst.msk [vmem:[#allocation2 + $0x167] sm:$0x1] %vm2593_vm11, %v5578_v21 }
 0x164   : > { %1222 = vrot.lane.b32.xlu1 %v5879_v55, %s5574_s16  ;;  %1080 = vrot.lane.b32.xlu0 %v4744_v58, %s5573_s15  ;;  %v1885_v55 = vsel %vm1878_vm5, %v1848_v11, %v1203_v35  ;;  %v1739_v58 = vsel %vm1730_vm1, %v6071_v2, %v5926_v26  ;;  %v1740_v26 = vsel %vm1730_vm1, %v6082_v43, %v5924_v25 }
 0x165   : > { %v1922_v4 = vsel %vm1915_vm6, %v1885_v55, %v1347_v31  ;;  %v1776_v40 = vsel %vm1767_vm2, %v1739_v58, %v6106_v5  ;;  %v1777_v5 = vsel %vm1767_vm2, %v1740_v26, %v6104_v30  ;;  %2606 = vst.msk [vmem:[#allocation2 + $0x187] sm:$0x1] %vm2593_vm11, %v5578_v21  ;;  %2607 = vst.msk [vmem:[#allocation2 + $0x1a7] sm:$0x1] %vm2593_vm11, %v5578_v21  ;;  %v4785_v58 = vld [vmem:[%s5672_s11 + $0x122] sm:$0xff]  ;;  %v4786_v26 = vld [vmem:[%s5672_s11 + $0x12a] sm:$0xff] }
 0x166   : > { %v1491_v39 = vpop.permute.xlu1 %1490  ;;  %v1349_v16 = vpop.permute.xlu0 %1348  ;;  %2608 = vst.msk [vmem:[#allocation2 + $0x1c7] sm:$0x1] %vm2593_vm11, %v5578_v21  ;;  %2609 = vst.msk [vmem:[#allocation2 + $0x1e7] sm:$0x1] %vm2593_vm11, %v5578_v21 }
 0x167   : > { %v1959_v48 = vsel %vm1952_vm7, %v1922_v4, %v1491_v39  ;;  %v1923_v42 = vsel %vm1915_vm6, %v1886_v13, %v1349_v16  ;;  %v6462_v39 = vld [vmem:[%s5672_s11 + $0x10a] sm:$0xff]  ;;  %2610 = vst.msk [vmem:[#allocation2 + $0x207] sm:$0x1] %vm2593_vm11, %v5578_v21  ;;  %2611 = vst.msk [vmem:[#allocation2 + $0x227] sm:$0x1] %vm2593_vm11, %v5578_v21  ;;  %v1741_v13 = vsel %vm1730_vm1, %v6125_v62, %v5937_v29 }
 0x168   : > { %1366 = vrot.lane.b32.xlu1 %v6381_v41, %s5575_s29  ;;  %1224 = vrot.lane.b32.xlu0 %v4674_v17, %s5574_s16  ;;  %v6465_v16 = vld [vmem:[%s5672_s11 + $0x111] sm:$0xff]  ;;  %2612 = vst.msk [vmem:[#allocation2 + $0x18] sm:$0x1] %vm2593_vm11, %v5578_v21  ;;  %2613 = vst.msk [vmem:[#allocation2 + $0x38] sm:$0x1] %vm2593_vm11, %v5578_v21  ;;  %v1742_v29 = vsel %vm1730_vm1, %v6136_v45, %v5935_v28 }
 0x169   : > { %2614 = vst.msk [vmem:[#allocation2 + $0x58] sm:$0x1] %vm2593_vm11, %v5578_v21  ;;  %2615 = vst.msk [vmem:[#allocation2 + $0x78] sm:$0x1] %vm2593_vm11, %v5578_v21 }
 0x16a   : > { %v1635_v22 = vpop.permute.xlu1 %1634  ;;  %v1493_v33 = vpop.permute.xlu0 %1492  ;;  %2616 = vst.msk [vmem:[#allocation2 + $0x98] sm:$0x1] %vm2593_vm11, %v5578_v21  ;;  %2617 = vst.msk [vmem:[#allocation2 + $0xb8] sm:$0x1] %vm2593_vm11, %v5578_v21 }
 0x16b   : > { %v1996_v59 = vsel %vm1989_vm8, %v1959_v48, %v1635_v22  ;;  %v1960_v32 = vsel %vm1952_vm7, %v1923_v42, %v1493_v33  ;;  %2618 = vst.msk [vmem:[#allocation2 + $0xd8] sm:$0x1] %vm2593_vm11, %v5578_v21  ;;  %2619 = vst.msk [vmem:[#allocation2 + $0xf8] sm:$0x1] %vm2593_vm11, %v5578_v21  ;;  %v1778_v42 = vsel %vm1767_vm2, %v1741_v13, %v6114_v63  ;;  %v4716_v13 = vld [vmem:[%s5672_s11 + $0x140] sm:$0xff] }
 0x16c   : > { %1510 = vrot.lane.b32.xlu1 %v4745_v8, %s5576_s24  ;;  %1368 = vrot.lane.b32.xlu0 %v6398_v9, %s5575_s29  ;;  %2620 = vst.msk [vmem:[#allocation2 + $0x118] sm:$0x1] %vm2593_vm11, %v5578_v21  ;;  %2621 = vst.msk [vmem:[#allocation2 + $0x138] sm:$0x1] %vm2593_vm11, %v5578_v21  ;;  %v1779_v63 = vsel %vm1767_vm2, %v1742_v29, %v6112_v18 }
 0x16d   : > { %4978 = vmatprep.mubr.msk.f32.mxu0 %vm2038_vm9, %v1996_v59  ;;  %2622 = vst.msk [vmem:[#allocation2 + $0x158] sm:$0x1] %vm2593_vm11, %v5578_v21  ;;  %2623 = vst.msk [vmem:[#allocation2 + $0x178] sm:$0x1] %vm2593_vm11, %v5578_v21 }
 0x16e   : > { %v919_v37 = vpop.permute.xlu1 %918  ;;  %v1637_v10 = vpop.permute.xlu0 %1636  ;;  %2624 = vst.msk [vmem:[#allocation2 + $0x198] sm:$0x1] %vm2593_vm11, %v5578_v21  ;;  %2625 = vst.msk [vmem:[#allocation2 + $0x1b8] sm:$0x1] %vm2593_vm11, %v5578_v21 }
 0x16f   : > { %v1997_v60 = vsel %vm1989_vm8, %v1960_v32, %v1637_v10  ;;  %v1813_v1 = vsel %vm1804_vm3, %v1776_v40, %v919_v37  ;;  %2626 = vst.msk [vmem:[#allocation2 + $0x1d8] sm:$0x1] %vm2593_vm11, %v5578_v21  ;;  %2627 = vst.msk [vmem:[#allocation2 + $0x1f8] sm:$0x1] %vm2593_vm11, %v5578_v21  ;;  %v6578_v37 = vld [vmem:[%s5672_s11 + $0x120] sm:$0xff]  ;;  %v4750_v40 = vld [vmem:[%s5672_s11 + $0x129] sm:$0xff] }
 0x170   : > { %1654 = vrot.lane.b32.xlu1 %v4781_v20, %s5577_s25  ;;  %1512 = vrot.lane.b32.xlu0 %v4746_v53, %s5576_s24  ;;  %2628 = vst.msk [vmem:[#allocation2 + $0x218] sm:$0x1] %vm2593_vm11, %v5578_v21  ;;  %2629 = vst.msk [vmem:[#allocation2 + $0x238] sm:$0x1] %vm2593_vm11, %v5578_v21 }
 0x171   : > { %4979 = vmatmul.mubr.msk.f32.gmra.mxu0 %vm2038_vm9, %v1997_v60 }
 0x172   : > { %v1063_v19 = vpop.permute.xlu1 %1062  ;;  %v921_v36 = vpop.permute.xlu0 %920 }
 0x173   : > { %v1850_v50 = vsel %vm1841_vm4, %v1813_v1, %v1063_v19  ;;  %v1814_v31 = vsel %vm1804_vm3, %v1777_v5, %v921_v36 }
 0x174   : > { %938 = vrot.lane.b32.xlu1 %v6381_v41, %s5572_s14  ;;  %1656 = vrot.lane.b32.xlu0 %v4782_v51, %s5577_s25 }
 0x176   : > { %v1207_v24 = vpop.permute.xlu1 %1206  ;;  %v1065_v34 = vpop.permute.xlu0 %1064 }
 0x177   : > { %v1887_v2 = vsel %vm1878_vm5, %v1850_v50, %v1207_v24  ;;  %v1851_v54 = vsel %vm1841_vm4, %v1814_v31, %v1065_v34  ;;  %v6595_v24 = vld [vmem:[%s5672_s11 + $0x128] sm:$0xff] }
 0x178   : > { %1082 = vrot.lane.b32.xlu1 %v4745_v8, %s5573_s15  ;;  %940 = vrot.lane.b32.xlu0 %v6398_v9, %s5572_s14  ;;  %v4784_v8 = vld [vmem:[%s5672_s11 + $0x112] sm:$0xff] }
 0x17a   : > { %v1351_v52 = vpop.permute.xlu1 %1350  ;;  %v1209_v6 = vpop.permute.xlu0 %1208 }
 0x17b   : > { %v1924_v35 = vsel %vm1915_vm6, %v1887_v2, %v1351_v52  ;;  %v1888_v47 = vsel %vm1878_vm5, %v1851_v54, %v1209_v6  ;;  %v8490_v54 = vld [vmem:[#allocation44_spill] sm:$0xff] }
 0x17c   : > { %1226 = vrot.lane.b32.xlu1 %v4781_v20, %s5574_s16  ;;  %1084 = vrot.lane.b32.xlu0 %v4746_v53, %s5573_s15 }
 0x17e   : > { %v1495_v0 = vpop.permute.xlu1 %1494  ;;  %v1353_v46 = vpop.permute.xlu0 %1352 }
 0x17f   : > { %v1961_v25 = vsel %vm1952_vm7, %v1924_v35, %v1495_v0  ;;  %v1925_v30 = vsel %vm1915_vm6, %v1888_v47, %v1353_v46  ;;  %v4608_v35 = vld [vmem:[%s5672_s11 + $0x128] sm:$0xff] }
 0x180   : > { %1370 = vrot.lane.b32.xlu1 %v6431_v3, %s5575_s29  ;;  %1228 = vrot.lane.b32.xlu0 %v4782_v51, %s5574_s16  ;;  %v4749_v51 = vld [vmem:[%s5672_s11 + $0x121] sm:$0xff] }
 0x181   : > { %v8491_v47 = vld [vmem:[#allocation31_spill] sm:$0xff] }
 0x182   : > { %v1639_v43 = vpop.permute.xlu1 %1638  ;;  %v1497_v12 = vpop.permute.xlu0 %1496 }
 0x183   : > { %v1998_v17 = vsel %vm1989_vm8, %v1961_v25, %v1639_v43  ;;  %v1962_v11 = vsel %vm1952_vm7, %v1925_v30, %v1497_v12  ;;  %v8489_v12 = vld [vmem:[#allocation7_spill] sm:$0xff] }
 0x184   : > { %1514 = vrot.lane.b32.xlu1 %v6445_v7, %s5576_s24  ;;  %1372 = vrot.lane.b32.xlu0 %v6450_v44, %s5575_s29 }
 0x185   : > { %4981 = vmatprep.mubr.msk.f32.mxu0 %vm2038_vm9, %v1998_v17  ;;  %v1743_v17 = vsel %vm1730_vm1, %v8490_v54, %v8489_v12  ;;  %v8498_v12 = vld [vmem:[#allocation32_spill] sm:$0xff] }
 0x186   : > { %v6468_v23 = vpop.permute.xlu1 %922  ;;  %v1641_v55 = vpop.permute.xlu0 %1640  ;;  %v1780_v30 = vsel %vm1767_vm2, %v1743_v17, %v8491_v47  ;;  %v4753_v47 = vld [vmem:[%s5672_s11 + $0x151] sm:$0xff] }
 0x187   : > { %v1999_v4 = vsel %vm1989_vm8, %v1962_v11, %v1641_v55  ;;  %v1815_v20 = vsel %vm1804_vm3, %v1778_v42, %v6468_v23 }
 0x188   : > { %1658 = vrot.lane.b32.xlu1 %v6462_v39, %s5577_s25  ;;  %1516 = vrot.lane.b32.xlu0 %v6465_v16, %s5576_s24 }
 0x189   : > { %4982 = vmatmul.mubr.msk.f32.gmra.mxu0 %vm2038_vm9, %v1999_v4  ;;  %v8492_v4 = vld [vmem:[#allocation6_spill] sm:$0xff] }
 0x18a   : > { %v1067_v38 = vpop.permute.xlu1 %1066  ;;  %v925_v48 = vpop.permute.xlu0 %924 }
 0x18b   : > { %v1852_v10 = vsel %vm1841_vm4, %v1815_v20, %v1067_v38  ;;  %v1816_v19 = vsel %vm1804_vm3, %v1779_v63, %v925_v48 }
 0x18c   : > { %942 = vrot.lane.b32.xlu1 %v6431_v3, %s5572_s14  ;;  %1660 = vrot.lane.b32.xlu0 %v4784_v8, %s5577_s25 }
 0x18e   : > { %v1211_v22 = vpop.permute.xlu1 %1210  ;;  %v1069_v33 = vpop.permute.xlu0 %1068 }
 0x18f   : > { %v1889_v62 = vsel %vm1878_vm5, %v1852_v10, %v1211_v22  ;;  %v1853_v34 = vsel %vm1841_vm4, %v1816_v19, %v1069_v33  ;;  %v8494_v22 = vld [vmem:[#allocation30_spill] sm:$0xff] }
 0x190   : > { %1086 = vrot.lane.b32.xlu1 %v6445_v7, %s5573_s15  ;;  %944 = vrot.lane.b32.xlu0 %v6450_v44, %s5572_s14 }
 0x192   : > { %v1355_v15 = vpop.permute.xlu1 %1354  ;;  %v1213_v59 = vpop.permute.xlu0 %1212 }
 0x193   : > { %v1926_v60 = vsel %vm1915_vm6, %v1889_v62, %v1355_v15  ;;  %v1890_v6 = vsel %vm1878_vm5, %v1853_v34, %v1213_v59  ;;  %v4751_v59 = vld [vmem:[%s5672_s11 + $0x139] sm:$0xff]  ;;  %v4788_v34 = vld [vmem:[%s5672_s11 + $0x142] sm:$0xff] }
 0x194   : > { %1230 = vrot.lane.b32.xlu1 %v6462_v39, %s5574_s16  ;;  %1088 = vrot.lane.b32.xlu0 %v6465_v16, %s5573_s15  ;;  %v4715_v39 = vld [vmem:[%s5672_s11 + $0x138] sm:$0xff] }
 0x196   : > { %v1499_v53 = vpop.permute.xlu1 %1498  ;;  %v1357_v32 = vpop.permute.xlu0 %1356 }
 0x197   : > { %v1963_v36 = vsel %vm1952_vm7, %v1926_v60, %v1499_v53  ;;  %v1927_v18 = vsel %vm1915_vm6, %v1890_v6, %v1357_v32  ;;  %v4787_v60 = vld [vmem:[%s5672_s11 + $0x13a] sm:$0xff] }
 0x198   : > { %1374 = vrot.lane.b32.xlu1 %v6578_v37, %s5575_s29  ;;  %1232 = vrot.lane.b32.xlu0 %v4784_v8, %s5574_s16  ;;  %v8493_v8 = vld [vmem:[#allocation47_spill] sm:$0xff] }
 0x199   : > { %v1744_v38 = vsel %vm1730_vm1, %v8493_v8, %v8492_v4 }
 0x19a   : > { %v1643_v28 = vpop.permute.xlu1 %1642  ;;  %v1501_v45 = vpop.permute.xlu0 %1500  ;;  %v1781_v33 = vsel %vm1767_vm2, %v1744_v38, %v8494_v22  ;;  %v4789_v38 = vld [vmem:[%s5672_s11 + $0x152] sm:$0xff] }
 0x19b   : > { %v2000_v52 = vsel %vm1989_vm8, %v1963_v36, %v1643_v28  ;;  %v1964_v1 = vsel %vm1952_vm7, %v1927_v18, %v1501_v45 }
 0x19c   : > { %1518 = vrot.lane.b32.xlu1 %v4749_v51, %s5576_s24  ;;  %1376 = vrot.lane.b32.xlu0 %v6595_v24, %s5575_s29 }
 0x19d   : > { %4984 = vmatprep.mubr.msk.f32.mxu0 %vm2038_vm9, %v2000_v52 }
 0x19e   : > { %v927_v0 = vpop.permute.xlu1 %926  ;;  %v1645_v46 = vpop.permute.xlu0 %1644 }
 0x19f   : > { %v2001_v50 = vsel %vm1989_vm8, %v1964_v1, %v1645_v46  ;;  %v1817_v16 = vsel %vm1804_vm3, %v1780_v30, %v927_v0  ;;  %v8495_v0 = vld [vmem:[#allocation9_spill] sm:$0xff] }
 0x1a0   : > { %1662 = vrot.lane.b32.xlu1 %v4785_v58, %s5577_s25  ;;  %1520 = vrot.lane.b32.xlu0 %v4750_v40, %s5576_s24  ;;  %v1745_v46 = vsel %vm1730_vm1, %v6215_v57, %v8495_v0  ;;  %v4718_v30 = vld [vmem:[%s5672_s11 + $0x158] sm:$0xff]  ;;  %v4720_v0 = vld [vmem:[%s5672_s11 + $0x170] sm:$0xff] }
 0x1a1   : > { %4985 = vmatmul.mubr.msk.f32.gmra.mxu0 %vm2038_vm9, %v2001_v50  ;;  %v8496_v50 = vld [vmem:[#allocation33_spill] sm:$0xff] }
 0x1a2   : > { %v1071_v2 = vpop.permute.xlu1 %1070  ;;  %v929_v5 = vpop.permute.xlu0 %928 }
 0x1a3   : > { %v1854_v55 = vsel %vm1841_vm4, %v1817_v16, %v1071_v2  ;;  %v1818_v42 = vsel %vm1804_vm3, %v1781_v33, %v929_v5  ;;  %v4717_v2 = vld [vmem:[%s5672_s11 + $0x150] sm:$0xff] }
 0x1a4   : > { %946 = vrot.lane.b32.xlu1 %v6578_v37, %s5572_s14  ;;  %1664 = vrot.lane.b32.xlu0 %v4786_v26, %s5577_s25 }
 0x1a6   : > { %v1215_v7 = vpop.permute.xlu1 %1214  ;;  %v1073_v31 = vpop.permute.xlu0 %1072 }
 0x1a7   : > { %v1891_v48 = vsel %vm1878_vm5, %v1854_v55, %v1215_v7  ;;  %v1855_v10 = vsel %vm1841_vm4, %v1818_v42, %v1073_v31 }
 0x1a8   : > { %1090 = vrot.lane.b32.xlu1 %v4749_v51, %s5573_s15  ;;  %948 = vrot.lane.b32.xlu0 %v4608_v35, %s5572_s14  ;;  %v4752_v51 = vld [vmem:[%s5672_s11 + $0x141] sm:$0xff] }
 0x1aa   : > { %v1359_v25 = vpop.permute.xlu1 %1358  ;;  %v1217_v43 = vpop.permute.xlu0 %1216 }
 0x1ab   : > { %v1928_v15 = vsel %vm1915_vm6, %v1891_v48, %v1359_v25  ;;  %v1892_v62 = vsel %vm1878_vm5, %v1855_v10, %v1217_v43  ;;  %v8497_v25 = vld [vmem:[#allocation8_spill] sm:$0xff]  ;;  %v4754_v48 = vld [vmem:[%s5672_s11 + $0x159] sm:$0xff] }
 0x1ac   : > { %1234 = vrot.lane.b32.xlu1 %v4785_v58, %s5574_s16  ;;  %1092 = vrot.lane.b32.xlu0 %v4750_v40, %s5573_s15  ;;  %v1746_v43 = vsel %vm1730_vm1, %v6223_v49, %v8497_v25  ;;  %v4756_v25 = vld [vmem:[%s5672_s11 + $0x171] sm:$0xff] }
 0x1ad   : > { %v1783_v54 = vsel %vm1767_vm2, %v1746_v43, %v8498_v12 }
 0x1ae   : > { %v1503_v11 = vpop.permute.xlu1 %1502  ;;  %v1361_v23 = vpop.permute.xlu0 %1360 }
 0x1af   : > { %v1965_v20 = vsel %vm1952_vm7, %v1928_v15, %v1503_v11  ;;  %v1929_v63 = vsel %vm1915_vm6, %v1892_v62, %v1361_v23  ;;  %v8499_v62 = vld [vmem:[#allocation11_spill] sm:$0xff] }
 0x1b0   : > { %1378 = vrot.lane.b32.xlu1 %v4715_v39, %s5575_s29  ;;  %1236 = vrot.lane.b32.xlu0 %v4786_v26, %s5574_s16  ;;  %v1782_v26 = vsel %vm1767_vm2, %v1745_v46, %v8496_v50 }
 0x1b2   : > { %v1647_v53 = vpop.permute.xlu1 %1646  ;;  %v1505_v32 = vpop.permute.xlu0 %1504 }
 0x1b3   : > { %v2002_v29 = vsel %vm1989_vm8, %v1965_v20, %v1647_v53  ;;  %v1966_v19 = vsel %vm1952_vm7, %v1929_v63, %v1505_v32  ;;  %v1747_v63 = vsel %vm1730_vm1, %v6275_v56, %v8499_v62 }
 0x1b4   : > { %1522 = vrot.lane.b32.xlu1 %v4751_v59, %s5576_s24  ;;  %1380 = vrot.lane.b32.xlu0 %v4716_v13, %s5575_s29 }
 0x1b5   : > { %4987 = vmatprep.mubr.msk.f32.mxu0 %vm2038_vm9, %v2002_v29 }
 0x1b6   : > { %v931_v36 = vpop.permute.xlu1 %930  ;;  %v1649_v28 = vpop.permute.xlu0 %1648 }
 0x1b7   : > { %v2003_v45 = vsel %vm1989_vm8, %v1966_v19, %v1649_v28  ;;  %v1819_v5 = vsel %vm1804_vm3, %v1782_v26, %v931_v36  ;;  %v4719_v19 = vld [vmem:[%s5672_s11 + $0x168] sm:$0xff] }
 0x1b8   : > { %1666 = vrot.lane.b32.xlu1 %v4787_v60, %s5577_s25  ;;  %1524 = vrot.lane.b32.xlu0 %v4752_v51, %s5576_s24 }
 0x1b9   : > { %4988 = vmatmul.mubr.msk.f32.gmra.mxu0 %vm2038_vm9, %v2003_v45 }
 0x1ba   : > { %v1075_v52 = vpop.permute.xlu1 %1074  ;;  %v933_v6 = vpop.permute.xlu0 %932 }
 0x1bb   : > { %v1856_v31 = vsel %vm1841_vm4, %v1819_v5, %v1075_v52  ;;  %v8501_v52 = vld [vmem:[#allocation10_spill] sm:$0xff] }
 0x1bc   : > { %950 = vrot.lane.b32.xlu1 %v4715_v39, %s5572_s14  ;;  %1668 = vrot.lane.b32.xlu0 %v4788_v34, %s5577_s25  ;;  %v1820_v39 = vsel %vm1804_vm3, %v1783_v54, %v933_v6  ;;  %v1748_v6 = vsel %vm1730_vm1, %v6292_v27, %v8501_v52  ;;  %v6796_v52 = vld [vmem:[%s5672_s11 + $0x189] sm:$0xff] }
 0x1be   : > { %v1219_v18 = vpop.permute.xlu1 %1218  ;;  %v1077_v58 = vpop.permute.xlu0 %1076 }
 0x1bf   : > { %v1893_v57 = vsel %vm1878_vm5, %v1856_v31, %v1219_v18  ;;  %v1857_v23 = vsel %vm1841_vm4, %v1820_v39, %v1077_v58  ;;  %v8502_v18 = vld [vmem:[#allocation34_spill] sm:$0xff]  ;;  %v6734_v31 = vld [vmem:[%s5672_s11 + $0x16a] sm:$0xff] }
 0x1c0   : > { %1094 = vrot.lane.b32.xlu1 %v4751_v59, %s5573_s15  ;;  %952 = vrot.lane.b32.xlu0 %v4716_v13, %s5572_s14  ;;  %v4790_v13 = vld [vmem:[%s5672_s11 + $0x15a] sm:$0xff]  ;;  %v1785_v58 = vsel %vm1767_vm2, %v1748_v6, %v8502_v18 }
 0x1c1   : > { %v6799_v6 = vld [vmem:[%s5672_s11 + $0x181] sm:$0xff] }
 0x1c2   : > { %v1363_v40 = vpop.permute.xlu1 %1362  ;;  %v1221_v1 = vpop.permute.xlu0 %1220 }
 0x1c3   : > { %v1930_v17 = vsel %vm1915_vm6, %v1893_v57, %v1363_v40  ;;  %v1894_v4 = vsel %vm1878_vm5, %v1857_v23, %v1221_v1  ;;  %v4755_v1 = vld [vmem:[%s5672_s11 + $0x169] sm:$0xff] }
 0x1c4   : > { %1238 = vrot.lane.b32.xlu1 %v4787_v60, %s5574_s16  ;;  %1096 = vrot.lane.b32.xlu0 %v4752_v51, %s5573_s15  ;;  %v8500_v60 = vld [vmem:[#allocation35_spill] sm:$0xff] }
 0x1c5   : > { %v1784_v51 = vsel %vm1767_vm2, %v1747_v63, %v8500_v60 }
 0x1c6   : > { %v1507_v35 = vpop.permute.xlu1 %1506  ;;  %v1365_v7 = vpop.permute.xlu0 %1364 }
 0x1c7   : > { %v1967_v16 = vsel %vm1952_vm7, %v1930_v17, %v1507_v35  ;;  %v1931_v8 = vsel %vm1915_vm6, %v1894_v4, %v1365_v7  ;;  %v6744_v17 = vld [vmem:[%s5672_s11 + $0x172] sm:$0xff] }
 0x1c8   : > { %1382 = vrot.lane.b32.xlu1 %v4717_v2, %s5575_s29  ;;  %1240 = vrot.lane.b32.xlu0 %v4788_v34, %s5574_s16  ;;  %v8503_v4 = vld [vmem:[#allocation13_spill] sm:$0xff] }
 0x1ca   : > { %v1651_v49 = vpop.permute.xlu1 %1650  ;;  %v1509_v11 = vpop.permute.xlu0 %1508 }
 0x1cb   : > { %v2004_v55 = vsel %vm1989_vm8, %v1967_v16, %v1651_v49  ;;  %v1968_v22 = vsel %vm1952_vm7, %v1931_v8, %v1509_v11  ;;  %v1749_v8 = vsel %vm1730_vm1, %v6328_v61, %v8503_v4  ;;  %v8506_v61 = vld [vmem:[#allocation36_spill] sm:$0xff] }
 0x1cc   : > { %1526 = vrot.lane.b32.xlu1 %v4753_v47, %s5576_s24  ;;  %1384 = vrot.lane.b32.xlu0 %v4718_v30, %s5575_s29 }
 0x1cd   : > { %4990 = vmatprep.mubr.msk.f32.mxu0 %vm2038_vm9, %v2004_v55 }
 0x1ce   : > { %v935_v33 = vpop.permute.xlu1 %934  ;;  %v1653_v15 = vpop.permute.xlu0 %1652 }
 0x1cf   : > { %v2005_v59 = vsel %vm1989_vm8, %v1968_v22, %v1653_v15  ;;  %v1821_v36 = vsel %vm1804_vm3, %v1784_v51, %v935_v33 }
 0x1d0   : > { %1670 = vrot.lane.b32.xlu1 %v4789_v38, %s5577_s25  ;;  %1528 = vrot.lane.b32.xlu0 %v4754_v48, %s5576_s24 }
 0x1d1   : > { %4991 = vmatmul.mubr.msk.f32.gmra.mxu0 %vm2038_vm9, %v2005_v59 }
 0x1d2   : > { %v1079_v42 = vpop.permute.xlu1 %1078  ;;  %v937_v20 = vpop.permute.xlu0 %936 }
 0x1d3   : > { %v1858_v34 = vsel %vm1841_vm4, %v1821_v36, %v1079_v42  ;;  %v1822_v46 = vsel %vm1804_vm3, %v1785_v58, %v937_v20 }
 0x1d4   : > { %954 = vrot.lane.b32.xlu1 %v4717_v2, %s5572_s14  ;;  %1672 = vrot.lane.b32.xlu0 %v4790_v13, %s5577_s25 }
 0x1d6   : > { %v1223_v53 = vpop.permute.xlu1 %1222  ;;  %v1081_v32 = vpop.permute.xlu0 %1080 }
 0x1d7   : > { %v1895_v56 = vsel %vm1878_vm5, %v1858_v34, %v1223_v53  ;;  %v1859_v2 = vsel %vm1841_vm4, %v1822_v46, %v1081_v32  ;;  %v3609_v46 = vld [vmem:[%s8439_s3 + $0x60] sm:$0xff] }
 0x1d8   : > { %1098 = vrot.lane.b32.xlu1 %v4753_v47, %s5573_s15  ;;  %956 = vrot.lane.b32.xlu0 %v4718_v30, %s5572_s14 }
 0x1da   : > { %v1367_v10 = vpop.permute.xlu1 %1366  ;;  %v1225_v29 = vpop.permute.xlu0 %1224 }
 0x1db   : > { %v1932_v40 = vsel %vm1915_vm6, %v1895_v56, %v1367_v10  ;;  %v1896_v35 = vsel %vm1878_vm5, %v1859_v2, %v1225_v29  ;;  %v6772_v10 = vld [vmem:[%s5672_s11 + $0x188] sm:$0xff]  ;;  %v6775_v29 = vld [vmem:[%s5672_s11 + $0x180] sm:$0xff] }
 0x1dc   : > { %1242 = vrot.lane.b32.xlu1 %v4789_v38, %s5574_s16  ;;  %1100 = vrot.lane.b32.xlu0 %v4754_v48, %s5573_s15  ;;  %v8504_v38 = vld [vmem:[#allocation37_spill] sm:$0xff]  ;;  %v3610_v56 = vld [vmem:[%s8439_s3 + $0x68] sm:$0xff] }
 0x1dd   : > { %v1786_v48 = vsel %vm1767_vm2, %v1749_v8, %v8504_v38 }
 0x1de   : > { %v1511_v28 = vpop.permute.xlu1 %1510  ;;  %v1369_v45 = vpop.permute.xlu0 %1368 }
 0x1df   : > { %v1969_v50 = vsel %vm1952_vm7, %v1932_v40, %v1511_v28  ;;  %v1933_v7 = vsel %vm1915_vm6, %v1896_v35, %v1369_v45  ;;  %v3611_v28 = vld [vmem:[%s8439_s3 + $0x70] sm:$0xff] }
 0x1e0   : > { %1386 = vrot.lane.b32.xlu1 %v4719_v19, %s5575_s29  ;;  %1244 = vrot.lane.b32.xlu0 %v4790_v13, %s5574_s16 }
 0x1e2   : > { %v1655_v27 = vpop.permute.xlu1 %1654  ;;  %v1513_v26 = vpop.permute.xlu0 %1512 }
 0x1e3   : > { %v2006_v5 = vsel %vm1989_vm8, %v1969_v50, %v1655_v27  ;;  %v1970_v43 = vsel %vm1952_vm7, %v1933_v7, %v1513_v26  ;;  %v6821_v27 = vld [vmem:[%s5672_s11 + $0x18a] sm:$0xff]  ;;  %v6824_v26 = vld [vmem:[%s5672_s11 + $0x182] sm:$0xff]  ;;  %v3608_v7 = vld [vmem:[%s8439_s3 + $0x58] sm:$0xff] }
 0x1e4   : > { %1530 = vrot.lane.b32.xlu1 %v4755_v1, %s5576_s24  ;;  %1388 = vrot.lane.b32.xlu0 %v4720_v0, %s5575_s29 }
 0x1e5   : > { %4993 = vmatprep.mubr.msk.f32.mxu0 %vm2038_vm9, %v2006_v5 }
 0x1e6   : > { %v939_v57 = vpop.permute.xlu1 %938  ;;  %v1657_v12 = vpop.permute.xlu0 %1656 }
 0x1e7   : > { %v2007_v54 = vsel %vm1989_vm8, %v1970_v43, %v1657_v12  ;;  %v1823_v22 = vsel %vm1804_vm3, %v1786_v48, %v939_v57  ;;  %v3607_v12 = vld [vmem:[%s8439_s3 + $0x50] sm:$0xff] }
 0x1e8   : > { %1674 = vrot.lane.b32.xlu1 %v6734_v31, %s5577_s25  ;;  %1532 = vrot.lane.b32.xlu0 %v4756_v25, %s5576_s24 }
 0x1e9   : > { %4994 = vmatmul.mubr.msk.f32.gmra.mxu0 %vm2038_vm9, %v2007_v54 }
 0x1ea   : > { %v1083_v47 = vpop.permute.xlu1 %1082  ;;  %v941_v30 = vpop.permute.xlu0 %940 }
 0x1eb   : > { %v1860_v59 = vsel %vm1841_vm4, %v1823_v22, %v1083_v47  ;;  %v3603_v22 = vld [vmem:[%s8439_s3 + $0x30] sm:$0xff] }
 0x1ec   : > { %816 = vrot.lane.b32.xlu1 %v4790_v13, %s5571_s13  ;;  %1676 = vrot.lane.b32.xlu0 %v6744_v17, %s5577_s25  ;;  %v8505_v13 = vld [vmem:[#allocation12_spill] sm:$0xff] }
 0x1ed   : > { %v1750_v42 = vsel %vm1730_vm1, %v6346_v14, %v8505_v13  ;;  %v3612_v14 = vld [vmem:[%s8439_s3 + $0x78] sm:$0xff]  ;;  %v8510_v13 = vld [vmem:[#allocation38_spill] sm:$0xff] }
 0x1ee   : > { %v1227_v39 = vpop.permute.xlu1 %1226  ;;  %v1085_v16 = vpop.permute.xlu0 %1084  ;;  %v1787_v53 = vsel %vm1767_vm2, %v1750_v42, %v8506_v61  ;;  %3773 = vmatpush1.msra.mxu1 %v3612_v14 }
 0x1ef   : > { %v1897_v20 = vsel %vm1878_vm5, %v1860_v59, %v1227_v39  ;;  %v1824_v62 = vsel %vm1804_vm3, %v1787_v53, %v941_v30  ;;  %3774 = vmatprep.subr.mxu1 %v5578_v21  ;;  %v3606_v39 = vld [vmem:[%s8439_s3 + $0x48] sm:$0xff] }
 0x1f0   : > { %960 = vrot.lane.b32.xlu1 %v4720_v0, %s5572_s14  ;;  %958 = vrot.lane.b32.xlu0 %v4719_v19, %s5572_s14  ;;  %v1861_v19 = vsel %vm1841_vm4, %v1824_v62, %v1085_v16  ;;  %v6810_v0 = vld [vmem:[%s8438_s2] ss:$0 sm:$0xff] }
 0x1f1   : > { %v4971_v49 = vpop.f32.mrf.mxu0  ;;  %3775 = vmatpush1.msra.mxu1 %v3611_v28 }
 0x1f2   : > { %v1371_v11 = vpop.permute.xlu1 %1370  ;;  %v1229_v23 = vpop.permute.xlu0 %1228  ;;  %3776 = vmatprep.subr.mxu1 %v5578_v21 }
 0x1f3   : > { %v2217_v55 = vpop.f32.mrf.mxu0  ;;  %v1934_v32 = vsel %vm1915_vm6, %v1897_v20, %v1371_v11  ;;  %v1898_v45 = vsel %vm1878_vm5, %v1861_v19, %v1229_v23  ;;  %3777 = vmatpush1.msra.mxu1 %v3610_v56  ;;  %v3605_v11 = vld [vmem:[%s8439_s3 + $0x40] sm:$0xff]  ;;  %v8507_v23 = vld [vmem:[#allocation15_spill] sm:$0xff]  ;;  %v6907_v19 = vld [vmem:[%s5672_s11 + $0x198] sm:$0xff] }
 0x1f4   : > { %1104 = vrot.lane.b32.xlu1 %v4756_v25, %s5573_s15  ;;  %1102 = vrot.lane.b32.xlu0 %v4755_v1, %s5573_s15  ;;  %v1751_v55 = vsel %vm1730_vm1, %v6381_v41, %v8507_v23  ;;  %v6921_v56 = vld [vmem:[%s5672_s11 + $0x1a1] sm:$0xff] }
 0x1f5   : > { %3778 = vmatprep.subr.mxu1 %v5578_v21 }
 0x1f6   : > { %v1515_v33 = vpop.permute.xlu1 %1514  ;;  %v1373_v15 = vpop.permute.xlu0 %1372  ;;  %3779 = vmatpush1.msra.mxu1 %v3609_v46  ;;  %v3599_v46 = vld [vmem:[%s8439_s3 + $0x10] sm:$0xff] }
 0x1f7   : > { %v1971_v63 = vsel %vm1952_vm7, %v1934_v32, %v1515_v33  ;;  %v1935_v34 = vsel %vm1915_vm6, %v1898_v45, %v1373_v15  ;;  %3780 = vmatprep.subr.mxu1 %v5578_v21  ;;  %v8509_v33 = vld [vmem:[#allocation14_spill] sm:$0xff] }
 0x1f8   : > { %1248 = vrot.lane.b32.xlu1 %v6744_v17, %s5574_s16  ;;  %1246 = vrot.lane.b32.xlu0 %v6734_v31, %s5574_s16  ;;  %v1752_v15 = vsel %vm1730_vm1, %v6398_v9, %v8509_v33  ;;  %v3641_v33 = vld [vmem:[%s8439_s3 + $0x160] sm:$0xff] }
 0x1f9   : > { %3781 = vmatpush1.msra.mxu1 %v3608_v7  ;;  %v1789_v42 = vsel %vm1767_vm2, %v1752_v15, %v8510_v13  ;;  %v6941_v7 = vld [vmem:[%s5672_s11 + $0x1a2] sm:$0xff]  ;;  %v8514_v15 = vld [vmem:[#allocation40_spill] sm:$0xff] }
 0x1fa   : > { %v1659_v60 = vpop.permute.xlu1 %1658  ;;  %v1517_v51 = vpop.permute.xlu0 %1516  ;;  %3782 = vmatprep.subr.mxu1 %v5578_v21 }
 0x1fb   : > { %v2008_v36 = vsel %vm1989_vm8, %v1971_v63, %v1659_v60  ;;  %v1972_v18 = vsel %vm1952_vm7, %v1935_v34, %v1517_v51  ;;  %3783 = vmatpush1.msra.mxu1 %v3607_v12  ;;  %v3601_v63 = vld [vmem:[%s8439_s3 + $0x20] sm:$0xff] }
 0x1fc   : > { %1392 = vrot.lane.b32.xlu1 %v6772_v10, %s5575_s29  ;;  %1390 = vrot.lane.b32.xlu0 %v6775_v29, %s5575_s29  ;;  %v6904_v51 = vld [vmem:[%s5672_s11 + $0x1a0] sm:$0xff] }
 0x1fd   : > { %4996 = vmatprep.mubr.msk.f32.mxu0 %vm2038_vm9, %v2008_v36  ;;  %3784 = vmatprep.subr.mxu1 %v5578_v21 }
 0x1fe   : > { %v943_v58 = vpop.permute.xlu1 %942  ;;  %v1661_v40 = vpop.permute.xlu0 %1660  ;;  %3785 = vmatpush1.msra.mxu1 %v3606_v39 }
 0x1ff   : > { %v2009_v1 = vsel %vm1989_vm8, %v1972_v18, %v1661_v40  ;;  %3786 = vmatprep.subr.mxu1 %v5578_v21  ;;  %v6924_v18 = vld [vmem:[%s5672_s11 + $0x199] sm:$0xff] }
 0x200   : > { %1536 = vrot.lane.b32.xlu1 %v6796_v52, %s5576_s24  ;;  %1534 = vrot.lane.b32.xlu0 %v6799_v6, %s5576_s24 }
 0x201   : > { %v4974_v50 = vpop.f32.mrf.mxu0  ;;  %4997 = vmatmul.mubr.msk.f32.gmra.mxu0 %vm2038_vm9, %v2009_v1  ;;  %3787 = vmatpush1.msra.mxu1 %v3605_v11  ;;  %v8511_v11 = vld [vmem:[#allocation17_spill] sm:$0xff] }
 0x202   : > { %v2233_v2 = vadd.f32 %v4974_v50, %v6810_v0  ;;  %v1087_v5 = vpop.permute.xlu1 %1086  ;;  %v945_v35 = vpop.permute.xlu0 %944  ;;  %3788 = vmatprep.subr.mxu1 %v5578_v21  ;;  %v1753_v23 = vsel %vm1730_vm1, %v6431_v3, %v8511_v11 }
 0x203   : > { %v2227_v25 = vpop.f32.mrf.mxu0  ;;  %v1826_v61 = vsel %vm1804_vm3, %v1789_v42, %v945_v35  ;;  %v3598_v35 = vld [vmem:[%s8439_s3 + $0x8] sm:$0xff] }
 0x204   : > { %v2399_v43 = vmax.f32 %v2233_v2, 0.0  ;;  %v2228_v57 = vadd.f32 %v6810_v0, %v2227_v25  ;;  %1680 = vrot.lane.b32.xlu1 %v6821_v27, %s5577_s25  ;;  %1678 = vrot.lane.b32.xlu0 %v6824_v26, %s5577_s25  ;;  %v6944_v25 = vld [vmem:[%s5672_s11 + $0x19a] sm:$0xff] }
 0x206   : > { %2634 = vst.msk [vmem:[#allocation2 + $0x30] sm:$0xff] %vm2630_vm10, %v2399_v43  ;;  %v2398_v54 = vmax.f32 %v2228_v57, 0.0  ;;  %v1231_v47 = vpop.permute.xlu1 %1230  ;;  %v1089_v30 = vpop.permute.xlu0 %1088 }
 0x208   : > { %2633 = vst.msk [vmem:[#allocation2 + $0x28] sm:$0xff] %vm2630_vm10, %v2398_v54  ;;  %820 = vrot.lane.b32.xlu1 %v6744_v17, %s5571_s13  ;;  %818 = vrot.lane.b32.xlu0 %v6734_v31, %s5571_s13  ;;  %v3604_v31 = vld [vmem:[%s8439_s3 + $0x38] sm:$0xff]  ;;  %v8508_v17 = vld [vmem:[#allocation39_spill] sm:$0xff]  ;;  %v3597_v54 = vld [vmem:[%s8439_s3] sm:$0xff] }
 0x209   : > { %v1788_v4 = vsel %vm1767_vm2, %v1751_v55, %v8508_v17  ;;  %3789 = vmatpush1.msra.mxu1 %v3604_v31  ;;  %v3627_v55 = vld [vmem:[%s8439_s3 + $0xf0] sm:$0xff]  ;;  %v3642_v31 = vld [vmem:[%s8439_s3 + $0x168] sm:$0xff]  ;;  %v8512_v17 = vld [vmem:[#allocation41_spill] sm:$0xff] }
 0x20a   : > { %v1375_v16 = vpop.permute.xlu1 %1374  ;;  %v1233_v49 = vpop.permute.xlu0 %1232  ;;  %v1825_v8 = vsel %vm1804_vm3, %v1788_v4, %v943_v58  ;;  %3790 = vmatprep.subr.mxu1 %v5578_v21  ;;  %v1790_v4 = vsel %vm1767_vm2, %v1753_v23, %v8512_v17  ;;  %v2700_v23 = vld [vmem:[#allocation2 + $0x10] sm:$0xff] }
 0x20b   : > { %v1862_v41 = vsel %vm1841_vm4, %v1825_v8, %v1087_v5  ;;  %3791 = vmatpush1.msra.mxu1 %v3603_v22 }
 0x20c   : > { %964 = vrot.lane.b32.xlu1 %v6772_v10, %s5572_s14  ;;  %962 = vrot.lane.b32.xlu0 %v6775_v29, %s5572_s14  ;;  %v1899_v59 = vsel %vm1878_vm5, %v1862_v41, %v1231_v47  ;;  %v3602_v10 = vld [vmem:[%s8439_s3 + $0x28] sm:$0xff]  ;;  %v1863_v29 = vsel %vm1841_vm4, %v1826_v61, %v1089_v30  ;;  %v3644_v47 = vld [vmem:[%s8439_s3 + $0x178] sm:$0xff] }
 0x20d   : > { %v1936_v20 = vsel %vm1915_vm6, %v1899_v59, %v1375_v16  ;;  %3792 = vmatprep.subr.mxu1 %v5578_v21  ;;  %v1900_v62 = vsel %vm1878_vm5, %v1863_v29, %v1233_v49  ;;  %3998 = vmatpush1.msra.mxu0 %v3644_v47  ;;  %v3628_v16 = vld [vmem:[%s8439_s3 + $0xf8] sm:$0xff]  ;;  %v3643_v49 = vld [vmem:[%s8439_s3 + $0x170] sm:$0xff] }
 0x20e   : > { %v1519_v38 = vpop.permute.xlu1 %1518  ;;  %v1377_v48 = vpop.permute.xlu0 %1376  ;;  %3793 = vmatpush1.msra.mxu1 %v3602_v10  ;;  %3999 = vmatprep.subr.mxu0 %v5578_v21  ;;  %v3640_v10 = vld [vmem:[%s8439_s3 + $0x158] sm:$0xff] }
 0x20f   : > { %v1973_v9 = vsel %vm1952_vm7, %v1936_v20, %v1519_v38  ;;  %v1937_v60 = vsel %vm1915_vm6, %v1900_v62, %v1377_v48  ;;  %3794 = vmatprep.subr.mxu1 %v5578_v21  ;;  %4000 = vmatpush1.msra.mxu0 %v3643_v49  ;;  %v3626_v38 = vld [vmem:[%s8439_s3 + $0xe8] sm:$0xff]  ;;  %v8513_v48 = vld [vmem:[#allocation16_spill] sm:$0xff]  ;;  %v3620_v47 = vld [vmem:[%s8439_s3 + $0xb8] sm:$0xff] }
 0x210   : > { %1108 = vrot.lane.b32.xlu1 %v6796_v52, %s5573_s15  ;;  %1106 = vrot.lane.b32.xlu0 %v6799_v6, %s5573_s15  ;;  %v3600_v52 = vld [vmem:[%s8439_s3 + $0x18] sm:$0xff]  ;;  %v1754_v41 = vsel %vm1730_vm1, %v6450_v44, %v8513_v48  ;;  %v2765_v17 = vld [vmem:[#allocation2 + $0x2f] sm:$0xff] }
 0x211   : > { %3795 = vmatpush1.msra.mxu1 %v3601_v63  ;;  %4001 = vmatprep.subr.mxu0 %v5578_v21  ;;  %v1791_v59 = vsel %vm1767_vm2, %v1754_v41, %v8514_v15  ;;  %v8516_v48 = vld [vmem:[#allocation43_spill] sm:$0xff]  ;;  %v5175_v15 = vpack.i.bf16 %v2700_v23, %v2765_v17  ;;  %v3629_v17 = vld [vmem:[%s8439_s3 + $0x100] sm:$0xff] }
 0x212   : > { %v1663_v53 = vpop.permute.xlu1 %1662  ;;  %v1521_v32 = vpop.permute.xlu0 %1520  ;;  %3796 = vmatprep.subr.mxu1 %v5578_v21  ;;  %4002 = vmatpush1.msra.mxu0 %v3642_v31  ;;  %v3635_v31 = vld [vmem:[%s8439_s3 + $0x130] sm:$0xff] }
 0x213   : > { %v2010_v14 = vsel %vm1989_vm8, %v1973_v9, %v1663_v53  ;;  %v1974_v36 = vsel %vm1952_vm7, %v1937_v60, %v1521_v32  ;;  %3797 = vmatpush1.msra.mxu1 %v3600_v52  ;;  %4003 = vmatprep.subr.mxu0 %v5578_v21  ;;  %v3625_v9 = vld [vmem:[%s8439_s3 + $0xe0] sm:$0xff]  ;;  %v7049_v52 = vld [vmem:[%s5672_s11 + $0x1b0] sm:$0xff] }
 0x214   : > { %1252 = vrot.lane.b32.xlu1 %v6821_v27, %s5574_s16  ;;  %1250 = vrot.lane.b32.xlu0 %v6824_v26, %s5574_s16 }
 0x215   : > { %4999 = vmatprep.mubr.msk.f32.mxu0 %vm2038_vm9, %v2010_v14  ;;  %3798 = vmatprep.subr.mxu1 %v5578_v21  ;;  %v3624_v14 = vld [vmem:[%s8439_s3 + $0xd8] sm:$0xff] }
 0x216   : > { %v947_v28 = vpop.permute.xlu1 %946  ;;  %v1665_v45 = vpop.permute.xlu0 %1664  ;;  %3799 = vmatpush1.msra.mxu1 %v3599_v46  ;;  %4004 = vmatpush1.msra.mxu0 %v3641_v33 }
 0x217   : > { %v2011_v34 = vsel %vm1989_vm8, %v1974_v36, %v1665_v45  ;;  %3800 = vmatprep.subr.mxu1 %v5578_v21  ;;  %v1827_v3 = vsel %vm1804_vm3, %v1790_v4, %v947_v28  ;;  %4005 = vmatprep.subr.mxu0 %v5578_v21  ;;  %v3623_v36 = vld [vmem:[%s8439_s3 + $0xd0] sm:$0xff]  ;;  %v2699_v4 = vld [vmem:[#allocation2 + $0x8] sm:$0xff] }
 0x218   : > { %1396 = vrot.lane.b32.xlu1 %v6904_v51, %s5575_s29  ;;  %1394 = vrot.lane.b32.xlu0 %v6907_v19, %s5575_s29  ;;  %v3639_v28 = vld [vmem:[%s8439_s3 + $0x150] sm:$0xff] }
 0x219   : > { %v4977_v6 = vpop.f32.mrf.mxu0  ;;  %5000 = vmatmul.mubr.msk.f32.gmra.mxu0 %vm2038_vm9, %v2011_v34  ;;  %3801 = vmatpush1.msra.mxu1 %v3598_v35  ;;  %v7046_v34 = vld [vmem:[%s5672_s11 + $0x1b8] sm:$0xff] }
 0x21a   : > { %v2243_v58 = vadd.f32 %v4977_v6, %v6810_v0  ;;  %v1091_v40 = vpop.permute.xlu1 %1090  ;;  %v949_v1 = vpop.permute.xlu0 %948  ;;  %3802 = vmatprep.subr.mxu1 %v5578_v21  ;;  %4006 = vmatpush1.msra.mxu0 %v3640_v10  ;;  %v7077_v35 = vld [vmem:[%s5672_s11 + $0x1b9] sm:$0xff] }
 0x21b   : > { %v2237_v50 = vpop.f32.mrf.mxu0  ;;  %3803 = vmatpush1.msra.mxu1 %v3597_v54  ;;  %v1828_v44 = vsel %vm1804_vm3, %v1791_v59, %v949_v1  ;;  %4007 = vmatprep.subr.mxu0 %v5578_v21  ;;  %v8518_v10 = vld [vmem:[#allocation42_spill] sm:$0xff] }
 0x21c   : > { %v2401_v2 = vmax.f32 %v2243_v58, 0.0  ;;  %v2238_v5 = vadd.f32 %v6810_v0, %v2237_v50  ;;  %1540 = vrot.lane.b32.xlu1 %v6921_v56, %s5576_s24  ;;  %1538 = vrot.lane.b32.xlu0 %v6924_v18, %s5576_s24  ;;  %v3622_v58 = vld [vmem:[%s8439_s3 + $0xc8] sm:$0xff] }
 0x21d   : > { %3804 = vmatprep.subr.mxu1 %v5578_v21  ;;  %4008 = vmatpush1.msra.mxu0 %v3639_v28  ;;  %v3616_v28 = vld [vmem:[%s8439_s3 + $0x98] sm:$0xff] }
 0x21e   : > { %2636 = vst.msk [vmem:[#allocation2 + $0x50] sm:$0xff] %vm2630_vm10, %v2401_v2  ;;  %v2400_v43 = vmax.f32 %v2238_v5, 0.0  ;;  %v1235_v57 = vpop.permute.xlu1 %1234  ;;  %v1093_v12 = vpop.permute.xlu0 %1092  ;;  %3805 = vmatpush2.msra.mxu1 %v3628_v16  ;;  %4009 = vmatprep.subr.mxu0 %v5578_v21  ;;  %v3621_v2 = vld [vmem:[%s8439_s3 + $0xc0] sm:$0xff]  ;;  %v7102_v16 = vld [vmem:[%s5672_s11 + $0x1b2] sm:$0xff] }
 0x21f   : > { %3806 = vmatprep.subr.mxu1 %v5578_v21  ;;  %v1865_v53 = vsel %vm1841_vm4, %v1828_v44, %v1093_v12  ;;  %v3637_v5 = vld [vmem:[%s8439_s3 + $0x140] sm:$0xff] }
 0x220   : > { %2635 = vst.msk [vmem:[#allocation2 + $0x48] sm:$0xff] %vm2630_vm10, %v2400_v43  ;;  %1684 = vrot.lane.b32.xlu1 %v6941_v7, %s5577_s25  ;;  %1682 = vrot.lane.b32.xlu0 %v6944_v25, %s5577_s25  ;;  %v7080_v43 = vld [vmem:[%s5672_s11 + $0x1b1] sm:$0xff] }
 0x221   : > { %3807 = vmatpush2.msra.mxu1 %v3627_v55  ;;  %v3619_v55 = vld [vmem:[%s8439_s3 + $0xb0] sm:$0xff] }
 0x222   : > { %v1379_v30 = vpop.permute.xlu1 %1378  ;;  %v1237_v39 = vpop.permute.xlu0 %1236  ;;  %3808 = vmatprep.subr.mxu1 %v5578_v21 }
 0x223   : > { %3809 = vmatpush2.msra.mxu1 %v3626_v38  ;;  %v1902_v29 = vsel %vm1878_vm5, %v1865_v53, %v1237_v39  ;;  %v7099_v39 = vld [vmem:[%s5672_s11 + $0x1ba] sm:$0xff]  ;;  %v3634_v38 = vld [vmem:[%s8439_s3 + $0x128] sm:$0xff] }
 0x224   : > { %824 = vrot.lane.b32.xlu1 %v6821_v27, %s5571_s13  ;;  %822 = vrot.lane.b32.xlu0 %v6824_v26, %s5571_s13  ;;  %v1864_v26 = vsel %vm1841_vm4, %v1827_v3, %v1091_v40  ;;  %v3638_v40 = vld [vmem:[%s8439_s3 + $0x148] sm:$0xff] }
 0x225   : > { %v1901_v22 = vsel %vm1878_vm5, %v1864_v26, %v1235_v57  ;;  %3810 = vmatprep.subr.mxu1 %v5578_v21  ;;  %4010 = vmatpush1.msra.mxu0 %v3638_v40  ;;  %v7112_v3 = vld [vmem:[#allocation2 + $0x27] sm:$0xff]  ;;  %v3615_v40 = vld [vmem:[%s8439_s3 + $0x90] sm:$0xff] }
 0x226   : > { %v1523_v8 = vpop.permute.xlu1 %1522  ;;  %v1381_v27 = vpop.permute.xlu0 %1380  ;;  %v1938_v13 = vsel %vm1915_vm6, %v1901_v22, %v1379_v30  ;;  %3811 = vmatpush2.msra.mxu1 %v3625_v9  ;;  %4011 = vmatprep.subr.mxu0 %v5578_v21  ;;  %v3636_v30 = vld [vmem:[%s8439_s3 + $0x138] sm:$0xff]  ;;  %v3618_v26 = vld [vmem:[%s8439_s3 + $0xa8] sm:$0xff]  ;;  %v5170_v59 = vpack.i.bf16 %v2699_v4, %v7112_v3 }
 0x227   : > { %v1975_v42 = vsel %vm1952_vm7, %v1938_v13, %v1523_v8  ;;  %v1939_v62 = vsel %vm1915_vm6, %v1902_v29, %v1381_v27  ;;  %3812 = vmatprep.subr.mxu1 %v5578_v21  ;;  %4012 = vmatpush1.msra.mxu0 %v3637_v5  ;;  %v8515_v8 = vld [vmem:[#allocation19_spill] sm:$0xff] }
 0x228   : > { %968 = vrot.lane.b32.xlu1 %v6904_v51, %s5572_s14  ;;  %966 = vrot.lane.b32.xlu0 %v6907_v19, %s5572_s14  ;;  %v1755_v27 = vsel %vm1730_vm1, %v6578_v37, %v8515_v8  ;;  %v2767_v44 = vld [vmem:[#allocation2 + $0x4f] sm:$0xff] }
 0x229   : > { %3813 = vmatpush2.msra.mxu1 %v3624_v14  ;;  %4013 = vmatprep.subr.mxu0 %v5578_v21  ;;  %v1792_v41 = vsel %vm1767_vm2, %v1755_v27, %v8516_v48  ;;  %v7217_v4 = vld [vmem:[#allocation2 + $0x48] sm:$0xff]  ;;  %v278_v48 = vld [vmem:[%s5672_s11 + $0x138] sm:$0xff] }
 0x22a   : > { %v1667_v20 = vpop.permute.xlu1 %1666  ;;  %v1525_v61 = vpop.permute.xlu0 %1524  ;;  %3814 = vmatprep.subr.mxu1 %v5578_v21  ;;  %4014 = vmatpush1.msra.mxu0 %v3636_v30 }
 0x22b   : > { %v2012_v32 = vsel %vm1989_vm8, %v1975_v42, %v1667_v20  ;;  %v1976_v63 = vsel %vm1952_vm7, %v1939_v62, %v1525_v61  ;;  %3815 = vmatpush2.msra.mxu1 %v3623_v36  ;;  %4015 = vmatprep.subr.mxu0 %v5578_v21  ;;  %v3617_v42 = vld [vmem:[%s8439_s3 + $0xa0] sm:$0xff]  ;;  %v2702_v62 = vld [vmem:[#allocation2 + $0x30] sm:$0xff]  ;;  %v2701_v36 = vld [vmem:[#allocation2 + $0x28] sm:$0xff] }
 0x22c   : > { %1112 = vrot.lane.b32.xlu1 %v6921_v56, %s5573_s15  ;;  %1110 = vrot.lane.b32.xlu0 %v6924_v18, %s5573_s15  ;;  %v3633_v20 = vld [vmem:[%s8439_s3 + $0x120] sm:$0xff] }
 0x22d   : > { %5002 = vmatprep.mubr.msk.f32.mxu0 %vm2038_vm9, %v2012_v32  ;;  %3816 = vmatprep.subr.mxu1 %v5578_v21  ;;  %v8517_v61 = vld [vmem:[#allocation18_spill] sm:$0xff] }
 0x22e   : > { %v7029_v60 = vpop.permute.xlu1 %950  ;;  %v1669_v51 = vpop.permute.xlu0 %1668  ;;  %3817 = vmatpush2.msra.mxu1 %v3622_v58  ;;  %4016 = vmatpush1.msra.mxu0 %v3635_v31  ;;  %v1756_v9 = vsel %vm1730_vm1, %v6595_v24, %v8517_v61  ;;  %v7150_v32 = vld [vmem:[#allocation2 + $0x47] sm:$0xff] }
 0x22f   : > { %v2013_v19 = vsel %vm1989_vm8, %v1976_v63, %v1669_v51  ;;  %3818 = vmatprep.subr.mxu1 %v5578_v21  ;;  %v1829_v37 = vsel %vm1804_vm3, %v1792_v41, %v7029_v60  ;;  %4017 = vmatprep.subr.mxu0 %v5578_v21  ;;  %v1793_v29 = vsel %vm1767_vm2, %v1756_v9, %v8518_v10  ;;  %v3656_v9 = vld [vmem:[%s8439_s3 + $0x1d8] sm:$0xff]  ;;  %v8521_v10 = vld [vmem:[#allocation20_spill] sm:$0xff] }
 0x230   : > { %1256 = vrot.lane.b32.xlu1 %v6941_v7, %s5574_s16  ;;  %1254 = vrot.lane.b32.xlu0 %v6944_v25, %s5574_s16 }
 0x231   : > { %v4980_v45 = vpop.f32.mrf.mxu0  ;;  %5003 = vmatmul.mubr.msk.f32.gmra.mxu0 %vm2038_vm9, %v2013_v19  ;;  %3819 = vmatpush2.msra.mxu1 %v3621_v2  ;;  %v5185_v19 = vpack.i.bf16 %v2702_v62, %v2767_v44  ;;  %v8522_v62 = vld [vmem:[#allocation45_spill] sm:$0xff] }
 0x232   : > { %v2253_v6 = vadd.f32 %v4980_v45, %v6810_v0  ;;  %v7053_v56 = vpop.permute.xlu1 %1094  ;;  %v7055_v18 = vpop.permute.xlu0 %952  ;;  %3820 = vmatprep.subr.mxu1 %v5578_v21  ;;  %4018 = vmatpush1.msra.mxu0 %v3634_v38 }
 0x233   : > { %v2247_v1 = vpop.f32.mrf.mxu0  ;;  %3821 = vmatpush2.msra.mxu1 %v3620_v47  ;;  %v1866_v13 = vsel %vm1841_vm4, %v1829_v37, %v7053_v56  ;;  %4019 = vmatprep.subr.mxu0 %v5578_v21  ;;  %v1830_v24 = vsel %vm1804_vm3, %v1793_v29, %v7055_v18  ;;  %v5180_v56 = vpack.i.bf16 %v2701_v36, %v7150_v32  ;;  %v3632_v18 = vld [vmem:[%s8439_s3 + $0x118] sm:$0xff]  ;;  %v3613_v47 = vld [vmem:[%s8439_s3 + $0x80] sm:$0xff] }
 0x234   : > { %v2403_v46 = vmax.f32 %v2253_v6, 0.0  ;;  %v2248_v50 = vadd.f32 %v6810_v0, %v2247_v1  ;;  %1400 = vrot.lane.b32.xlu1 %v7046_v34, %s5575_s29  ;;  %1398 = vrot.lane.b32.xlu0 %v7049_v52, %s5575_s29 }
 0x235   : > { %3822 = vmatprep.subr.mxu1 %v5578_v21  ;;  %4020 = vmatpush1.msra.mxu0 %v3633_v20 }
 0x236   : > { %2638 = vst.msk [vmem:[#allocation2 + $0x70] sm:$0xff] %vm2630_vm10, %v2403_v46  ;;  %v2402_v57 = vmax.f32 %v2248_v50, 0.0  ;;  %v1239_v12 = vpop.permute.xlu1 %1238  ;;  %v7083_v54 = vpop.permute.xlu0 %1096  ;;  %3823 = vmatpush2.msra.mxu1 %v3619_v55  ;;  %4021 = vmatprep.subr.mxu0 %v5578_v21 }
 0x237   : > { %3824 = vmatprep.subr.mxu1 %v5578_v21  ;;  %v1903_v53 = vsel %vm1878_vm5, %v1866_v13, %v1239_v12  ;;  %v1867_v45 = vsel %vm1841_vm4, %v1830_v24, %v7083_v54  ;;  %4022 = vmatpush1.msra.mxu0 %v3632_v18  ;;  %v3631_v12 = vld [vmem:[%s8439_s3 + $0x110] sm:$0xff]  ;;  %v8520_v13 = vld [vmem:[#allocation46_spill] sm:$0xff] }
 0x238   : > { %2637 = vst.msk [vmem:[#allocation2 + $0x68] sm:$0xff] %vm2630_vm10, %v2402_v57  ;;  %1544 = vrot.lane.b32.xlu1 %v7077_v35, %s5576_s24  ;;  %1542 = vrot.lane.b32.xlu0 %v7080_v43, %s5576_s24  ;;  %v3614_v57 = vld [vmem:[%s8439_s3 + $0x88] sm:$0xff] }
 0x239   : > { %3825 = vmatpush2.msra.mxu1 %v3618_v26  ;;  %4023 = vmatprep.subr.mxu0 %v5578_v21 }
 0x23a   : > { %v1383_v49 = vpop.permute.xlu1 %1382  ;;  %v1241_v11 = vpop.permute.xlu0 %1240  ;;  %3826 = vmatprep.subr.mxu1 %v5578_v21  ;;  %4024 = vmatpush1.msra.mxu0 %v3631_v12 }
 0x23b   : > { %v1940_v14 = vsel %vm1915_vm6, %v1903_v53, %v1383_v49  ;;  %3827 = vmatpush2.msra.mxu1 %v3617_v42  ;;  %v1904_v58 = vsel %vm1878_vm5, %v1867_v45, %v1241_v11  ;;  %4025 = vmatprep.subr.mxu0 %v5578_v21  ;;  %v4727_v42 = vld [vmem:[%s5672_s11 + $0x1c8] sm:$0xff]  ;;  %v4728_v45 = vld [vmem:[%s5672_s11 + $0x1d0] sm:$0xff] }
 0x23c   : > { %1688 = vrot.lane.b32.xlu1 %v7099_v39, %s5577_s25  ;;  %1686 = vrot.lane.b32.xlu0 %v7102_v16, %s5577_s25 }
 0x23d   : > { %3828 = vmatprep.subr.mxu1 %v5578_v21 }
 0x23e   : > { %v1527_v22 = vpop.permute.xlu1 %1526  ;;  %v1385_v33 = vpop.permute.xlu0 %1384  ;;  %3829 = vmatpush2.msra.mxu1 %v3616_v28 }
 0x23f   : > { %v1977_v63 = vsel %vm1952_vm7, %v1940_v14, %v1527_v22  ;;  %v1941_v1 = vsel %vm1915_vm6, %v1904_v58, %v1385_v33  ;;  %3830 = vmatprep.subr.mxu1 %v5578_v21  ;;  %v2768_v55 = vld [vmem:[#allocation2 + $0x67] sm:$0xff]  ;;  %v8519_v33 = vld [vmem:[#allocation21_spill] sm:$0xff]  ;;  %v3655_v14 = vld [vmem:[%s8439_s3 + $0x1d0] sm:$0xff] }
 0x240   : > { %5176 = vrot.lane.b32.xlu1 %v5175_v15, %s5579_s12  ;;  %5171 = vrot.lane.b32.xlu0 %v5170_v59, %s5579_s12  ;;  %v5190_v38 = vpack.i.bf16 %v7217_v4, %v2768_v55  ;;  %v3658_v22 = vld [vmem:[%s8439_s3 + $0x1e8] sm:$0xff]  ;;  %v1757_v15 = vsel %vm1730_vm1, %v278_v48, %v8519_v33  ;;  %v279_v59 = vld [vmem:[%s5672_s11 + $0x140] sm:$0xff] }
 0x241   : > { %3831 = vmatpush2.msra.mxu1 %v3615_v40  ;;  %v1794_v44 = vsel %vm1767_vm2, %v1757_v15, %v8520_v13  ;;  %v4799_v40 = vld [vmem:[%s5672_s11 + $0x1ca] sm:$0xff] }
 0x242   : > { %v1671_v60 = vpop.permute.xlu1 %1670  ;;  %v1529_v51 = vpop.permute.xlu0 %1528  ;;  %3832 = vmatprep.subr.mxu1 %v5578_v21  ;;  %v2769_v12 = vld [vmem:[#allocation2 + $0x6f] sm:$0xff] }
 0x243   : > { %v2014_v6 = vsel %vm1989_vm8, %v1977_v63, %v1671_v60  ;;  %v1978_v46 = vsel %vm1952_vm7, %v1941_v1, %v1529_v51  ;;  %3833 = vmatpush2.msra.mxu1 %v3614_v57  ;;  %v4763_v60 = vld [vmem:[%s5672_s11 + $0x1c9] sm:$0xff]  ;;  %v7343_v13 = vld [vmem:[#allocation2 + $0x31] sm:$0xff] }
 0x244   : > { %5005 = vmatprep.mubr.msk.f32.mxu0 %vm2038_vm9, %v2014_v6  ;;  %5186 = vrot.lane.b32.xlu1 %v5185_v19, %s5579_s12  ;;  %v3651_v55 = vld [vmem:[%s8439_s3 + $0x1b0] sm:$0xff] }
 0x245   : > { %5181 = vrot.lane.b32.xlu0 %v5180_v56, %s5579_s12  ;;  %3834 = vmatprep.subr.mxu1 %v5578_v21  ;;  %v7334_v15 = vld [vmem:[#allocation2 + $0x70] sm:$0xff] }
 0x246   : > { %v7181_v50 = vpop.permute.xlu1 %954  ;;  %v1673_v2 = vpop.permute.xlu0 %1672  ;;  %3835 = vmatpush2.msra.mxu1 %v3613_v47 }
 0x247   : > { %v2015_v5 = vsel %vm1989_vm8, %v1978_v46, %v1673_v2  ;;  %v1831_v20 = vsel %vm1804_vm3, %v1794_v44, %v7181_v50  ;;  %v4764_v2 = vld [vmem:[%s5672_s11 + $0x1d1] sm:$0xff] }
 0x248   : > { %5006 = vmatmul.mubr.msk.f32.gmra.mxu0 %vm2038_vm9, %v2015_v5  ;;  %828 = vrot.lane.b32.xlu1 %v6941_v7, %s5571_s13  ;;  %v3630_v7 = vld [vmem:[%s8439_s3 + $0x108] sm:$0xff]  ;;  %v3653_v5 = vld [vmem:[%s8439_s3 + $0x1c0] sm:$0xff] }
 0x249   : > { %v4983_v54 = vpop.f32.mrf.mxu0  ;;  %826 = vrot.lane.b32.xlu0 %v6944_v25, %s5571_s13  ;;  %4026 = vmatpush1.msra.mxu0 %v3630_v7 }
 0x24a   : > { %v2263_v30 = vadd.f32 %v4983_v54, %v6810_v0  ;;  %v1099_v49 = vpop.permute.xlu1 %1098  ;;  %v7202_v11 = vpop.permute.xlu0 %956  ;;  %4027 = vmatprep.subr.mxu0 %v5578_v21  ;;  %v3652_v54 = vld [vmem:[%s8439_s3 + $0x1b8] sm:$0xff] }
 0x24b   : > { %v2257_v23 = vpop.f32.mrf.mxu0  ;;  %4028 = vmatpush1.msra.mxu0 %v3629_v17  ;;  %v1868_v53 = vsel %vm1841_vm4, %v1831_v20, %v1099_v49  ;;  %v7315_v17 = vld [vmem:[#allocation2 + $0x68] sm:$0xff]  ;;  %v3647_v20 = vld [vmem:[%s8439_s3 + $0x190] sm:$0xff] }
 0x24c   : > { %v2405_v25 = vmax.f32 %v2263_v30, 0.0  ;;  %v2258_v31 = vadd.f32 %v6810_v0, %v2257_v23  ;;  %972 = vrot.lane.b32.xlu1 %v7046_v34, %s5572_s14  ;;  %v3660_v34 = vld [vmem:[%s8439_s3 + $0x1f8] sm:$0xff]  ;;  %4029 = vmatprep.subr.mxu0 %v5578_v21  ;;  %v2704_v23 = vld [vmem:[#allocation2 + $0x50] sm:$0xff] }
 0x24d   : > { %970 = vrot.lane.b32.xlu0 %v7049_v52, %s5572_s14  ;;  %v3659_v52 = vld [vmem:[%s8439_s3 + $0x1f0] sm:$0xff]  ;;  %4030 = vmatpush2.msra.mxu0 %v3660_v34 }
 0x24e   : > { %2640 = vst.msk [vmem:[#allocation2 + $0x90] sm:$0xff] %vm2630_vm10, %v2405_v25  ;;  %v2404_v8 = vmax.f32 %v2258_v31, 0.0  ;;  %v1243_v27 = vpop.permute.xlu1 %1242  ;;  %v1101_v26 = vpop.permute.xlu0 %1100  ;;  %4031 = vmatprep.subr.mxu0 %v5578_v21  ;;  %v4800_v30 = vld [vmem:[%s5672_s11 + $0x1d2] sm:$0xff]  ;;  %v5195_v31 = vpack.i.bf16 %v2704_v23, %v2769_v12  ;;  %v7324_v34 = vld [vmem:[#allocation2 + $0x29] sm:$0xff] }
 0x24f   : > { %4032 = vmatpush2.msra.mxu0 %v3659_v52  ;;  %v1905_v29 = vsel %vm1878_vm5, %v1868_v53, %v1243_v27  ;;  %v281_v53 = vld [vmem:[%s5672_s11 + $0x158] sm:$0xff] }
 0x250   : > { %2639 = vst.msk [vmem:[#allocation2 + $0x88] sm:$0xff] %vm2630_vm10, %v2404_v8  ;;  %5191 = vrot.lane.b32.xlu1 %v5190_v38, %s5579_s12  ;;  %4033 = vmatprep.subr.mxu0 %v5578_v21  ;;  %v3650_v38 = vld [vmem:[%s8439_s3 + $0x1a8] sm:$0xff] }
 0x251   : > { %1114 = vrot.lane.b32.xlu0 %v7080_v43, %s5573_s15  ;;  %v3657_v43 = vld [vmem:[%s8439_s3 + $0x1e0] sm:$0xff]  ;;  %4034 = vmatpush2.msra.mxu0 %v3658_v22 }
 0x252   : > { %v1387_v41 = vpop.permute.xlu1 %1386  ;;  %v1245_v37 = vpop.permute.xlu0 %1244  ;;  %4035 = vmatprep.subr.mxu0 %v5578_v21  ;;  %v3649_v22 = vld [vmem:[%s8439_s3 + $0x1a0] sm:$0xff] }
 0x253   : > { %4036 = vmatpush2.msra.mxu0 %v3657_v43  ;;  %v1942_v63 = vsel %vm1915_vm6, %v1905_v29, %v1387_v41 }
 0x254   : > { %1258 = vrot.lane.b32.xlu1 %v7102_v16, %s5574_s16  ;;  %4037 = vmatprep.subr.mxu0 %v5578_v21 }
 0x255   : > { %1116 = vrot.lane.b32.xlu0 %v7077_v35, %s5573_s15  ;;  %v1758_v35 = vsel %vm1730_vm1, %v279_v59, %v8521_v10  ;;  %4038 = vmatpush2.msra.mxu0 %v3656_v9  ;;  %v3648_v59 = vld [vmem:[%s8439_s3 + $0x198] sm:$0xff]  ;;  %v3646_v9 = vld [vmem:[%s8439_s3 + $0x188] sm:$0xff]  ;;  %v280_v10 = vld [vmem:[%s5672_s11 + $0x150] sm:$0xff]  ;;  %s8375_s15 = scalar_lea.hbm %s8441_s5, %s4877_s10 }
 0x256   : > { %v1531_v16 = vpop.permute.xlu1 %1530  ;;  %v1389_v61 = vpop.permute.xlu0 %1388  ;;  %v1795_v24 = vsel %vm1767_vm2, %v1758_v35, %v8522_v62  ;;  %4039 = vmatprep.subr.mxu0 %v5578_v21  ;;  %v7361_v35 = vld [vmem:[#allocation2 + $0x49] sm:$0xff] }
 0x257   : > { %v1832_v51 = vsel %vm1804_vm3, %v1795_v24, %v7202_v11  ;;  %v1979_v19 = vsel %vm1952_vm7, %v1942_v63, %v1531_v16  ;;  %4040 = vmatpush2.msra.mxu0 %v3655_v14  ;;  %v2771_v43 = vld [vmem:[#allocation2 + $0x8f] sm:$0xff]  ;;  %v3645_v24 = vld [vmem:[%s8439_s3 + $0x180] sm:$0xff] }
 0x258   : > { %1402 = vrot.lane.b32.xlu1 %v4727_v42, %s5575_s29  ;;  %v1869_v6 = vsel %vm1841_vm4, %v1832_v51, %v1101_v26  ;;  %4041 = vmatprep.subr.mxu0 %v5578_v21  ;;  %v2770_v26 = vld [vmem:[#allocation2 + $0x87] sm:$0xff]  ;;  %v5215_v42 = vpack.i.bf16 %v7343_v13, %v7334_v15  ;;  %v5210_v16 = vpack.i.bf16 %v2704_v23, %v2771_v43 }
 0x259   : > { %1260 = vrot.lane.b32.xlu0 %v7099_v39, %s5574_s16  ;;  %v3654_v39 = vld [vmem:[%s8439_s3 + $0x1c8] sm:$0xff]  ;;  %v1906_v18 = vsel %vm1878_vm5, %v1869_v6, %v1245_v37  ;;  %v5205_v37 = vpack.i.bf16 %v7324_v34, %v7315_v17  ;;  %v5200_v33 = vpack.i.bf16 %v7217_v4, %v2770_v26  ;;  %v8523_v51 = vld [vmem:[#allocation22_spill] sm:$0xff]  ;;  %v8525_v6 = vld [vmem:[#allocation48_spill] sm:$0xff]  ;;  %s5496_s16 = sshll.u32 %s5580_s17, 4  ;;  %s5497_s16 = int_to_ptr.vmem [resolvable:$false] %s5496_s16 }
 0x25a   : > { %v1675_v36 = vpop.permute.xlu1 %1674  ;;  %v1533_v28 = vpop.permute.xlu0 %1532  ;;  %v1943_v58 = vsel %vm1915_vm6, %v1906_v18, %v1389_v61  ;;  %4042 = vmatpush2.msra.mxu0 %v3654_v39  ;;  %v7351_v61 = vld [vmem:[#allocation2 + $0x88] sm:$0xff]  ;;  %v7382_v18 = vld [vmem:[#allocation2 + $0x51] sm:$0xff]  ;;  %s5498_s27 = scalar_lea.vmem %s5497_s16, 8192 }
 0x25b   : > { %v2016_v56 = vsel %vm1989_vm8, %v1979_v19, %v1675_v36  ;;  %v1980_v1 = vsel %vm1952_vm7, %v1943_v58, %v1533_v28  ;;  %4043 = vmatprep.subr.mxu0 %v5578_v21  ;;  %v5225_v62 = vpack.i.bf16 %v7361_v35, %v7351_v61  ;;  %v1760_v19 = vsel %vm1730_vm1, %v281_v53, %v8523_v51  ;;  %v8524_v36 = vld [vmem:[#allocation23_spill] sm:$0xff] }
 0x25c   : > { %5008 = vmatprep.mubr.msk.f32.mxu0 %vm2038_vm9, %v2016_v56  ;;  %1546 = vrot.lane.b32.xlu1 %v4763_v60, %s5576_s24  ;;  %v7369_v60 = vld [vmem:[#allocation2 + $0x90] sm:$0xff]  ;;  %v1759_v28 = vsel %vm1730_vm1, %v280_v10, %v8524_v36 }
 0x25d   : > { %1404 = vrot.lane.b32.xlu0 %v4728_v45, %s5575_s29  ;;  %4044 = vmatpush2.msra.mxu0 %v3653_v5  ;;  %v1796_v56 = vsel %vm1767_vm2, %v1759_v28, %v8525_v6  ;;  %v7426_v53 = vld [vmem:[#allocation2 + $0x89] sm:$0xff]  ;;  %v7437_v36 = vld [vmem:[#allocation2 + $0x91] sm:$0xff]  ;;  %s4583_s29 = sshll.u32 %s239_s8, 8 }
 0x25e   : > { %v7291_v46 = vpop.permute.xlu1 %816  ;;  %v1677_v50 = vpop.permute.xlu0 %1676  ;;  %4045 = vmatprep.subr.mxu0 %v5578_v21  ;;  %v8526_v28 = vld [vmem:[#allocation24_spill] sm:$0xff]  ;;  %v8527_v6 = vld [vmem:[#allocation25_spill] sm:$0xff]  ;;  %s8253_s9 = scalar_lea.vmem [#allocation3], %s4583_s29 }
 0x25f   : > { %v2017_v57 = vsel %vm1989_vm8, %v1980_v1, %v1677_v50  ;;  %4046 = vmatpush2.msra.mxu0 %v3652_v54  ;;  %v1797_v39 = vsel %vm1767_vm2, %v1760_v19, %v7291_v46  ;;  %s4496_s14 = sshll.u32 %s8253_s9, 4  ;;  %s8382_s14 = int_to_ptr.vmem [resolvable:$true] %s4496_s14 }
 0x260   : > { %5009 = vmatmul.mubr.msk.f32.gmra.mxu0 %vm2038_vm9, %v2017_v57  ;;  %1690 = vrot.lane.b32.xlu1 %v4799_v40, %s5577_s25  ;;  %p5499_p1 = scmp.lt.s32.totalorder %s8382_s14, %s5497_s16 }
 0x261   : > { %v4986_v47 = vpop.f32.mrf.mxu0  ;;  %1548 = vrot.lane.b32.xlu0 %v4764_v2, %s5576_s24  ;;  %4047 = vmatprep.subr.mxu0 %v5578_v21  ;;  %v5235_v2 = vpack.i.bf16 %v7382_v18, %v7369_v60 }
 0x262   : > { %v2273_v49 = vadd.f32 %v4986_v47, %v6810_v0  ;;  %v7307_v11 = vpop.permute.xlu1 %960  ;;  %v7309_v7 = vpop.permute.xlu0 %958  ;;  %4048 = vmatpush2.msra.mxu0 %v3651_v55 }
 0x263   : > { %v2267_v25 = vpop.f32.mrf.mxu0  ;;  %4049 = vmatprep.subr.mxu0 %v5578_v21  ;;  %v1834_v40 = vsel %vm1804_vm3, %v1797_v39, %v7307_v11  ;;  %v1833_v1 = vsel %vm1804_vm3, %v1796_v56, %v7309_v7  ;;  %v7401_v11 = vld [vmem:[#allocation2 + $0x69] sm:$0xff] }
 0x264   : > { %v2407_v8 = vmax.f32 %v2273_v49, 0.0  ;;  %v2268_v27 = vadd.f32 %v6810_v0, %v2267_v25  ;;  %1692 = vrot.lane.b32.xlu1 %v4800_v30, %s5577_s25  ;;  %4050 = vmatpush2.msra.mxu0 %v3650_v38  ;;  %v7415_v38 = vld [vmem:[#allocation2 + $0x71] sm:$0xff]  ;;  %s5492_s25 = scalar_lea.vmem %s8382_s14, 4096 }
 0x265   : > { %5196 = vrot.lane.b32.xlu0 %v5195_v31, %s5579_s12  ;;  %4051 = vmatprep.subr.mxu0 %v5578_v21  ;;  %p5493_p12 = scmp.ne.s32.totalorder %s8382_s14, %s5492_s25  ;;  %p5500_p2 = scmp.lt.s32.totalorder %s5498_s27, %s5492_s25 }
 0x266   : > { %2642 = vst.msk [vmem:[#allocation2 + $0xb0] sm:$0xff] %vm2630_vm10, %v2407_v8  ;;  %v2406_v52 = vmax.f32 %v2268_v27, 0.0  ;;  %v1105_v48 = vpop.permute.xlu1 %1104  ;;  %v1103_v41 = vpop.permute.xlu0 %1102  ;;  %4052 = vmatpush2.msra.mxu0 %v3649_v22 }
 0x267   : > { %4053 = vmatprep.subr.mxu0 %v5578_v21  ;;  %v1871_v5 = vsel %vm1841_vm4, %v1834_v40, %v1105_v48  ;;  %v1870_v46 = vsel %vm1841_vm4, %v1833_v1, %v1103_v41  ;;  %p5494_p13 = pnand %p5493_p12, %p5652_p4  ;;  %p5501_p3 = por %p5500_p2, %p5499_p1 }
 0x268   : > { %2641 = vst.msk [vmem:[#allocation2 + $0xa8] sm:$0xff] %vm2630_vm10, %v2406_v52  ;;  %5206 = vrot.lane.b32.xlu1 %v5205_v37, %s5579_s12  ;;  %4054 = vmatpush2.msra.mxu0 %v3648_v59 }
 0x269   : > { %5201 = vrot.lane.b32.xlu0 %v5200_v33, %s5579_s12  ;;  %4055 = vmatprep.subr.mxu0 %v5578_v21  ;;  %p5495_p0 = pneg %p5494_p13 }
 0x26a   : > { %v1249_v4 = vpop.permute.xlu1 %1248  ;;  %v1247_v44 = vpop.permute.xlu0 %1246  ;;  %4056 = vmatpush2.msra.mxu0 %v3647_v20 }
 0x26b   : > { %4057 = vmatprep.subr.mxu0 %v5578_v21  ;;  %v1908_v12 = vsel %vm1878_vm5, %v1871_v5, %v1249_v4  ;;  %v1907_v54 = vsel %vm1878_vm5, %v1870_v46, %v1247_v44  ;;  %p5502_p5 = pnand %p5501_p3, %p5495_p0 }
 0x26c   : > { %5216 = vrot.lane.b32.xlu1 %v5215_v42, %s5579_s12  ;;  %4058 = vmatpush2.msra.mxu0 %v3646_v9 }
 0x26d   : > { %5211 = vrot.lane.b32.xlu0 %v5210_v16, %s5579_s12  ;;  %4059 = vmatprep.subr.mxu0 %v5578_v21  ;;  %v7410_v27 = vld [vmem:[#allocation2 + $0xb0] sm:$0xff] }
 0x26e   : > { %v1393_v29 = vpop.permute.xlu1 %1392  ;;  %v1391_v14 = vpop.permute.xlu0 %1390  ;;  %4060 = vmatpush2.msra.mxu0 %v3645_v24  ;;  %v5255_v37 = vpack.i.bf16 %v7415_v38, %v7410_v27 }
 0x26f   : > { %v2772_v63 = vld [vmem:[#allocation2 + $0xa7] sm:$0xff]  ;;  %v2773_v58 = vld [vmem:[#allocation2 + $0xaf] sm:$0xff]  ;;  %v1945_v30 = vsel %vm1915_vm6, %v1908_v12, %v1393_v29  ;;  %v1944_v49 = vsel %vm1915_vm6, %v1907_v54, %v1391_v14 }
 0x270   : > { %5226 = vrot.lane.b32.xlu1 %v5225_v62, %s5579_s12  ;;  %v5220_v45 = vpack.i.bf16 %v7315_v17, %v2772_v63  ;;  %v7393_v57 = vld [vmem:[#allocation2 + $0xa8] sm:$0xff]  ;;  %v5230_v47 = vpack.i.bf16 %v7334_v15, %v2773_v58 }
 0x271   : > { %v5245_v31 = vpack.i.bf16 %v7401_v11, %v7393_v57  ;;  %v282_v62 = vld [vmem:[%s5672_s11 + $0x168] sm:$0xff] }
 0x272   : > { %5221 = vrot.lane.b32.xlu0 %v5220_v45, %s5579_s12  ;;  %v1537_v50 = vpop.permute.xlu1 %1536  ;;  %v1535_v21 = vpop.permute.xlu0 %1534  ;;  %v1761_v56 = vsel %vm1730_vm1, %v282_v62, %v8527_v6  ;;  %v7484_v62 = vld [vmem:[#allocation2 + $0xb1] sm:$0xff]  ;;  %v8528_v6 = vld [vmem:[#allocation26_spill] sm:$0xff] }
 0x273   : > { %v1982_v7 = vsel %vm1952_vm7, %v1945_v30, %v1537_v50  ;;  %v1981_v23 = vsel %vm1952_vm7, %v1944_v49, %v1535_v21 }
 0x274   : > { %5236 = vrot.lane.b32.xlu1 %v5235_v2, %s5579_s12 }
 0x276   : > { %5231 = vrot.lane.b32.xlu0 %v5230_v47, %s5579_s12  ;;  %v1681_v55 = vpop.permute.xlu1 %1680  ;;  %v1679_v25 = vpop.permute.xlu0 %1678 }
 0x277   : > { %v2019_v17 = vsel %vm1989_vm8, %v1982_v7, %v1681_v55  ;;  %v2018_v8 = vsel %vm1989_vm8, %v1981_v23, %v1679_v25  ;;  %v7463_v23 = vld [vmem:[%s8438_s2] ss:$0 sm:$0xff] }
 0x278   : > { %5011 = vmatprep.mubr.msk.f32.mxu0 %vm2038_vm9, %v2018_v8  ;;  %5246 = vrot.lane.b32.xlu1 %v5245_v31, %s5579_s12 }
 0x279   : > { %v4989_v26 = vpop.f32.mrf.mxu0  ;;  %5012 = vmatmul.mubr.msk.f32.gmra.mxu0 %vm2038_vm9, %v2019_v17 }
 0x27a   : > { %v2283_v52 = vadd.f32 %v4989_v26, %v6810_v0  ;;  %v821_v48 = vpop.permute.xlu1 %820  ;;  %v819_v41 = vpop.permute.xlu0 %818 }
 0x27b   : > { %v2277_v22 = vpop.f32.mrf.mxu0  ;;  %v1798_v40 = vsel %vm1767_vm2, %v1761_v56, %v819_v41 }
 0x27c   : > { %v2409_v33 = vmax.f32 %v2283_v52, 0.0  ;;  %v2278_v15 = vadd.f32 %v6810_v0, %v2277_v22  ;;  %5256 = vrot.lane.b32.xlu1 %v5255_v37, %s5579_s12  ;;  %v283_v0 = vld [vmem:[%s5672_s11 + $0x170] sm:$0xff] }
 0x27d   : > { %v1762_v45 = vsel %vm1730_vm1, %v283_v0, %v8526_v28  ;;  %v284_v28 = vld [vmem:[%s5672_s11 + $0x180] sm:$0xff] }
 0x27e   : > { %2644 = vst.msk [vmem:[#allocation2 + $0xd0] sm:$0xff] %vm2630_vm10, %v2409_v33  ;;  %v2408_v43 = vmax.f32 %v2278_v15, 0.0  ;;  %v965_v59 = vpop.permute.xlu1 %964  ;;  %v963_v4 = vpop.permute.xlu0 %962  ;;  %v1799_v58 = vsel %vm1767_vm2, %v1762_v45, %v821_v48 }
 0x27f   : > { %v1836_v1 = vsel %vm1804_vm3, %v1799_v58, %v965_v59  ;;  %v1835_v50 = vsel %vm1804_vm3, %v1798_v40, %v963_v4 }
 0x280   : > { %2643 = vst.msk [vmem:[#allocation2 + $0xc8] sm:$0xff] %vm2630_vm10, %v2408_v43 }
 0x282   : > { %v1109_v44 = vpop.permute.xlu1 %1108  ;;  %v1107_v42 = vpop.permute.xlu0 %1106 }
 0x283   : > { %v1873_v5 = vsel %vm1841_vm4, %v1836_v1, %v1109_v44  ;;  %v1872_v46 = vsel %vm1841_vm4, %v1835_v50, %v1107_v42  ;;  %v7475_v44 = vld [vmem:[#allocation2 + $0xa9] sm:$0xff] }
 0x285   : > { %v7433_v24 = vld [vmem:[#allocation2 + $0xd0] sm:$0xff] }
 0x286   : > { %v1253_v20 = vpop.permute.xlu1 %1252  ;;  %v1251_v16 = vpop.permute.xlu0 %1250 }
 0x287   : > { %v7424_v9 = vld [vmem:[#allocation2 + $0xc8] sm:$0xff]  ;;  %v1909_v12 = vsel %vm1878_vm5, %v1872_v46, %v1251_v16 }
 0x288   : > { %v2774_v10 = vld [vmem:[#allocation2 + $0xc7] sm:$0xff]  ;;  %v5265_v29 = vpack.i.bf16 %v7426_v53, %v7424_v9  ;;  %v2775_v63 = vld [vmem:[#allocation2 + $0xcf] sm:$0xff] }
 0x289   : > { %v5240_v14 = vpack.i.bf16 %v7351_v61, %v2774_v10  ;;  %v5275_v61 = vpack.i.bf16 %v7437_v36, %v7433_v24  ;;  %v5250_v39 = vpack.i.bf16 %v7369_v60, %v2775_v63  ;;  %v1910_v60 = vsel %vm1878_vm5, %v1873_v5, %v1253_v20 }
 0x28a   : > { %5266 = vrot.lane.b32.xlu1 %v5265_v29, %s5579_s12  ;;  %v1397_v51 = vpop.permute.xlu1 %1396  ;;  %v1395_v19 = vpop.permute.xlu0 %1394 }
 0x28b   : > { %5241 = vrot.lane.b32.xlu0 %v5240_v14, %s5579_s12  ;;  %v1947_v54 = vsel %vm1915_vm6, %v1910_v60, %v1397_v51  ;;  %v1946_v47 = vsel %vm1915_vm6, %v1909_v12, %v1395_v19  ;;  %v285_v19 = vld [vmem:[%s5672_s11 + $0x188] sm:$0xff] }
 0x28c   : > { %v1764_v56 = vsel %vm1730_vm1, %v285_v19, %v8528_v6 }
 0x28e   : > { %5276 = vrot.lane.b32.xlu1 %v5275_v61, %s5579_s12  ;;  %v1541_v21 = vpop.permute.xlu1 %1540  ;;  %v1539_v2 = vpop.permute.xlu0 %1538  ;;  %v8529_v61 = vld [vmem:[#allocation27_spill] sm:$0xff] }
 0x28f   : > { %5251 = vrot.lane.b32.xlu0 %v5250_v39, %s5579_s12  ;;  %v1984_v49 = vsel %vm1952_vm7, %v1947_v54, %v1541_v21  ;;  %v1983_v7 = vsel %vm1952_vm7, %v1946_v47, %v1539_v2  ;;  %v1763_v39 = vsel %vm1730_vm1, %v284_v28, %v8529_v61  ;;  %v7522_v28 = vld [vmem:[#allocation2 + $0xc9] sm:$0xff] }
 0x291   : > { %v4992_v30 = vpop.f32.mrf.mxu0 }
 0x292   : > { %v2293_v55 = vadd.f32 %v7463_v23, %v4992_v30  ;;  %v1685_v25 = vpop.permute.xlu1 %1684  ;;  %v1683_v31 = vpop.permute.xlu0 %1682 }
 0x293   : > { %v2021_v17 = vsel %vm1989_vm8, %v1984_v49, %v1685_v25  ;;  %v2020_v8 = vsel %vm1989_vm8, %v1983_v7, %v1683_v31  ;;  %v2287_v26 = vpop.f32.mrf.mxu0 }
 0x294   : > { %v2411_v52 = vmax.f32 %v2293_v55, 0.0  ;;  %v2288_v48 = vadd.f32 %v7463_v23, %v2287_v26  ;;  %5014 = vmatprep.mubr.msk.f32.mxu0 %vm2038_vm9, %v2020_v8 }
 0x295   : > { %5015 = vmatmul.mubr.msk.f32.gmra.mxu0 %vm2038_vm9, %v2021_v17 }
 0x296   : > { %2646 = vst.msk [vmem:[#allocation2 + $0xf0] sm:$0xff] %vm2630_vm10, %v2411_v52  ;;  %v2410_v41 = vmax.f32 %v2288_v48, 0.0  ;;  %v825_v37 = vpop.permute.xlu1 %824  ;;  %v823_v22 = vpop.permute.xlu0 %822 }
 0x297   : > { %v1801_v58 = vsel %vm1767_vm2, %v1764_v56, %v825_v37  ;;  %v1800_v40 = vsel %vm1767_vm2, %v1763_v39, %v823_v22  ;;  %v2731_v22 = vld [vmem:[#allocation2 + $0x9] sm:$0xff] }
 0x298   : > { %2645 = vst.msk [vmem:[#allocation2 + $0xe8] sm:$0xff] %vm2630_vm10, %v2410_v41 }
 0x29a   : > { %v969_v33 = vpop.permute.xlu1 %968  ;;  %v967_v15 = vpop.permute.xlu0 %966 }
 0x29b   : > { %v1837_v50 = vsel %vm1804_vm3, %v1800_v40, %v967_v15 }
 0x29d   : > { %v7480_v10 = vld [vmem:[#allocation2 + $0xf0] sm:$0xff] }
 0x29e   : > { %v1113_v43 = vpop.permute.xlu1 %1112  ;;  %v1111_v59 = vpop.permute.xlu0 %1110  ;;  %v5295_v63 = vpack.i.bf16 %v7484_v62, %v7480_v10 }
 0x29f   : > { %v7473_v4 = vld [vmem:[#allocation2 + $0xe8] sm:$0xff]  ;;  %v1874_v60 = vsel %vm1841_vm4, %v1837_v50, %v1111_v59 }
 0x2a0   : > { %v2776_v42 = vld [vmem:[#allocation2 + $0xe7] sm:$0xff]  ;;  %v5285_v20 = vpack.i.bf16 %v7475_v44, %v7473_v4  ;;  %v2777_v0 = vld [vmem:[#allocation2 + $0xef] sm:$0xff] }
 0x2a1   : > { %v5260_v16 = vpack.i.bf16 %v7393_v57, %v2776_v42  ;;  %v5270_v51 = vpack.i.bf16 %v7410_v27, %v2777_v0  ;;  %v1838_v27 = vsel %vm1804_vm3, %v1801_v58, %v969_v33  ;;  %v2667_v33 = vld [vmem:[#allocation2 + $0x7] sm:$0xff]  ;;  %v2732_v42 = vld [vmem:[#allocation2 + $0x11] sm:$0xff] }
 0x2a2   : > { %5286 = vrot.lane.b32.xlu1 %v5285_v20, %s5579_s12  ;;  %v1257_v29 = vpop.permute.xlu1 %1256  ;;  %v1255_v14 = vpop.permute.xlu0 %1254  ;;  %v1875_v46 = vsel %vm1841_vm4, %v1838_v27, %v1113_v43 }
 0x2a3   : > { %5261 = vrot.lane.b32.xlu0 %v5260_v16, %s5579_s12  ;;  %v1912_v54 = vsel %vm1878_vm5, %v1875_v46, %v1257_v29  ;;  %v1911_v47 = vsel %vm1878_vm5, %v1874_v60, %v1255_v14  ;;  %v2668_v14 = vld [vmem:[#allocation2 + $0xf] sm:$0xff] }
 0x2a6   : > { %5296 = vrot.lane.b32.xlu1 %v5295_v63, %s5579_s12  ;;  %v1401_v57 = vpop.permute.xlu1 %1400  ;;  %v1399_v45 = vpop.permute.xlu0 %1398 }
 0x2a7   : > { %5271 = vrot.lane.b32.xlu0 %v5270_v51, %s5579_s12  ;;  %v1949_v7 = vsel %vm1915_vm6, %v1912_v54, %v1401_v57  ;;  %v1948_v55 = vsel %vm1915_vm6, %v1911_v47, %v1399_v45 }
 0x2a9   : > { %v4995_v1 = vpop.f32.mrf.mxu0 }
 0x2aa   : > { %v2303_v21 = vadd.f32 %v7463_v23, %v4995_v1  ;;  %v1545_v2 = vpop.permute.xlu1 %1544  ;;  %v1543_v5 = vpop.permute.xlu0 %1542 }
 0x2ab   : > { %v2297_v12 = vpop.f32.mrf.mxu0  ;;  %v1986_v25 = vsel %vm1952_vm7, %v1949_v7, %v1545_v2  ;;  %v1985_v31 = vsel %vm1952_vm7, %v1948_v55, %v1543_v5  ;;  %v7539_v2 = vld [vmem:[#allocation2 + $0xd1] sm:$0xff] }
 0x2ac   : > { %v2413_v30 = vmax.f32 %v2303_v21, 0.0  ;;  %v2298_v49 = vadd.f32 %v7463_v23, %v2297_v12 }
 0x2ae   : > { %2648 = vst.msk [vmem:[#allocation2 + $0x110] sm:$0xff] %vm2630_vm10, %v2413_v30  ;;  %v2412_v17 = vmax.f32 %v2298_v49, 0.0  ;;  %v1689_v8 = vpop.permute.xlu1 %1688  ;;  %v1687_v26 = vpop.permute.xlu0 %1686  ;;  %v2670_v30 = vld [vmem:[#allocation2 + $0x2f] sm:$0xff] }
 0x2af   : > { %v2023_v52 = vsel %vm1989_vm8, %v1986_v25, %v1689_v8  ;;  %v2022_v48 = vsel %vm1989_vm8, %v1985_v31, %v1687_v26 }
 0x2b0   : > { %2647 = vst.msk [vmem:[#allocation2 + $0x108] sm:$0xff] %vm2630_vm10, %v2412_v17  ;;  %5017 = vmatprep.mubr.msk.f32.mxu0 %vm2038_vm9, %v2022_v48 }
 0x2b1   : > { %5018 = vmatmul.mubr.msk.f32.gmra.mxu0 %vm2038_vm9, %v2023_v52 }
 0x2b2   : > { %v5177_v41 = vpop.permute.xlu1 %5176  ;;  %v5172_v37 = vpop.permute.xlu0 %5171 }
 0x2b3   : > { %v5178_v15 = vunpack.i.l.bf16 %v5177_v41  ;;  %v5174_v43 = vunpack.i.h.bf16 %v5172_v37  ;;  %v5173_v59 = vunpack.i.l.bf16 %v5172_v37  ;;  %v5179_v0 = vunpack.i.h.bf16 %v5177_v41  ;;  %v286_v37 = vld [vmem:[%s5672_s11 + $0x198] sm:$0xff] }
 0x2b5   : > { %v3501_v20 = vsel %vm2630_vm10, %v2731_v22, %v5173_v59  ;;  %v3469_v16 = vsel %vm2630_vm10, %v2667_v33, %v5174_v43  ;;  %v3502_v51 = vsel %vm2630_vm10, %v2732_v42, %v5178_v15  ;;  %v7530_v61 = vld [vmem:[#allocation2 + $0x110] sm:$0xff]  ;;  %v3470_v1 = vsel %vm2630_vm10, %v2668_v14, %v5179_v0  ;;  %v8530_v15 = vld [vmem:[#allocation29_spill] sm:$0xff]  ;;  %v287_v59 = vld [vmem:[%s5672_s11 + $0x1a0] sm:$0xff]  ;;  %s8390_s11 = scalar_lea.sflag [#allocation4], %s239_s8 }
 0x2b6   : > { %v5187_v29 = vpop.permute.xlu1 %5186  ;;  %3836 = vmatprep.mubr.f32.mxu1 %v3501_v20  ;;  %v1765_v43 = vsel %vm1730_vm1, %v286_v37, %v8530_v15 }
 0x2b7   : > { %v5182_v63 = vpop.permute.xlu0 %5181  ;;  %3837 = vmatmul.mubr.f32.vlgmr.msra.gmra.mxu1 %v3469_v16  ;;  %v7520_v19 = vld [vmem:[#allocation2 + $0x108] sm:$0xff]  ;;  %v5188_v27 = vunpack.i.l.bf16 %v5187_v29  ;;  %v5189_v46 = vunpack.i.h.bf16 %v5187_v29 }
 0x2b8   : > { %v7524_v57 = vld [vmem:[#allocation2 + $0x107] sm:$0xff]  ;;  %v5183_v45 = vunpack.i.l.bf16 %v5182_v63  ;;  %3841 = vmatprep.mubr.f32.mxu1 %v3502_v51  ;;  %v5305_v6 = vpack.i.bf16 %v7522_v28, %v7520_v19  ;;  %v7532_v39 = vld [vmem:[#allocation2 + $0x10f] sm:$0xff]  ;;  %v5184_v58 = vunpack.i.h.bf16 %v5182_v63 }
 0x2b9   : > { %v5280_v56 = vpack.i.bf16 %v7424_v9, %v7524_v57  ;;  %v5315_v9 = vpack.i.bf16 %v7539_v2, %v7530_v61  ;;  %v5290_v5 = vpack.i.bf16 %v7433_v24, %v7532_v39  ;;  %v3472_v7 = vsel %vm2630_vm10, %v2670_v30, %v5189_v46  ;;  %v7569_v29 = vld [vmem:[#allocation2 + $0xe9] sm:$0xff] }
 0x2ba   : > { %5306 = vrot.lane.b32.xlu1 %v5305_v6, %s5579_s12  ;;  %v829_v40 = vpop.permute.xlu1 %828  ;;  %v3503_v21 = vsel %vm2630_vm10, %v7324_v34, %v5183_v45  ;;  %v3471_v12 = vsel %vm2630_vm10, %v7112_v3, %v5184_v58  ;;  %v3504_v34 = vsel %vm2630_vm10, %v7343_v13, %v5188_v27  ;;  %v8531_v63 = vld [vmem:[#allocation28_spill] sm:$0xff] }
 0x2bb   : > { %5281 = vrot.lane.b32.xlu0 %v5280_v56, %s5579_s12  ;;  %v827_v50 = vpop.permute.xlu0 %826  ;;  %3842 = vmatmul.mubr.f32.gmra.mxu1 %v3470_v1  ;;  %v1766_v51 = vsel %vm1730_vm1, %v287_v59, %v8531_v63  ;;  %v2796_v59 = vld [vmem:[#allocation2 + $0x28] sm:$0xff] }
 0x2bc   : > { %3846 = vmatprep.mubr.f32.mxu1 %v3503_v21  ;;  %v1803_v58 = vsel %vm1767_vm2, %v1766_v51, %v829_v40 }
 0x2be   : > { %5316 = vrot.lane.b32.xlu1 %v5315_v9, %s5579_s12  ;;  %v973_v60 = vpop.permute.xlu1 %972 }
 0x2bf   : > { %5291 = vrot.lane.b32.xlu0 %v5290_v5, %s5579_s12  ;;  %v971_v54 = vpop.permute.xlu0 %970  ;;  %3847 = vmatmul.mubr.f32.gmra.mxu1 %v3471_v12  ;;  %v1840_v21 = vsel %vm1804_vm3, %v1803_v58, %v973_v60  ;;  %v7592_v12 = vld [vmem:[#allocation2 + $0xf1] sm:$0xff] }
 0x2c0   : > { %3851 = vmatprep.mubr.f32.mxu1 %v3504_v34 }
 0x2c1   : > { %v4998_v47 = vpop.f32.mrf.mxu0 }
 0x2c2   : > { %v2313_v49 = vadd.f32 %v7463_v23, %v4998_v47  ;;  %v5192_v24 = vpop.permute.xlu1 %5191 }
 0x2c3   : > { %v2307_v55 = vpop.f32.mrf.mxu0  ;;  %v5194_v25 = vunpack.i.h.bf16 %v5192_v24  ;;  %v5193_v31 = vunpack.i.l.bf16 %v5192_v24  ;;  %v1115_v17 = vpop.permute.xlu0 %1114  ;;  %3852 = vmatmul.mubr.f32.gmra.mxu1 %v3472_v7 }
 0x2c4   : > { %v2415_v3 = vmax.f32 %v2313_v49, 0.0  ;;  %v2308_v8 = vadd.f32 %v7463_v23, %v2307_v55 }
 0x2c5   : > { %v3505_v13 = vsel %vm2630_vm10, %v7361_v35, %v5193_v31  ;;  %v3473_v26 = vsel %vm2630_vm10, %v7150_v32, %v5194_v25  ;;  %v1802_v35 = vsel %vm1767_vm2, %v1765_v43, %v827_v50  ;;  %v2673_v43 = vld [vmem:[#allocation2 + $0x67] sm:$0xff] }
 0x2c6   : > { %2650 = vst.msk [vmem:[#allocation2 + $0x130] sm:$0xff] %vm2630_vm10, %v2415_v3  ;;  %v2414_v52 = vmax.f32 %v2308_v8, 0.0  ;;  %v1259_v48 = vpop.permute.xlu1 %1258  ;;  %3856 = vmatprep.mubr.f32.mxu1 %v3505_v13  ;;  %v1839_v32 = vsel %vm1804_vm3, %v1802_v35, %v971_v54  ;;  %v2861_v35 = vld [vmem:[#allocation2 + $0x47] sm:$0xff] }
 0x2c7   : > { %v1117_v41 = vpop.permute.xlu0 %1116  ;;  %3857 = vmatmul.mubr.f32.gmra.mxu1 %v3473_v26  ;;  %v1876_v20 = vsel %vm1841_vm4, %v1839_v32, %v1115_v17  ;;  %v2672_v17 = vld [vmem:[#allocation2 + $0x4f] sm:$0xff] }
 0x2c8   : > { %2649 = vst.msk [vmem:[#allocation2 + $0x128] sm:$0xff] %vm2630_vm10, %v2414_v52  ;;  %v1913_v45 = vsel %vm1878_vm5, %v1876_v20, %v1259_v48  ;;  %v1877_v46 = vsel %vm1841_vm4, %v1840_v21, %v1117_v41  ;;  %v2797_v21 = vld [vmem:[#allocation2 + $0x30] sm:$0xff] }
 0x2ca   : > { %v1403_v22 = vpop.permute.xlu1 %1402 }
 0x2cb   : > { %v1261_v33 = vpop.permute.xlu0 %1260  ;;  %v1950_v1 = vsel %vm1915_vm6, %v1913_v45, %v1403_v22 }
 0x2cc   : > { %v1914_v54 = vsel %vm1878_vm5, %v1877_v46, %v1261_v33 }
 0x2cd   : > { %v7582_v27 = vld [vmem:[#allocation2 + $0x130] sm:$0xff] }
 0x2ce   : > { %v1547_v42 = vpop.permute.xlu1 %1546  ;;  %v5335_v60 = vpack.i.bf16 %v7592_v12, %v7582_v27 }
 0x2cf   : > { %v1405_v16 = vpop.permute.xlu0 %1404  ;;  %v7567_v0 = vld [vmem:[#allocation2 + $0x128] sm:$0xff]  ;;  %v1987_v9 = vsel %vm1952_vm7, %v1950_v1, %v1547_v42 }
 0x2d0   : > { %v7571_v14 = vld [vmem:[#allocation2 + $0x127] sm:$0xff]  ;;  %v5325_v6 = vpack.i.bf16 %v7569_v29, %v7567_v0  ;;  %v7584_v50 = vld [vmem:[#allocation2 + $0x12f] sm:$0xff]  ;;  %v1951_v47 = vsel %vm1915_vm6, %v1914_v54, %v1405_v16 }
 0x2d1   : > { %v5300_v56 = vpack.i.bf16 %v7473_v4, %v7571_v14  ;;  %v5310_v34 = vpack.i.bf16 %v7480_v10, %v7584_v50  ;;  %v2674_v1 = vld [vmem:[#allocation2 + $0x6f] sm:$0xff] }
 0x2d2   : > { %5326 = vrot.lane.b32.xlu1 %v5325_v6, %s5579_s12  ;;  %v1691_v5 = vpop.permute.xlu1 %1690 }
 0x2d3   : > { %5301 = vrot.lane.b32.xlu0 %v5300_v56, %s5579_s12  ;;  %v2024_v4 = vsel %vm1989_vm8, %v1987_v9, %v1691_v5  ;;  %v1549_v40 = vpop.permute.xlu0 %1548 }
 0x2d4   : > { %5020 = vmatprep.mubr.msk.f32.mxu0 %vm2038_vm9, %v2024_v4  ;;  %v1988_v30 = vsel %vm1952_vm7, %v1951_v47, %v1549_v40 }
 0x2d6   : > { %5336 = vrot.lane.b32.xlu1 %v5335_v60, %s5579_s12  ;;  %v1693_v49 = vpop.permute.xlu1 %1692 }
 0x2d7   : > { %5311 = vrot.lane.b32.xlu0 %v5310_v34, %s5579_s12  ;;  %v2025_v24 = vsel %vm1989_vm8, %v1988_v30, %v1693_v49  ;;  %v5197_v7 = vpop.permute.xlu0 %5196  ;;  %v2675_v49 = vld [vmem:[#allocation2 + $0x87] sm:$0xff] }
 0x2d8   : > { %v5199_v55 = vunpack.i.h.bf16 %v5197_v7  ;;  %v5198_v25 = vunpack.i.l.bf16 %v5197_v7  ;;  %5021 = vmatmul.mubr.msk.f32.gmra.mxu0 %vm2038_vm9, %v2025_v24  ;;  %v2798_v24 = vld [vmem:[#allocation2 + $0x48] sm:$0xff] }
 0x2d9   : > { %v5001_v31 = vpop.f32.mrf.mxu0 }
 0x2da   : > { %v2323_v10 = vadd.f32 %v7463_v23, %v5001_v31  ;;  %v5207_v3 = vpop.permute.xlu1 %5206  ;;  %v3506_v8 = vsel %vm2630_vm10, %v7382_v18, %v5198_v25  ;;  %v3474_v13 = vsel %vm2630_vm10, %v2672_v17, %v5199_v55 }
 0x2db   : > { %v2317_v26 = vpop.f32.mrf.mxu0  ;;  %v5209_v52 = vunpack.i.h.bf16 %v5207_v3  ;;  %v5208_v48 = vunpack.i.l.bf16 %v5207_v3  ;;  %v5202_v41 = vpop.permute.xlu0 %5201  ;;  %3861 = vmatprep.mubr.f32.mxu1 %v3506_v8 }
 0x2dc   : > { %v2417_v37 = vmax.f32 %v2323_v10, 0.0  ;;  %v2318_v22 = vadd.f32 %v7463_v23, %v2317_v26  ;;  %v5204_v33 = vunpack.i.h.bf16 %v5202_v41  ;;  %v5203_v15 = vunpack.i.l.bf16 %v5202_v41  ;;  %3862 = vmatmul.mubr.f32.gmra.mxu1 %v3474_v13 }
 0x2dd   : > { %v3475_v32 = vsel %vm2630_vm10, %v2673_v43, %v5208_v48  ;;  %v3533_v18 = vsel %vm2630_vm10, %v2796_v59, %v5209_v52 }
 0x2de   : > { %2652 = vst.msk [vmem:[#allocation2 + $0x150] sm:$0xff] %vm2630_vm10, %v2417_v37  ;;  %v2416_v42 = vmax.f32 %v2318_v22, 0.0  ;;  %v5217_v20 = vpop.permute.xlu1 %5216  ;;  %v3507_v16 = vsel %vm2630_vm10, %v7401_v11, %v5203_v15  ;;  %v3565_v63 = vsel %vm2630_vm10, %v2861_v35, %v5204_v33  ;;  %v7644_v22 = vld [vmem:[#allocation2 + $0x111] sm:$0xff] }
 0x2df   : > { %v5219_v51 = vunpack.i.h.bf16 %v5217_v20  ;;  %v5218_v45 = vunpack.i.l.bf16 %v5217_v20  ;;  %v5212_v6 = vpop.permute.xlu0 %5211  ;;  %3866 = vmatprep.mubr.f32.mxu1 %v3507_v16  ;;  %4061 = vmatprep.mubr.f32.mxu0 %v3565_v63 }
 0x2e0   : > { %2651 = vst.msk [vmem:[#allocation2 + $0x148] sm:$0xff] %vm2630_vm10, %v2416_v42  ;;  %v5214_v56 = vunpack.i.h.bf16 %v5212_v6  ;;  %v5213_v58 = vunpack.i.l.bf16 %v5212_v6  ;;  %3867 = vmatmul.mubr.f32.gmra.mxu1 %v3475_v32  ;;  %4062 = vmatmul.mubr.f32.vlgmr.msra.gmra.mxu0 %v3533_v18 }
 0x2e1   : > { %v3476_v9 = vsel %vm2630_vm10, %v2674_v1, %v5218_v45  ;;  %v3534_v5 = vsel %vm2630_vm10, %v2797_v21, %v5219_v51 }
 0x2e2   : > { %v5227_v11 = vpop.permute.xlu1 %5226  ;;  %v3508_v46 = vsel %vm2630_vm10, %v7415_v38, %v5213_v58  ;;  %v3566_v4 = vsel %vm2630_vm10, %v2672_v17, %v5214_v56  ;;  %v7630_v17 = vld [vmem:[#allocation2 + $0x109] sm:$0xff] }
 0x2e3   : > { %v5229_v40 = vunpack.i.h.bf16 %v5227_v11  ;;  %v5228_v54 = vunpack.i.l.bf16 %v5227_v11  ;;  %3871 = vmatprep.mubr.f32.mxu1 %v3508_v46  ;;  %4066 = vmatprep.mubr.f32.mxu0 %v3566_v4 }
 0x2e4   : > { %v5222_v60 = vpop.permute.xlu0 %5221  ;;  %3872 = vmatmul.mubr.f32.gmra.mxu1 %v3476_v9  ;;  %4067 = vmatmul.mubr.f32.gmra.mxu0 %v3534_v5  ;;  %v7661_v9 = vld [vmem:[#allocation2 + $0xa7] sm:$0xff] }
 0x2e5   : > { %v5224_v34 = vunpack.i.h.bf16 %v5222_v60  ;;  %v5223_v47 = vunpack.i.l.bf16 %v5222_v60  ;;  %v3477_v38 = vsel %vm2630_vm10, %v2675_v49, %v5228_v54  ;;  %v3535_v25 = vsel %vm2630_vm10, %v2798_v24, %v5229_v40  ;;  %v7638_v52 = vld [vmem:[#allocation2 + $0x150] sm:$0xff]  ;;  %v2800_v5 = vld [vmem:[#allocation2 + $0x68] sm:$0xff] }
 0x2e6   : > { %v5237_v30 = vpop.permute.xlu1 %5236  ;;  %v5355_v59 = vpack.i.bf16 %v7644_v22, %v7638_v52  ;;  %v7670_v60 = vld [vmem:[#allocation2 + $0x129] sm:$0xff] }
 0x2e7   : > { %v3509_v7 = vsel %vm2630_vm10, %v7426_v53, %v5223_v47  ;;  %v3567_v55 = vsel %vm2630_vm10, %v2673_v43, %v5224_v34  ;;  %v7628_v31 = vld [vmem:[#allocation2 + $0x148] sm:$0xff]  ;;  %v5239_v3 = vunpack.i.h.bf16 %v5237_v30  ;;  %v5238_v8 = vunpack.i.l.bf16 %v5237_v30  ;;  %v2799_v43 = vld [vmem:[#allocation2 + $0x50] sm:$0xff] }
 0x2e8   : > { %v7632_v10 = vld [vmem:[#allocation2 + $0x147] sm:$0xff]  ;;  %v5232_v13 = vpop.permute.xlu0 %5231  ;;  %3876 = vmatprep.mubr.f32.mxu1 %v3509_v7  ;;  %4071 = vmatprep.mubr.f32.mxu0 %v3567_v55  ;;  %v5345_v53 = vpack.i.bf16 %v7630_v17, %v7628_v31  ;;  %v7640_v37 = vld [vmem:[#allocation2 + $0x14f] sm:$0xff]  ;;  %v3668_v7 = vld [vmem:[%s8439_s3 + $0x238] sm:$0xff] }
 0x2e9   : > { %v5320_v26 = vpack.i.bf16 %v7520_v19, %v7632_v10  ;;  %v5234_v48 = vunpack.i.h.bf16 %v5232_v13  ;;  %v5233_v41 = vunpack.i.l.bf16 %v5232_v13  ;;  %3877 = vmatmul.mubr.f32.gmra.mxu1 %v3477_v38  ;;  %4072 = vmatmul.mubr.f32.gmra.mxu0 %v3535_v25  ;;  %v2676_v19 = vld [vmem:[#allocation2 + $0x8f] sm:$0xff]  ;;  %v3536_v32 = vsel %vm2630_vm10, %v2799_v43, %v5239_v3 }
 0x2ea   : > { %5346 = vrot.lane.b32.xlu1 %v5345_v53, %s5579_s12  ;;  %v3478_v35 = vsel %vm2630_vm10, %v2676_v19, %v5238_v8  ;;  %v5330_v18 = vpack.i.bf16 %v7530_v61, %v7640_v37  ;;  %v5247_v51 = vpop.permute.xlu1 %5246  ;;  %v7688_v8 = vld [vmem:[#allocation2 + $0xaf] sm:$0xff]  ;;  %5087 = vmatprep.subr.mxu1 %v3668_v7 }
 0x2eb   : > { %5321 = vrot.lane.b32.xlu0 %v5320_v26, %s5579_s12  ;;  %v3510_v33 = vsel %vm2630_vm10, %v7437_v36, %v5233_v41  ;;  %v3568_v15 = vsel %vm2630_vm10, %v2674_v1, %v5234_v48  ;;  %v5248_v61 = vunpack.i.l.bf16 %v5247_v51  ;;  %v5249_v6 = vunpack.i.h.bf16 %v5247_v51  ;;  %v2801_v26 = vld [vmem:[#allocation2 + $0x70] sm:$0xff]  ;;  %5095 = vmatpush3.msra.mxu1 %v3668_v7 }
 0x2ec   : > { %3881 = vmatprep.mubr.f32.mxu1 %v3510_v33  ;;  %4076 = vmatprep.mubr.f32.mxu0 %v3568_v15  ;;  %v7695_v48 = vld [vmem:[#allocation2 + $0x131] sm:$0xff] }
 0x2ed   : > { %3882 = vmatmul.mubr.f32.gmra.mxu1 %v3478_v35  ;;  %4077 = vmatmul.mubr.f32.gmra.mxu0 %v3536_v32  ;;  %v3479_v40 = vsel %vm2630_vm10, %v7661_v9, %v5248_v61  ;;  %v3537_v24 = vsel %vm2630_vm10, %v2800_v5, %v5249_v6  ;;  %v7713_v6 = vld [vmem:[#allocation2 + $0x149] sm:$0xff] }
 0x2ee   : > { %5356 = vrot.lane.b32.xlu1 %v5355_v59, %s5579_s12  ;;  %v5257_v56 = vpop.permute.xlu1 %5256  ;;  %5023 = vmatprep.subr.mxu0 %v3668_v7  ;;  %v2802_v5 = vld [vmem:[#allocation2 + $0x88] sm:$0xff] }
 0x2ef   : > { %5331 = vrot.lane.b32.xlu0 %v5330_v18, %s5579_s12  ;;  %v5258_v11 = vunpack.i.l.bf16 %v5257_v56  ;;  %v5259_v47 = vunpack.i.h.bf16 %v5257_v56  ;;  %5024 = vmatpush3.msra.mxu0 %v3668_v7  ;;  %v3667_v18 = vld [vmem:[%s8439_s3 + $0x230] sm:$0xff] }
 0x2f0   : > { %5088 = vmatprep.subr.mxu1 %v3667_v18  ;;  %5025 = vmatprep.subr.mxu0 %v3667_v18 }
 0x2f1   : > { %v5004_v36 = vpop.f32.mrf.mxu0  ;;  %v3480_v53 = vsel %vm2630_vm10, %v7688_v8, %v5258_v11  ;;  %v3538_v41 = vsel %vm2630_vm10, %v2801_v26, %v5259_v47  ;;  %5096 = vmatpush3.msra.mxu1 %v3667_v18  ;;  %5026 = vmatpush3.msra.mxu0 %v3667_v18 }
 0x2f2   : > { %v2333_v42 = vadd.f32 %v7463_v23, %v5004_v36 }
 0x2f3   : > { %v2327_v20 = vpop.f32.mrf.mxu0 }
 0x2f4   : > { %v2419_v16 = vmax.f32 %v2333_v42, 0.0  ;;  %v2328_v63 = vadd.f32 %v7463_v23, %v2327_v20 }
 0x2f6   : > { %2654 = vst.msk [vmem:[#allocation2 + $0x170] sm:$0xff] %vm2630_vm10, %v2419_v16  ;;  %v2418_v45 = vmax.f32 %v2328_v63, 0.0 }
 0x2f8   : > { %2653 = vst.msk [vmem:[#allocation2 + $0x168] sm:$0xff] %vm2630_vm10, %v2418_v45 }
 0x2fc   : > { %v5267_v32 = vpop.permute.xlu1 %5266 }
 0x2fd   : > { %v5242_v58 = vpop.permute.xlu0 %5241  ;;  %v7682_v25 = vld [vmem:[#allocation2 + $0x170] sm:$0xff]  ;;  %v5269_v42 = vunpack.i.h.bf16 %v5267_v32  ;;  %v5268_v20 = vunpack.i.l.bf16 %v5267_v32 }
 0x2fe   : > { %v5244_v1 = vunpack.i.h.bf16 %v5242_v58  ;;  %v5243_v21 = vunpack.i.l.bf16 %v5242_v58  ;;  %v5375_v33 = vpack.i.bf16 %v7695_v48, %v7682_v25 }
 0x2ff   : > { %v7668_v54 = vld [vmem:[#allocation2 + $0x168] sm:$0xff] }
 0x300   : > { %v3511_v46 = vsel %vm2630_vm10, %v7475_v44, %v5243_v21  ;;  %v3569_v4 = vsel %vm2630_vm10, %v2675_v49, %v5244_v1  ;;  %v7672_v34 = vld [vmem:[#allocation2 + $0x167] sm:$0xff]  ;;  %v5365_v44 = vpack.i.bf16 %v7670_v60, %v7668_v54  ;;  %v7684_v3 = vld [vmem:[#allocation2 + $0x16f] sm:$0xff]  ;;  %v5277_v36 = vpop.permute.xlu1 %5276 }
 0x301   : > { %v5252_v30 = vpop.permute.xlu0 %5251  ;;  %3886 = vmatprep.mubr.f32.mxu1 %v3511_v46  ;;  %4081 = vmatprep.mubr.f32.mxu0 %v3569_v4  ;;  %v5340_v49 = vpack.i.bf16 %v7567_v0, %v7672_v34  ;;  %v5350_v15 = vpack.i.bf16 %v7582_v27, %v7684_v3  ;;  %v5278_v45 = vunpack.i.l.bf16 %v5277_v36  ;;  %v2679_v21 = vld [vmem:[#allocation2 + $0xc7] sm:$0xff]  ;;  %v5279_v4 = vunpack.i.h.bf16 %v5277_v36 }
 0x302   : > { %v5254_v55 = vunpack.i.h.bf16 %v5252_v30  ;;  %v5253_v38 = vunpack.i.l.bf16 %v5252_v30  ;;  %3887 = vmatmul.mubr.f32.gmra.mxu1 %v3479_v40  ;;  %4082 = vmatmul.mubr.f32.gmra.mxu0 %v3537_v24  ;;  %v3481_v47 = vsel %vm2630_vm10, %v2679_v21, %v5268_v20  ;;  %v3539_v30 = vsel %vm2630_vm10, %v2802_v5, %v5269_v42 }
 0x303   : > { %5366 = vrot.lane.b32.xlu1 %v5365_v44, %s5579_s12  ;;  %5341 = vrot.lane.b32.xlu0 %v5340_v49, %s5579_s12 }
 0x304   : > { %v3512_v0 = vsel %vm2630_vm10, %v7484_v62, %v5253_v38  ;;  %v3570_v13 = vsel %vm2630_vm10, %v2676_v19, %v5254_v55  ;;  %v2803_v38 = vld [vmem:[#allocation2 + $0x90] sm:$0xff] }
 0x305   : > { %3891 = vmatprep.mubr.f32.mxu1 %v3512_v0  ;;  %4086 = vmatprep.mubr.f32.mxu0 %v3570_v13  ;;  %v7741_v0 = vld [vmem:[#allocation2 + $0x151] sm:$0xff]  ;;  %v3540_v13 = vsel %vm2630_vm10, %v2803_v38, %v5279_v4 }
 0x306   : > { %3892 = vmatmul.mubr.f32.gmra.mxu1 %v3480_v53  ;;  %4087 = vmatmul.mubr.f32.gmra.mxu0 %v3538_v41  ;;  %v3666_v41 = vld [vmem:[%s8439_s3 + $0x228] sm:$0xff] }
 0x307   : > { %5376 = vrot.lane.b32.xlu1 %v5375_v33, %s5579_s12  ;;  %5351 = vrot.lane.b32.xlu0 %v5350_v15, %s5579_s12 }
 0x308   : > { %v5007_v62 = vpop.f32.mrf.mxu0  ;;  %5089 = vmatprep.subr.mxu1 %v3666_v41  ;;  %5027 = vmatprep.subr.mxu0 %v3666_v41 }
 0x309   : > { %v2343_v19 = vadd.f32 %v7463_v23, %v5007_v62  ;;  %5097 = vmatpush3.msra.mxu1 %v3666_v41  ;;  %5028 = vmatpush3.msra.mxu0 %v3666_v41 }
 0x30a   : > { %v2337_v43 = vpop.f32.mrf.mxu0 }
 0x30b   : > { %v2421_v59 = vmax.f32 %v2343_v19, 0.0  ;;  %v2338_v35 = vadd.f32 %v7463_v23, %v2337_v43 }
 0x30d   : > { %2656 = vst.msk [vmem:[#allocation2 + $0x190] sm:$0xff] %vm2630_vm10, %v2421_v59  ;;  %v2420_v27 = vmax.f32 %v2338_v35, 0.0 }
 0x30f   : > { %2655 = vst.msk [vmem:[#allocation2 + $0x188] sm:$0xff] %vm2630_vm10, %v2420_v27 }
 0x314   : > { %v5287_v19 = vpop.permute.xlu1 %5286 }
 0x315   : > { %v5262_v16 = vpop.permute.xlu0 %5261  ;;  %v5289_v35 = vunpack.i.h.bf16 %v5287_v19  ;;  %v5288_v32 = vunpack.i.l.bf16 %v5287_v19 }
 0x316   : > { %v5264_v63 = vunpack.i.h.bf16 %v5262_v16  ;;  %v5263_v51 = vunpack.i.l.bf16 %v5262_v16  ;;  %v7711_v61 = vld [vmem:[#allocation2 + $0x188] sm:$0xff] }
 0x317   : > { %v7715_v56 = vld [vmem:[#allocation2 + $0x187] sm:$0xff]  ;;  %v5385_v11 = vpack.i.bf16 %v7713_v6, %v7711_v61  ;;  %v7729_v44 = vld [vmem:[#allocation2 + $0x18f] sm:$0xff] }
 0x318   : > { %v3513_v58 = vsel %vm2630_vm10, %v7522_v28, %v5263_v51  ;;  %v3571_v1 = vsel %vm2630_vm10, %v7661_v9, %v5264_v63  ;;  %v5360_v46 = vpack.i.bf16 %v7628_v31, %v7715_v56  ;;  %v7727_v9 = vld [vmem:[#allocation2 + $0x190] sm:$0xff]  ;;  %v5370_v26 = vpack.i.bf16 %v7638_v52, %v7729_v44  ;;  %v5297_v59 = vpop.permute.xlu1 %5296 }
 0x319   : > { %v5272_v40 = vpop.permute.xlu0 %5271  ;;  %3896 = vmatprep.mubr.f32.mxu1 %v3513_v58  ;;  %4091 = vmatprep.mubr.f32.mxu0 %v3571_v1  ;;  %v7733_v31 = vld [vmem:[#allocation2 + $0xcf] sm:$0xff]  ;;  %v5395_v53 = vpack.i.bf16 %v7741_v0, %v7727_v9  ;;  %v5298_v42 = vunpack.i.l.bf16 %v5297_v59  ;;  %v2681_v58 = vld [vmem:[#allocation2 + $0xe7] sm:$0xff] }
 0x31a   : > { %v5274_v28 = vunpack.i.h.bf16 %v5272_v40  ;;  %v5273_v24 = vunpack.i.l.bf16 %v5272_v40  ;;  %3897 = vmatmul.mubr.f32.gmra.mxu1 %v3481_v47  ;;  %4092 = vmatmul.mubr.f32.gmra.mxu0 %v3539_v30  ;;  %v3482_v55 = vsel %vm2630_vm10, %v7733_v31, %v5278_v45  ;;  %v7759_v16 = vld [vmem:[#allocation2 + $0x169] sm:$0xff]  ;;  %v3483_v40 = vsel %vm2630_vm10, %v2681_v58, %v5288_v32 }
 0x31b   : > { %5386 = vrot.lane.b32.xlu1 %v5385_v11, %s5579_s12  ;;  %5361 = vrot.lane.b32.xlu0 %v5360_v46, %s5579_s12  ;;  %v2804_v1 = vld [vmem:[#allocation2 + $0xa8] sm:$0xff]  ;;  %v5299_v46 = vunpack.i.h.bf16 %v5297_v59 }
 0x31c   : > { %v3514_v49 = vsel %vm2630_vm10, %v7539_v2, %v5273_v24  ;;  %v3572_v7 = vsel %vm2630_vm10, %v7688_v8, %v5274_v28  ;;  %v3541_v47 = vsel %vm2630_vm10, %v2804_v1, %v5289_v35 }
 0x31d   : > { %3901 = vmatprep.mubr.f32.mxu1 %v3514_v49  ;;  %4096 = vmatprep.mubr.f32.mxu0 %v3572_v7  ;;  %v7781_v49 = vld [vmem:[#allocation2 + $0xef] sm:$0xff] }
 0x31e   : > { %3902 = vmatmul.mubr.f32.gmra.mxu1 %v3482_v55  ;;  %4097 = vmatmul.mubr.f32.gmra.mxu0 %v3540_v13  ;;  %v3484_v38 = vsel %vm2630_vm10, %v7781_v49, %v5298_v42  ;;  %v2805_v13 = vld [vmem:[#allocation2 + $0xb0] sm:$0xff] }
 0x31f   : > { %5396 = vrot.lane.b32.xlu1 %v5395_v53, %s5579_s12  ;;  %5371 = vrot.lane.b32.xlu0 %v5370_v26, %s5579_s12  ;;  %v7789_v53 = vld [vmem:[#allocation2 + $0x171] sm:$0xff]  ;;  %v3542_v26 = vsel %vm2630_vm10, %v2805_v13, %v5299_v46 }
 0x320   : > { %v5010_v2 = vpop.f32.mrf.mxu0 }
 0x321   : > { %v2353_v8 = vadd.f32 %v7463_v23, %v5010_v2 }
 0x322   : > { %v2347_v33 = vpop.f32.mrf.mxu0 }
 0x323   : > { %v2423_v15 = vmax.f32 %v2353_v8, 0.0  ;;  %v2348_v62 = vadd.f32 %v7463_v23, %v2347_v33 }
 0x325   : > { %2658 = vst.msk [vmem:[#allocation2 + $0x1b0] sm:$0xff] %vm2630_vm10, %v2423_v15  ;;  %v2422_v43 = vmax.f32 %v2348_v62, 0.0 }
 0x327   : > { %2657 = vst.msk [vmem:[#allocation2 + $0x1a8] sm:$0xff] %vm2630_vm10, %v2422_v43  ;;  %v3664_v43 = vld [vmem:[%s8439_s3 + $0x218] sm:$0xff] }
 0x32c   : > { %v7775_v28 = vld [vmem:[#allocation2 + $0x1b0] sm:$0xff]  ;;  %v5307_v62 = vpop.permute.xlu1 %5306 }
 0x32d   : > { %v5282_v27 = vpop.permute.xlu0 %5281  ;;  %v5415_v2 = vpack.i.bf16 %v7789_v53, %v7775_v28  ;;  %v5308_v59 = vunpack.i.l.bf16 %v5307_v62  ;;  %v5309_v35 = vunpack.i.h.bf16 %v5307_v62 }
 0x32e   : > { %v5284_v18 = vunpack.i.h.bf16 %v5282_v27  ;;  %v5283_v36 = vunpack.i.l.bf16 %v5282_v27  ;;  %v7757_v20 = vld [vmem:[#allocation2 + $0x1a8] sm:$0xff] }
 0x32f   : > { %v7761_v63 = vld [vmem:[#allocation2 + $0x1a7] sm:$0xff]  ;;  %v5405_v5 = vpack.i.bf16 %v7759_v16, %v7757_v20  ;;  %v7777_v24 = vld [vmem:[#allocation2 + $0x1af] sm:$0xff]  ;;  %v3485_v1 = vsel %vm2630_vm10, %v7524_v57, %v5308_v59 }
 0x330   : > { %v3515_v51 = vsel %vm2630_vm10, %v7569_v29, %v5283_v36  ;;  %v3573_v45 = vsel %vm2630_vm10, %v2679_v21, %v5284_v18  ;;  %v5380_v11 = vpack.i.bf16 %v7668_v54, %v7761_v63  ;;  %v3665_v29 = vld [vmem:[%s8439_s3 + $0x220] sm:$0xff]  ;;  %v5317_v32 = vpop.permute.xlu1 %5316  ;;  %v2806_v36 = vld [vmem:[#allocation2 + $0xc8] sm:$0xff]  ;;  %v3663_v57 = vld [vmem:[%s8439_s3 + $0x210] sm:$0xff] }
 0x331   : > { %v5292_v4 = vpop.permute.xlu0 %5291  ;;  %3906 = vmatprep.mubr.f32.mxu1 %v3515_v51  ;;  %4101 = vmatprep.mubr.f32.mxu0 %v3573_v45  ;;  %v5318_v42 = vunpack.i.l.bf16 %v5317_v32 }
 0x332   : > { %v5294_v21 = vunpack.i.h.bf16 %v5292_v4  ;;  %v5293_v30 = vunpack.i.l.bf16 %v5292_v4  ;;  %3907 = vmatmul.mubr.f32.gmra.mxu1 %v3483_v40  ;;  %4102 = vmatmul.mubr.f32.gmra.mxu0 %v3541_v47  ;;  %v5319_v4 = vunpack.i.h.bf16 %v5317_v32  ;;  %v3543_v47 = vsel %vm2630_vm10, %v2806_v36, %v5309_v35  ;;  %v2873_v36 = vld [vmem:[#allocation2 + $0x107] sm:$0xff] }
 0x333   : > { %5406 = vrot.lane.b32.xlu1 %v5405_v5, %s5579_s12  ;;  %5381 = vrot.lane.b32.xlu0 %v5380_v11, %s5579_s12  ;;  %v7812_v11 = vld [vmem:[#allocation2 + $0x189] sm:$0xff]  ;;  %v3486_v13 = vsel %vm2630_vm10, %v7532_v39, %v5318_v42 }
 0x334   : > { %v3516_v7 = vsel %vm2630_vm10, %v7592_v12, %v5293_v30  ;;  %v3574_v55 = vsel %vm2630_vm10, %v7733_v31, %v5294_v21  ;;  %5090 = vmatprep.subr.mxu1 %v3665_v29  ;;  %v5390_v12 = vpack.i.bf16 %v7682_v25, %v7777_v24  ;;  %5029 = vmatprep.subr.mxu0 %v3665_v29 }
 0x335   : > { %3911 = vmatprep.mubr.f32.mxu1 %v3516_v7  ;;  %4106 = vmatprep.mubr.f32.mxu0 %v3574_v55 }
 0x336   : > { %3912 = vmatmul.mubr.f32.gmra.mxu1 %v3484_v38  ;;  %4107 = vmatmul.mubr.f32.gmra.mxu0 %v3542_v26  ;;  %v2807_v26 = vld [vmem:[#allocation2 + $0xd0] sm:$0xff] }
 0x337   : > { %5416 = vrot.lane.b32.xlu1 %v5415_v2, %s5579_s12  ;;  %5391 = vrot.lane.b32.xlu0 %v5390_v12, %s5579_s12  ;;  %v7836_v2 = vld [vmem:[#allocation2 + $0x191] sm:$0xff]  ;;  %v3544_v12 = vsel %vm2630_vm10, %v2807_v26, %v5319_v4  ;;  %v7871_v26 = vld [vmem:[#allocation2 + $0x1a9] sm:$0xff] }
 0x338   : > { %5098 = vmatpush3.msra.mxu1 %v3665_v29  ;;  %5030 = vmatpush3.msra.mxu0 %v3665_v29 }
 0x339   : > { %v5013_v31 = vpop.f32.mrf.mxu0  ;;  %5091 = vmatprep.subr.mxu1 %v3664_v43  ;;  %5031 = vmatprep.subr.mxu0 %v3664_v43 }
 0x33a   : > { %v2363_v8 = vadd.f32 %v7463_v23, %v5013_v31  ;;  %5099 = vmatpush3.msra.mxu1 %v3664_v43  ;;  %5032 = vmatpush3.msra.mxu0 %v3664_v43 }
 0x33b   : > { %v2357_v41 = vpop.f32.mrf.mxu0  ;;  %5092 = vmatprep.subr.mxu1 %v3663_v57  ;;  %5033 = vmatprep.subr.mxu0 %v3663_v57 }
 0x33c   : > { %v2425_v33 = vmax.f32 %v2363_v8, 0.0  ;;  %v2358_v15 = vadd.f32 %v7463_v23, %v2357_v41  ;;  %5100 = vmatpush3.msra.mxu1 %v3663_v57  ;;  %5034 = vmatpush3.msra.mxu0 %v3663_v57  ;;  %v7848_v41 = vld [vmem:[%s8438_s2] ss:$0 sm:$0xff] }
 0x33e   : > { %2660 = vst.msk [vmem:[#allocation2 + $0x1d0] sm:$0xff] %vm2630_vm10, %v2425_v33  ;;  %v2424_v19 = vmax.f32 %v2358_v15, 0.0 }
 0x340   : > { %2659 = vst.msk [vmem:[#allocation2 + $0x1c8] sm:$0xff] %vm2630_vm10, %v2424_v19 }
 0x344   : > { %v5327_v8 = vpop.permute.xlu1 %5326 }
 0x345   : > { %v5302_v27 = vpop.permute.xlu0 %5301  ;;  %v7824_v30 = vld [vmem:[#allocation2 + $0x1d0] sm:$0xff]  ;;  %v5329_v59 = vunpack.i.h.bf16 %v5327_v8  ;;  %v5328_v35 = vunpack.i.l.bf16 %v5327_v8 }
 0x346   : > { %v5304_v18 = vunpack.i.h.bf16 %v5302_v27  ;;  %v5303_v23 = vunpack.i.l.bf16 %v5302_v27  ;;  %v5435_v31 = vpack.i.bf16 %v7836_v2, %v7824_v30  ;;  %v7886_v8 = vld [vmem:[#allocation2 + $0x1b1] sm:$0xff] }
 0x347   : > { %v7810_v5 = vld [vmem:[#allocation2 + $0x1c8] sm:$0xff] }
 0x348   : > { %v3517_v51 = vsel %vm2630_vm10, %v7630_v17, %v5303_v23  ;;  %v3575_v45 = vsel %vm2630_vm10, %v2681_v58, %v5304_v18  ;;  %v7814_v46 = vld [vmem:[#allocation2 + $0x1c7] sm:$0xff]  ;;  %v5425_v17 = vpack.i.bf16 %v7812_v11, %v7810_v5  ;;  %v7826_v7 = vld [vmem:[#allocation2 + $0x1cf] sm:$0xff]  ;;  %v5337_v32 = vpop.permute.xlu1 %5336 }
 0x349   : > { %v5312_v40 = vpop.permute.xlu0 %5311  ;;  %3916 = vmatprep.mubr.f32.mxu1 %v3517_v51  ;;  %4111 = vmatprep.mubr.f32.mxu0 %v3575_v45  ;;  %v5400_v58 = vpack.i.bf16 %v7711_v61, %v7814_v46  ;;  %v5338_v42 = vunpack.i.l.bf16 %v5337_v32  ;;  %v5339_v4 = vunpack.i.h.bf16 %v5337_v32  ;;  %v3661_v32 = vld [vmem:[%s8439_s3 + $0x200] sm:$0xff] }
 0x34a   : > { %v5314_v29 = vunpack.i.h.bf16 %v5312_v40  ;;  %v5313_v21 = vunpack.i.l.bf16 %v5312_v40  ;;  %3917 = vmatmul.mubr.f32.gmra.mxu1 %v3485_v1  ;;  %4112 = vmatmul.mubr.f32.gmra.mxu0 %v3543_v47  ;;  %v2808_v1 = vld [vmem:[#allocation2 + $0xe8] sm:$0xff]  ;;  %v3487_v47 = vsel %vm2630_vm10, %v7571_v14, %v5328_v35 }
 0x34b   : > { %5426 = vrot.lane.b32.xlu1 %v5425_v17, %s5579_s12  ;;  %5401 = vrot.lane.b32.xlu0 %v5400_v58, %s5579_s12  ;;  %v3545_v17 = vsel %vm2630_vm10, %v2808_v1, %v5329_v59 }
 0x34c   : > { %v3518_v55 = vsel %vm2630_vm10, %v7644_v22, %v5313_v21  ;;  %v3576_v38 = vsel %vm2630_vm10, %v7781_v49, %v5314_v29  ;;  %v5410_v22 = vpack.i.bf16 %v7727_v9, %v7826_v7  ;;  %v2809_v29 = vld [vmem:[#allocation2 + $0xf0] sm:$0xff] }
 0x34d   : > { %3921 = vmatprep.mubr.f32.mxu1 %v3518_v55  ;;  %4116 = vmatprep.mubr.f32.mxu0 %v3576_v38  ;;  %v3488_v38 = vsel %vm2630_vm10, %v7584_v50, %v5338_v42 }
 0x34e   : > { %3922 = vmatmul.mubr.f32.gmra.mxu1 %v3486_v13  ;;  %4117 = vmatmul.mubr.f32.gmra.mxu0 %v3544_v12 }
 0x34f   : > { %5436 = vrot.lane.b32.xlu1 %v5435_v31, %s5579_s12  ;;  %5411 = vrot.lane.b32.xlu0 %v5410_v22, %s5579_s12  ;;  %v3546_v31 = vsel %vm2630_vm10, %v2809_v29, %v5339_v4 }
 0x355   : > { %v5016_v49 = vpop.f32.mrf.mxu0 }
 0x356   : > { %v2373_v33 = vadd.f32 %v7848_v41, %v5016_v49 }
 0x357   : > { %v2367_v15 = vpop.f32.mrf.mxu0 }
 0x358   : > { %v2427_v62 = vmax.f32 %v2373_v33, 0.0  ;;  %v2368_v19 = vadd.f32 %v7848_v41, %v2367_v15 }
 0x35a   : > { %2662 = vst.msk [vmem:[#allocation2 + $0x1f0] sm:$0xff] %vm2630_vm10, %v2427_v62  ;;  %v2426_v43 = vmax.f32 %v2368_v19, 0.0  ;;  %v7894_v62 = vld [vmem:[#allocation2 + $0x1d1] sm:$0xff] }
 0x35c   : > { %2661 = vst.msk [vmem:[#allocation2 + $0x1e8] sm:$0xff] %vm2630_vm10, %v2426_v43  ;;  %v5347_v43 = vpop.permute.xlu1 %5346 }
 0x35d   : > { %v5322_v27 = vpop.permute.xlu0 %5321 }
 0x35e   : > { %v5324_v18 = vunpack.i.h.bf16 %v5322_v27  ;;  %v5323_v23 = vunpack.i.l.bf16 %v5322_v27 }
 0x360   : > { %v3519_v51 = vsel %vm2630_vm10, %v7670_v60, %v5323_v23  ;;  %v3577_v45 = vsel %vm2630_vm10, %v2873_v36, %v5324_v18  ;;  %v3662_v60 = vld [vmem:[%s8439_s3 + $0x208] sm:$0xff]  ;;  %v5349_v18 = vunpack.i.h.bf16 %v5347_v43  ;;  %v5348_v23 = vunpack.i.l.bf16 %v5347_v43 }
 0x361   : > { %v5332_v40 = vpop.permute.xlu0 %5331  ;;  %3926 = vmatprep.mubr.f32.mxu1 %v3519_v51  ;;  %4121 = vmatprep.mubr.f32.mxu0 %v3577_v45  ;;  %v7880_v22 = vld [vmem:[#allocation2 + $0x1f0] sm:$0xff]  ;;  %v5357_v45 = vpop.permute.xlu1 %5356 }
 0x362   : > { %v5334_v58 = vunpack.i.h.bf16 %v5332_v40  ;;  %v5333_v57 = vunpack.i.l.bf16 %v5332_v40  ;;  %3927 = vmatmul.mubr.f32.gmra.mxu1 %v3487_v47  ;;  %4122 = vmatmul.mubr.f32.gmra.mxu0 %v3545_v17  ;;  %v5455_v33 = vpack.i.bf16 %v7886_v8, %v7880_v22  ;;  %v5465_v19 = vpack.i.bf16 %v7894_v62, %v7880_v22 }
 0x363   : > { %5093 = vmatprep.subr.mxu1 %v3662_v60  ;;  %5035 = vmatprep.subr.mxu0 %v3662_v60  ;;  %v7869_v13 = vld [vmem:[#allocation2 + $0x1e8] sm:$0xff] }
 0x364   : > { %v3520_v21 = vsel %vm2630_vm10, %v7695_v48, %v5333_v57  ;;  %v3578_v55 = vsel %vm2630_vm10, %v7532_v39, %v5334_v58  ;;  %v7873_v12 = vld [vmem:[#allocation2 + $0x1e7] sm:$0xff]  ;;  %5101 = vmatpush3.msra.mxu1 %v3662_v60  ;;  %v5445_v48 = vpack.i.bf16 %v7871_v26, %v7869_v13  ;;  %v7882_v49 = vld [vmem:[#allocation2 + $0x1ef] sm:$0xff]  ;;  %5036 = vmatpush3.msra.mxu0 %v3662_v60  ;;  %v5359_v60 = vunpack.i.h.bf16 %v5357_v45 }
 0x365   : > { %3931 = vmatprep.mubr.f32.mxu1 %v3520_v21  ;;  %4126 = vmatprep.mubr.f32.mxu0 %v3578_v55  ;;  %v5420_v39 = vpack.i.bf16 %v7757_v20, %v7873_v12  ;;  %v5430_v15 = vpack.i.bf16 %v7775_v28, %v7882_v49  ;;  %v2810_v57 = vld [vmem:[#allocation2 + $0x108] sm:$0xff]  ;;  %v3489_v21 = vsel %vm2630_vm10, %v7632_v10, %v5348_v23 }
 0x366   : > { %3932 = vmatmul.mubr.f32.gmra.mxu1 %v3488_v38  ;;  %4127 = vmatmul.mubr.f32.gmra.mxu0 %v3546_v31  ;;  %v3547_v55 = vsel %vm2630_vm10, %v2810_v57, %v5349_v18  ;;  %v2924_v18 = vld [vmem:[#allocation2 + $0x230] sm:$0xff] }
 0x367   : > { %5446 = vrot.lane.b32.xlu1 %v5445_v48, %s5579_s12  ;;  %5421 = vrot.lane.b32.xlu0 %v5420_v39, %s5579_s12 }
 0x368   : > { %5094 = vmatprep.subr.mxu1 %v3661_v32  ;;  %5037 = vmatprep.subr.mxu0 %v3661_v32 }
 0x369   : > { %5102 = vmatpush3.msra.mxu1 %v3661_v32  ;;  %5038 = vmatpush3.msra.mxu0 %v3661_v32 }
 0x36b   : > { %5456 = vrot.lane.b32.xlu1 %v5455_v33, %s5579_s12  ;;  %5431 = vrot.lane.b32.xlu0 %v5430_v15, %s5579_s12  ;;  %v2811_v33 = vld [vmem:[#allocation2 + $0x110] sm:$0xff] }
 0x36f   : > { %5466 = vrot.lane.b32.xlu1 %v5465_v19, %s5579_s12  ;;  %v3548_v19 = vsel %vm2630_vm10, %v2811_v33, %v5359_v60 }
 0x371   : > { %v5019_v59 = vpop.f32.mrf.mxu0 }
 0x372   : > { %v2383_v35 = vadd.f32 %v7848_v41, %v5019_v59  ;;  %v7924_v59 = vld [vmem:[#allocation2 + $0x1f1] sm:$0xff] }
 0x373   : > { %v2377_v27 = vpop.f32.mrf.mxu0 }
 0x374   : > { %v2429_v36 = vmax.f32 %v2383_v35, 0.0  ;;  %v2378_v42 = vadd.f32 %v7848_v41, %v2377_v27  ;;  %v5358_v41 = vunpack.i.l.bf16 %v5357_v45 }
 0x375   : > { %v5342_v51 = vpop.permute.xlu0 %5341 }
 0x376   : > { %v5344_v1 = vunpack.i.h.bf16 %v5342_v51  ;;  %v5343_v4 = vunpack.i.l.bf16 %v5342_v51  ;;  %2664 = vst.msk [vmem:[#allocation2 + $0x210] sm:$0xff] %vm2630_vm10, %v2429_v36  ;;  %v2428_v40 = vmax.f32 %v2378_v42, 0.0  ;;  %v3490_v15 = vsel %vm2630_vm10, %v7640_v37, %v5358_v41 }
 0x377   : > { %v7905_v47 = vpop.f32.mrf.mxu1 }
 0x378   : > { %v3521_v17 = vsel %vm2630_vm10, %v7713_v6, %v5343_v4  ;;  %v3579_v58 = vsel %vm2630_vm10, %v7571_v14, %v5344_v1  ;;  %2663 = vst.msk [vmem:[#allocation2 + $0x208] sm:$0xff] %vm2630_vm10, %v2428_v40  ;;  %v5367_v40 = vpop.permute.xlu1 %5366 }
 0x379   : > { %v5352_v29 = vpop.permute.xlu0 %5351  ;;  %3936 = vmatprep.mubr.f32.mxu1 %v3521_v17  ;;  %4131 = vmatprep.mubr.f32.mxu0 %v3579_v58  ;;  %v3840_v6 = vpop.f32.mrf.mxu1  ;;  %v7951_v58 = vld [vmem:[#allocation2 + $0x1c9] sm:$0xff] }
 0x37a   : > { %v5354_v38 = vunpack.i.h.bf16 %v5352_v29  ;;  %v5353_v31 = vunpack.i.l.bf16 %v5352_v29  ;;  %3937 = vmatmul.mubr.f32.gmra.mxu1 %v3489_v21  ;;  %4132 = vmatmul.mubr.f32.gmra.mxu0 %v3547_v55  ;;  %v5460_v57 = vpack.i.bf16 %v7951_v58, %v7869_v13  ;;  %v5368_v29 = vunpack.i.l.bf16 %v5367_v40  ;;  %v7958_v21 = vld [vmem:[#allocation2 + $0x1e9] sm:$0xff] }
 0x37b   : > { %v7915_v48 = vpop.f32.mrf.mxu1  ;;  %v5369_v55 = vunpack.i.h.bf16 %v5367_v40 }
 0x37c   : > { %v3522_v14 = vsel %vm2630_vm10, %v7741_v0, %v5353_v31  ;;  %v3580_v39 = vsel %vm2630_vm10, %v7584_v50, %v5354_v38  ;;  %v5377_v6 = vpop.permute.xlu1 %5376 }
 0x37d   : > { %3941 = vmatprep.mubr.f32.mxu1 %v3522_v14  ;;  %4136 = vmatprep.mubr.f32.mxu0 %v3580_v39  ;;  %v3845_v43 = vpop.f32.mrf.mxu1  ;;  %v7926_v35 = vld [vmem:[#allocation2 + $0x210] sm:$0xff] }
 0x37e   : > { %3942 = vmatmul.mubr.f32.gmra.mxu1 %v3490_v15  ;;  %4137 = vmatmul.mubr.f32.gmra.mxu0 %v3548_v19  ;;  %v5475_v0 = vpack.i.bf16 %v7924_v59, %v7926_v35  ;;  %v7934_v27 = vld [vmem:[#allocation2 + $0x211] sm:$0xff]  ;;  %v2923_v15 = vld [vmem:[#allocation2 + $0x228] sm:$0xff] }
 0x37f   : > { %v7930_v32 = vpop.f32.mrf.mxu1  ;;  %v7932_v50 = vld [vmem:[#allocation2 + $0x207] sm:$0xff]  ;;  %v7939_v42 = vld [vmem:[#allocation2 + $0x20f] sm:$0xff]  ;;  %v5485_v51 = vpack.i.bf16 %v7934_v27, %v2924_v18 }
 0x380   : > { %5476 = vrot.lane.b32.xlu1 %v5475_v0, %s5579_s12  ;;  %v5440_v23 = vpack.i.bf16 %v7810_v5, %v7932_v50  ;;  %v5450_v1 = vpack.i.bf16 %v7824_v30, %v7939_v42  ;;  %v7955_v41 = vld [vmem:[#allocation2 + $0x208] sm:$0xff]  ;;  %v3491_v0 = vsel %vm2630_vm10, %v7672_v34, %v5368_v29 }
 0x381   : > { %v3850_v36 = vpop.f32.mrf.mxu1  ;;  %v5470_v31 = vpack.i.bf16 %v7958_v21, %v7955_v41  ;;  %v7962_v33 = vld [vmem:[#allocation2 + $0x209] sm:$0xff] }
 0x382   : > { %5441 = vrot.lane.b32.xlu0 %v5440_v23, %s5579_s12  ;;  %v2812_v18 = vld [vmem:[#allocation2 + $0x128] sm:$0xff]  ;;  %v5379_v23 = vunpack.i.h.bf16 %v5377_v6  ;;  %v5378_v36 = vunpack.i.l.bf16 %v5377_v6  ;;  %v7984_v6 = vld [vmem:[%s8440_s4] ss:$0 sm:$0xff] }
 0x383   : > { %v7943_v45 = vpop.f32.mrf.mxu1 }
 0x384   : > { %5486 = vrot.lane.b32.xlu1 %v5485_v51, %s5579_s12  ;;  %v3492_v29 = vsel %vm2630_vm10, %v7684_v3, %v5378_v36 }
 0x385   : > { %v3855_v4 = vpop.f32.mrf.mxu1 }
 0x386   : > { %5451 = vrot.lane.b32.xlu0 %v5450_v1, %s5579_s12  ;;  %v3549_v1 = vsel %vm2630_vm10, %v2812_v18, %v5369_v55  ;;  %v5480_v4 = vpack.i.bf16 %v7962_v33, %v2923_v15 }
 0x387   : > { %v7949_v17 = vpop.f32.mrf.mxu1 }
 0x389   : > { %v3860_v60 = vpop.f32.mrf.mxu1 }
 0x38a   : > { %5461 = vrot.lane.b32.xlu0 %v5460_v57, %s5579_s12  ;;  %v2813_v60 = vld [vmem:[#allocation2 + $0x130] sm:$0xff] }
 0x38b   : > { %v3550_v55 = vsel %vm2630_vm10, %v2813_v60, %v5379_v23  ;;  %v3844_v23 = vadd.f32 %v7984_v6, %v7915_v48  ;;  %v3849_v60 = vadd.f32 %v7984_v6, %v7930_v32 }
 0x38d   : > { %v5362_v38 = vpop.permute.xlu0 %5361 }
 0x38e   : > { %v5364_v14 = vunpack.i.h.bf16 %v5362_v38  ;;  %v5363_v39 = vunpack.i.l.bf16 %v5362_v38  ;;  %5471 = vrot.lane.b32.xlu0 %v5470_v31, %s5579_s12 }
 0x390   : > { %v3523_v19 = vsel %vm2630_vm10, %v7759_v16, %v5363_v39  ;;  %v3581_v43 = vsel %vm2630_vm10, %v7632_v10, %v5364_v14  ;;  %v3839_v39 = vadd.f32 %v7984_v6, %v7905_v47 }
 0x391   : > { %v5372_v51 = vpop.permute.xlu0 %5371  ;;  %3946 = vmatprep.mubr.f32.mxu1 %v3523_v19  ;;  %4141 = vmatprep.mubr.f32.mxu0 %v3581_v43 }
 0x392   : > { %v5374_v40 = vunpack.i.h.bf16 %v5372_v51  ;;  %v5373_v57 = vunpack.i.l.bf16 %v5372_v51  ;;  %3947 = vmatmul.mubr.f32.gmra.mxu1 %v3491_v0  ;;  %4142 = vmatmul.mubr.f32.gmra.mxu0 %v3549_v1 }
 0x393   : > { %5481 = vrot.lane.b32.xlu0 %v5480_v4, %s5579_s12 }
 0x394   : > { %v3524_v10 = vsel %vm2630_vm10, %v7789_v53, %v5373_v57  ;;  %v3582_v16 = vsel %vm2630_vm10, %v7640_v37, %v5374_v40  ;;  %v5387_v37 = vpop.permute.xlu1 %5386 }
 0x395   : > { %3951 = vmatprep.mubr.f32.mxu1 %v3524_v10  ;;  %4146 = vmatprep.mubr.f32.mxu0 %v3582_v16  ;;  %v5389_v36 = vunpack.i.h.bf16 %v5387_v37  ;;  %v5388_v51 = vunpack.i.l.bf16 %v5387_v37 }
 0x396   : > { %3952 = vmatmul.mubr.f32.gmra.mxu1 %v3492_v29  ;;  %4147 = vmatmul.mubr.f32.gmra.mxu0 %v3550_v55 }
 0x398   : > { %v5022_v38 = vpop.f32.mrf.mxu0  ;;  %v5397_v1 = vpop.permute.xlu1 %5396 }
 0x399   : > { %v5399_v37 = vunpack.i.h.bf16 %v5397_v1 }
 0x39a   : > { %v2387_v31 = vpop.f32.mrf.mxu0 }
 0x39b   : > { %v2814_v31 = vld [vmem:[#allocation2 + $0x148] sm:$0xff] }
 0x39c   : > { %v7986_v53 = vpop.f32.mrf.mxu1 }
 0x39e   : > { %v3865_v14 = vpop.f32.mrf.mxu1 }
 0x39f   : > { %v5398_v14 = vunpack.i.l.bf16 %v5397_v1 }
 0x3a0   : > { %v7990_v15 = vpop.f32.mrf.mxu1  ;;  %v4063_v19 = vpop.f32.mrf.mxu0 }
 0x3a1   : > { %v7992_v43 = vadd.f32 %v4063_v19, %v3839_v39  ;;  %v3493_v19 = vsel %vm2630_vm10, %v7715_v56, %v5388_v51  ;;  %v3494_v51 = vsel %vm2630_vm10, %v7729_v44, %v5398_v14  ;;  %v3859_v14 = vadd.f32 %v7984_v6, %v7949_v17 }
 0x3a2   : > { %v3870_v0 = vpop.f32.mrf.mxu1  ;;  %v4065_v18 = vpop.f32.mrf.mxu0 }
 0x3a3   : > { %v3551_v0 = vsel %vm2630_vm10, %v2814_v31, %v5389_v36  ;;  %v3854_v36 = vadd.f32 %v7984_v6, %v7943_v45 }
 0x3a4   : > { %v7996_v10 = vpop.f32.mrf.mxu1  ;;  %v4068_v16 = vpop.f32.mrf.mxu0 }
 0x3a5   : > { %v5382_v4 = vpop.permute.xlu0 %5381  ;;  %v7998_v47 = vadd.f32 %v4068_v16, %v3844_v23  ;;  %v3552_v16 = vsel %vm2630_vm10, %v7638_v52, %v5399_v37 }
 0x3a6   : > { %v5384_v40 = vunpack.i.h.bf16 %v5382_v4  ;;  %v5383_v57 = vunpack.i.l.bf16 %v5382_v4  ;;  %v3875_v29 = vpop.f32.mrf.mxu1  ;;  %v4070_v55 = vpop.f32.mrf.mxu0 }
 0x3a8   : > { %v3525_v38 = vsel %vm2630_vm10, %v7812_v11, %v5383_v57  ;;  %v3583_v48 = vsel %vm2630_vm10, %v7672_v34, %v5384_v40 }
 0x3a9   : > { %v5392_v39 = vpop.permute.xlu0 %5391  ;;  %3956 = vmatprep.mubr.f32.mxu1 %v3525_v38  ;;  %4151 = vmatprep.mubr.f32.mxu0 %v3583_v48  ;;  %v8009_v23 = vpop.f32.mrf.mxu1 }
 0x3aa   : > { %v5394_v32 = vunpack.i.h.bf16 %v5392_v39  ;;  %v5393_v18 = vunpack.i.l.bf16 %v5392_v39  ;;  %3957 = vmatmul.mubr.f32.gmra.mxu1 %v3493_v19  ;;  %v4073_v11 = vpop.f32.mrf.mxu0  ;;  %4152 = vmatmul.mubr.f32.gmra.mxu0 %v3551_v0  ;;  %v5407_v38 = vpop.permute.xlu1 %5406 }
 0x3ab   : > { %v8011_v4 = vadd.f32 %v4073_v11, %v3849_v60  ;;  %v3880_v34 = vpop.f32.mrf.mxu1  ;;  %v5409_v48 = vunpack.i.h.bf16 %v5407_v38  ;;  %v5408_v45 = vunpack.i.l.bf16 %v5407_v38 }
 0x3ac   : > { %v4075_v40 = vpop.f32.mrf.mxu0  ;;  %v3526_v1 = vsel %vm2630_vm10, %v7836_v2, %v5393_v18  ;;  %v3584_v57 = vsel %vm2630_vm10, %v7684_v3, %v5394_v32 }
 0x3ad   : > { %3961 = vmatprep.mubr.f32.mxu1 %v3526_v1  ;;  %4156 = vmatprep.mubr.f32.mxu0 %v3584_v57  ;;  %v8023_v60 = vpop.f32.mrf.mxu1  ;;  %v3495_v34 = vsel %vm2630_vm10, %v7761_v63, %v5408_v45  ;;  %v3553_v40 = vsel %vm2630_vm10, %v7668_v54, %v5409_v48  ;;  %v3864_v54 = vadd.f32 %v7984_v6, %v7986_v53 }
 0x3ae   : > { %3962 = vmatmul.mubr.f32.gmra.mxu1 %v3494_v51  ;;  %v4078_v29 = vpop.f32.mrf.mxu0  ;;  %4157 = vmatmul.mubr.f32.gmra.mxu0 %v3552_v16  ;;  %v5417_v39 = vpop.permute.xlu1 %5416  ;;  %v3869_v53 = vadd.f32 %v7984_v6, %v7990_v15 }
 0x3af   : > { %v8025_v2 = vadd.f32 %v4078_v29, %v3854_v36  ;;  %v3885_v55 = vpop.f32.mrf.mxu1  ;;  %v5419_v32 = vunpack.i.h.bf16 %v5417_v39  ;;  %v5418_v18 = vunpack.i.l.bf16 %v5417_v39 }
 0x3b0   : > { %v4080_v3 = vpop.f32.mrf.mxu0 }
 0x3b1   : > { %v3496_v3 = vsel %vm2630_vm10, %v7777_v24, %v5418_v18  ;;  %v3554_v38 = vsel %vm2630_vm10, %v7682_v25, %v5419_v32 }
 0x3bd   : > { %v5402_v31 = vpop.permute.xlu0 %5401 }
 0x3be   : > { %v5404_v19 = vunpack.i.h.bf16 %v5402_v31  ;;  %v5403_v0 = vunpack.i.l.bf16 %v5402_v31 }
 0x3c0   : > { %v3527_v52 = vsel %vm2630_vm10, %v7871_v26, %v5403_v0  ;;  %v3585_v37 = vsel %vm2630_vm10, %v7715_v56, %v5404_v19  ;;  %v5427_v19 = vpop.permute.xlu1 %5426 }
 0x3c1   : > { %v5412_v11 = vpop.permute.xlu0 %5411  ;;  %3966 = vmatprep.mubr.f32.mxu1 %v3527_v52  ;;  %4161 = vmatprep.mubr.f32.mxu0 %v3585_v37  ;;  %v5429_v0 = vunpack.i.h.bf16 %v5427_v19 }
 0x3c2   : > { %v5414_v1 = vunpack.i.h.bf16 %v5412_v11  ;;  %v5413_v57 = vunpack.i.l.bf16 %v5412_v11  ;;  %v8037_v17 = vpop.f32.mrf.mxu1  ;;  %v4083_v36 = vpop.f32.mrf.mxu0  ;;  %3967 = vmatmul.mubr.f32.gmra.mxu1 %v3495_v34  ;;  %4162 = vmatmul.mubr.f32.gmra.mxu0 %v3553_v40  ;;  %v3874_v40 = vadd.f32 %v7984_v6, %v7996_v10 }
 0x3c3   : > { %v8039_v51 = vadd.f32 %v4083_v36, %v3859_v14  ;;  %v5428_v14 = vunpack.i.l.bf16 %v5427_v19 }
 0x3c4   : > { %v3890_v56 = vpop.f32.mrf.mxu1  ;;  %v4085_v16 = vpop.f32.mrf.mxu0  ;;  %v3528_v29 = vsel %vm2630_vm10, %v7886_v8, %v5413_v57  ;;  %v3586_v55 = vsel %vm2630_vm10, %v7729_v44, %v5414_v1 }
 0x3c5   : > { %3971 = vmatprep.mubr.f32.mxu1 %v3528_v29  ;;  %4166 = vmatprep.mubr.f32.mxu0 %v3586_v55  ;;  %v5437_v52 = vpop.permute.xlu1 %5436  ;;  %v3497_v55 = vsel %vm2630_vm10, %v7814_v46, %v5428_v14 }
 0x3c6   : > { %v8051_v48 = vpop.f32.mrf.mxu1  ;;  %v4088_v45 = vpop.f32.mrf.mxu0  ;;  %3972 = vmatmul.mubr.f32.gmra.mxu1 %v3496_v3  ;;  %4167 = vmatmul.mubr.f32.gmra.mxu0 %v3554_v38  ;;  %v5439_v56 = vunpack.i.h.bf16 %v5437_v52  ;;  %v5438_v16 = vunpack.i.l.bf16 %v5437_v52  ;;  %v3879_v52 = vadd.f32 %v7984_v6, %v8009_v23 }
 0x3c7   : > { %v8053_v31 = vadd.f32 %v4088_v45, %v3864_v54  ;;  %v3555_v54 = vsel %vm2630_vm10, %v7711_v61, %v5429_v0 }
 0x3c8   : > { %v3895_v39 = vpop.f32.mrf.mxu1  ;;  %v4090_v44 = vpop.f32.mrf.mxu0  ;;  %v3498_v61 = vsel %vm2630_vm10, %v7826_v7, %v5438_v16  ;;  %v3556_v0 = vsel %vm2630_vm10, %v7727_v9, %v5439_v56 }
 0x3d9   : > { %v5422_v37 = vpop.permute.xlu0 %5421  ;;  %v5447_v14 = vpop.permute.xlu1 %5446 }
 0x3da   : > { %v5424_v18 = vunpack.i.h.bf16 %v5422_v37  ;;  %v5423_v11 = vunpack.i.l.bf16 %v5422_v37  ;;  %v8057_v25 = vpop.f32.mrf.mxu1  ;;  %v4093_v32 = vpop.f32.mrf.mxu0 }
 0x3db   : > { %v8059_v34 = vadd.f32 %v4093_v32, %v3869_v53 }
 0x3dc   : > { %v3900_v1 = vpop.f32.mrf.mxu1  ;;  %v4095_v57 = vpop.f32.mrf.mxu0  ;;  %v3529_v36 = vsel %vm2630_vm10, %v7951_v58, %v5423_v11  ;;  %v3587_v15 = vsel %vm2630_vm10, %v7761_v63, %v5424_v18 }
 0x3dd   : > { %v5432_v29 = vpop.permute.xlu0 %5431  ;;  %3976 = vmatprep.mubr.f32.mxu1 %v3529_v36  ;;  %4171 = vmatprep.mubr.f32.mxu0 %v3587_v15  ;;  %v5449_v1 = vunpack.i.h.bf16 %v5447_v14  ;;  %v5448_v57 = vunpack.i.l.bf16 %v5447_v14  ;;  %v5457_v36 = vpop.permute.xlu1 %5456 }
 0x3de   : > { %v5434_v10 = vunpack.i.h.bf16 %v5432_v29  ;;  %v5433_v3 = vunpack.i.l.bf16 %v5432_v29  ;;  %v8071_v38 = vpop.f32.mrf.mxu1  ;;  %v4098_v45 = vpop.f32.mrf.mxu0  ;;  %3977 = vmatmul.mubr.f32.gmra.mxu1 %v3497_v55  ;;  %4172 = vmatmul.mubr.f32.gmra.mxu0 %v3555_v54 }
 0x3df   : > { %v8073_v39 = vadd.f32 %v4098_v45, %v3874_v40  ;;  %v3884_v40 = vadd.f32 %v7984_v6, %v8023_v60  ;;  %v5459_v60 = vunpack.i.h.bf16 %v5457_v36  ;;  %v5458_v45 = vunpack.i.l.bf16 %v5457_v36 }
 0x3e0   : > { %v3905_v63 = vpop.f32.mrf.mxu1  ;;  %v4100_v44 = vpop.f32.mrf.mxu0  ;;  %v3530_v19 = vsel %vm2630_vm10, %v7894_v62, %v5433_v3  ;;  %v3588_v53 = vsel %vm2630_vm10, %v7777_v24, %v5434_v10 }
 0x3e1   : > { %3981 = vmatprep.mubr.f32.mxu1 %v3530_v19  ;;  %4176 = vmatprep.mubr.f32.mxu0 %v3588_v53  ;;  %v3499_v44 = vsel %vm2630_vm10, %v7873_v12, %v5448_v57  ;;  %v3557_v19 = vsel %vm2630_vm10, %v7757_v20, %v5449_v1  ;;  %v3558_v20 = vsel %vm2630_vm10, %v7775_v28, %v5459_v60  ;;  %v2935_v1 = vld [vmem:[#allocation2 + $0xe9] sm:$0xff] }
 0x3e2   : > { %3982 = vmatmul.mubr.f32.gmra.mxu1 %v3498_v61  ;;  %4177 = vmatmul.mubr.f32.gmra.mxu0 %v3556_v0  ;;  %v5467_v0 = vpop.permute.xlu1 %5466  ;;  %v2939_v60 = vld [vmem:[#allocation2 + $0x129] sm:$0xff] }
 0x3e3   : > { %v5469_v36 = vunpack.i.h.bf16 %v5467_v0 }
 0x3f2   : > { %v8085_v37 = vpop.f32.mrf.mxu1  ;;  %v4103_v18 = vpop.f32.mrf.mxu0 }
 0x3f3   : > { %v8087_v11 = vadd.f32 %v4103_v18, %v3879_v52  ;;  %v3500_v18 = vsel %vm2630_vm10, %v7882_v49, %v5458_v45 }
 0x3f4   : > { %v3910_v24 = vpop.f32.mrf.mxu1  ;;  %v4105_v32 = vpop.f32.mrf.mxu0 }
 0x3f5   : > { %v5442_v9 = vpop.permute.xlu0 %5441  ;;  %v5468_v24 = vunpack.i.l.bf16 %v5467_v0  ;;  %v2941_v0 = vld [vmem:[#allocation2 + $0x149] sm:$0xff] }
 0x3f6   : > { %v5444_v15 = vunpack.i.h.bf16 %v5442_v9  ;;  %v5443_v56 = vunpack.i.l.bf16 %v5442_v9  ;;  %v8091_v16 = vpop.f32.mrf.mxu1  ;;  %v4108_v29 = vpop.f32.mrf.mxu0 }
 0x3f7   : > { %v8093_v23 = vadd.f32 %v4108_v29, %v3884_v40  ;;  %v3592_v28 = vsel %vm2630_vm10, %v7882_v49, %v5468_v24  ;;  %v2937_v29 = vld [vmem:[#allocation2 + $0x109] sm:$0xff]  ;;  %v3889_v49 = vadd.f32 %v7984_v6, %v8037_v17 }
 0x3f8   : > { %v3915_v55 = vpop.f32.mrf.mxu1  ;;  %v4110_v54 = vpop.f32.mrf.mxu0  ;;  %v3531_v10 = vsel %vm2630_vm10, %v7958_v21, %v5443_v56  ;;  %v3589_v3 = vsel %vm2630_vm10, %v7814_v46, %v5444_v15  ;;  %v2936_v15 = vld [vmem:[#allocation2 + $0xf1] sm:$0xff]  ;;  %v2891_v17 = vld [vmem:[#allocation2 + $0x227] sm:$0xff] }
 0x3f9   : > { %v5452_v63 = vpop.permute.xlu0 %5451  ;;  %3986 = vmatprep.mubr.f32.mxu1 %v3531_v10  ;;  %4181 = vmatprep.mubr.f32.mxu0 %v3589_v3  ;;  %v5477_v55 = vpop.permute.xlu1 %5476  ;;  %v2938_v54 = vld [vmem:[#allocation2 + $0x111] sm:$0xff] }
 0x3fa   : > { %v5454_v53 = vunpack.i.h.bf16 %v5452_v63  ;;  %v5453_v61 = vunpack.i.l.bf16 %v5452_v63  ;;  %3987 = vmatmul.mubr.f32.gmra.mxu1 %v3499_v44  ;;  %4182 = vmatmul.mubr.f32.gmra.mxu0 %v3557_v19  ;;  %v5478_v10 = vunpack.i.l.bf16 %v5477_v55  ;;  %v5479_v63 = vunpack.i.h.bf16 %v5477_v55  ;;  %v2940_v44 = vld [vmem:[#allocation2 + $0x131] sm:$0xff]  ;;  %v2945_v55 = vld [vmem:[#allocation2 + $0x189] sm:$0xff] }
 0x3fc   : > { %v3532_v14 = vsel %vm2630_vm10, %v7924_v59, %v5453_v61  ;;  %v3590_v46 = vsel %vm2630_vm10, %v7826_v7, %v5454_v53  ;;  %v3562_v24 = vsel %vm2630_vm10, %v7880_v22, %v5479_v63  ;;  %v2955_v63 = vld [vmem:[#allocation2 + $0x229] sm:$0xff] }
 0x3fd   : > { %v5462_v52 = vpop.permute.xlu0 %5461  ;;  %3991 = vmatprep.mubr.f32.mxu1 %v3532_v14  ;;  %4186 = vmatprep.mubr.f32.mxu0 %v3590_v46  ;;  %v5487_v14 = vpop.permute.xlu1 %5486 }
 0x3fe   : > { %v5464_v32 = vunpack.i.h.bf16 %v5462_v52  ;;  %v5463_v40 = vunpack.i.l.bf16 %v5462_v52  ;;  %3992 = vmatmul.mubr.f32.gmra.mxu1 %v3500_v18  ;;  %4187 = vmatmul.mubr.f32.gmra.mxu0 %v3558_v20  ;;  %v3894_v18 = vadd.f32 %v7984_v6, %v8051_v48  ;;  %v2892_v48 = vld [vmem:[#allocation2 + $0x22f] sm:$0xff]  ;;  %v5489_v22 = vunpack.i.h.bf16 %v5487_v14 }
 0x3ff   : > { %5054 = vmatprep.mubr.msk.f32.mxu1 %vm2630_vm10, %v2935_v1 }
 0x400   : > { %v3591_v7 = vsel %vm2630_vm10, %v7873_v12, %v5463_v40  ;;  %v3559_v57 = vsel %vm2630_vm10, %v7810_v5, %v5464_v32  ;;  %v3560_v5 = vsel %vm2630_vm10, %v7824_v30, %v5469_v36  ;;  %v2942_v32 = vld [vmem:[#allocation2 + $0x151] sm:$0xff]  ;;  %v5488_v40 = vunpack.i.l.bf16 %v5487_v14 }
 0x401   : > { %v5472_v9 = vpop.permute.xlu0 %5471  ;;  %4191 = vmatprep.mubr.f32.mxu0 %v3591_v7  ;;  %v2934_v14 = vld [vmem:[#allocation2 + $0xd1] sm:$0xff] }
 0x402   : > { %v5473_v56 = vunpack.i.l.bf16 %v5472_v9  ;;  %4192 = vmatmul.mubr.f32.gmra.mxu0 %v3559_v57  ;;  %5055 = vmatmul.mubr.msk.f32.vlgmr.msra.gmra.mxu1 %vm2630_vm10, %v2936_v15  ;;  %v5474_v12 = vunpack.i.h.bf16 %v5472_v9  ;;  %v2943_v57 = vld [vmem:[#allocation2 + $0x169] sm:$0xff] }
 0x403   : > { %4196 = vmatprep.mubr.f32.mxu0 %v3592_v28  ;;  %5057 = vmatprep.mubr.msk.f32.mxu1 %vm2630_vm10, %v2937_v29  ;;  %v2944_v28 = vld [vmem:[#allocation2 + $0x171] sm:$0xff]  ;;  %v3596_v29 = vsel %vm2630_vm10, %v2892_v48, %v5488_v40 }
 0x404   : > { %v3593_v3 = vsel %vm2630_vm10, %v7932_v50, %v5473_v56  ;;  %v3561_v30 = vsel %vm2630_vm10, %v7869_v13, %v5474_v12  ;;  %v3594_v50 = vsel %vm2630_vm10, %v7939_v42, %v5478_v10  ;;  %v3564_v12 = vsel %vm2630_vm10, %v7926_v35, %v5489_v22  ;;  %v2927_v10 = vld [vmem:[#allocation2 + $0x69] sm:$0xff]  ;;  %v2928_v35 = vld [vmem:[#allocation2 + $0x71] sm:$0xff] }
 0x405   : > { %v5482_v45 = vpop.permute.xlu0 %5481 }
 0x406   : > { %4197 = vmatmul.mubr.f32.gmra.mxu0 %v3560_v5  ;;  %5058 = vmatmul.mubr.msk.f32.gmra.mxu1 %vm2630_vm10, %v2938_v54  ;;  %v5483_v19 = vunpack.i.l.bf16 %v5482_v45  ;;  %v5484_v20 = vunpack.i.h.bf16 %v5482_v45  ;;  %v2946_v5 = vld [vmem:[#allocation2 + $0x191] sm:$0xff]  ;;  %v2925_v54 = vld [vmem:[#allocation2 + $0x49] sm:$0xff] }
 0x407   : > { %4201 = vmatprep.mubr.f32.mxu0 %v3593_v3  ;;  %5060 = vmatprep.mubr.msk.f32.mxu1 %vm2630_vm10, %v2939_v60  ;;  %v2929_v3 = vld [vmem:[#allocation2 + $0x89] sm:$0xff] }
 0x408   : > { %v3595_v7 = vsel %vm2630_vm10, %v2891_v17, %v5483_v19  ;;  %v3563_v56 = vsel %vm2630_vm10, %v7955_v41, %v5484_v20  ;;  %v2926_v41 = vld [vmem:[#allocation2 + $0x51] sm:$0xff]  ;;  %v3914_v20 = vadd.f32 %v7984_v6, %v8091_v16 }
 0x40a   : > { %v8130_v53 = vpop.f32.mrf.mxu1  ;;  %v4113_v61 = vpop.f32.mrf.mxu0  ;;  %4202 = vmatmul.mubr.f32.gmra.mxu0 %v3561_v30  ;;  %5061 = vmatmul.mubr.msk.f32.gmra.mxu1 %vm2630_vm10, %v2940_v44  ;;  %v2932_v30 = vld [vmem:[#allocation2 + $0xb1] sm:$0xff] }
 0x40b   : > { %v8135_v46 = vadd.f32 %v4113_v61, %v3889_v49  ;;  %4206 = vmatprep.mubr.f32.mxu0 %v3594_v50  ;;  %5063 = vmatprep.mubr.msk.f32.mxu1 %vm2630_vm10, %v2941_v0 }
 0x40c   : > { %v3920_v13 = vpop.f32.mrf.mxu1  ;;  %v4115_v52 = vpop.f32.mrf.mxu0 }
 0x40e   : > { %v8142_v42 = vpop.f32.mrf.mxu1  ;;  %v4118_v1 = vpop.f32.mrf.mxu0  ;;  %4207 = vmatmul.mubr.f32.gmra.mxu0 %v3562_v24  ;;  %5064 = vmatmul.mubr.msk.f32.gmra.mxu1 %vm2630_vm10, %v2942_v32 }
 0x40f   : > { %v8146_v36 = vadd.f32 %v4118_v1, %v3894_v18  ;;  %4211 = vmatprep.mubr.f32.mxu0 %v3595_v7  ;;  %5066 = vmatprep.mubr.msk.f32.mxu1 %vm2630_vm10, %v2943_v57  ;;  %v3919_v57 = vadd.f32 %v7984_v6, %v8130_v53 }
 0x410   : > { %v3925_v9 = vpop.f32.mrf.mxu1  ;;  %v4120_v15 = vpop.f32.mrf.mxu0 }
 0x412   : > { %4212 = vmatmul.mubr.f32.gmra.mxu0 %v3563_v56  ;;  %5067 = vmatmul.mubr.msk.f32.gmra.mxu1 %vm2630_vm10, %v2944_v28  ;;  %v3924_v56 = vadd.f32 %v7984_v6, %v8142_v42 }
 0x413   : > { %4216 = vmatprep.mubr.f32.mxu0 %v3596_v29  ;;  %5069 = vmatprep.mubr.msk.f32.mxu1 %vm2630_vm10, %v2945_v55 }
 0x416   : > { %4217 = vmatmul.mubr.f32.gmra.mxu0 %v3564_v12  ;;  %5070 = vmatmul.mubr.msk.f32.gmra.mxu1 %vm2630_vm10, %v2946_v5 }
 0x417   : > { %5039 = vmatprep.mubr.msk.f32.mxu0 %vm2630_vm10, %v2925_v54  ;;  %5072 = vmatprep.mubr.msk.f32.mxu1 %vm2630_vm10, %v7871_v26  ;;  %v3899_v26 = vadd.f32 %v7984_v6, %v8057_v25  ;;  %v3904_v25 = vadd.f32 %v7984_v6, %v8071_v38  ;;  %v3909_v38 = vadd.f32 %v7984_v6, %v8085_v37 }
 0x41a   : > { %5040 = vmatmul.mubr.msk.f32.vlgmr.msra.gmra.mxu0 %vm2630_vm10, %v2926_v41  ;;  %5073 = vmatmul.mubr.msk.f32.gmra.mxu1 %vm2630_vm10, %v7886_v8  ;;  %v2930_v8 = vld [vmem:[#allocation2 + $0x91] sm:$0xff] }
 0x41b   : > { %5042 = vmatprep.mubr.msk.f32.mxu0 %vm2630_vm10, %v2927_v10  ;;  %5075 = vmatprep.mubr.msk.f32.mxu1 %vm2630_vm10, %v7951_v58  ;;  %v2931_v58 = vld [vmem:[#allocation2 + $0xa9] sm:$0xff] }
 0x41e   : > { %5043 = vmatmul.mubr.msk.f32.gmra.mxu0 %vm2630_vm10, %v2928_v35  ;;  %5076 = vmatmul.mubr.msk.f32.gmra.mxu1 %vm2630_vm10, %v7894_v62 }
 0x41f   : > { %5045 = vmatprep.mubr.msk.f32.mxu0 %vm2630_vm10, %v2929_v3  ;;  %5078 = vmatprep.mubr.msk.f32.mxu1 %vm2630_vm10, %v7958_v21 }
 0x422   : > { %v3928_v60 = vpop.f32.mrf.mxu1  ;;  %v4123_v45 = vpop.f32.mrf.mxu0  ;;  %5046 = vmatmul.mubr.msk.f32.gmra.mxu0 %vm2630_vm10, %v2930_v8  ;;  %5079 = vmatmul.mubr.msk.f32.gmra.mxu1 %vm2630_vm10, %v7924_v59  ;;  %v2933_v59 = vld [vmem:[#allocation2 + $0xc9] sm:$0xff] }
 0x423   : > { %v8177_v49 = vadd.f32 %v4123_v45, %v3899_v26  ;;  %5048 = vmatprep.mubr.msk.f32.mxu0 %vm2630_vm10, %v2931_v58  ;;  %5081 = vmatprep.mubr.msk.f32.mxu1 %vm2630_vm10, %v7962_v33  ;;  %v2956_v33 = vld [vmem:[#allocation2 + $0x231] sm:$0xff]  ;;  %v3929_v5 = vadd.f32 %v7984_v6, %v3928_v60 }
 0x424   : > { %v3930_v62 = vpop.f32.mrf.mxu1  ;;  %v4125_v21 = vpop.f32.mrf.mxu0 }
 0x426   : > { %v3933_v44 = vpop.f32.mrf.mxu1  ;;  %v4128_v19 = vpop.f32.mrf.mxu0  ;;  %5049 = vmatmul.mubr.msk.f32.gmra.mxu0 %vm2630_vm10, %v2932_v30  ;;  %5082 = vmatmul.mubr.msk.f32.gmra.mxu1 %vm2630_vm10, %v7934_v27 }
 0x427   : > { %v8187_v61 = vadd.f32 %v4128_v19, %v3904_v25  ;;  %5051 = vmatprep.mubr.msk.f32.mxu0 %vm2630_vm10, %v2933_v59  ;;  %5084 = vmatprep.mubr.msk.f32.mxu1 %vm2630_vm10, %v2955_v63  ;;  %v3934_v3 = vadd.f32 %v7984_v6, %v3933_v44 }
 0x428   : > { %v3935_v50 = vpop.f32.mrf.mxu1  ;;  %v4130_v0 = vpop.f32.mrf.mxu0 }
 0x42a   : > { %5052 = vmatmul.mubr.msk.f32.gmra.mxu0 %vm2630_vm10, %v2934_v14  ;;  %5085 = vmatmul.mubr.msk.f32.gmra.mxu1 %vm2630_vm10, %v2956_v33 }
 0x43a   : > { %v3938_v17 = vpop.f32.mrf.mxu1  ;;  %v4133_v27 = vpop.f32.mrf.mxu0 }
 0x43b   : > { %v8195_v13 = vadd.f32 %v4133_v27, %v3909_v38  ;;  %v3939_v62 = vadd.f32 %v7984_v6, %v3938_v17 }
 0x43c   : > { %v3940_v52 = vpop.f32.mrf.mxu1  ;;  %v4135_v18 = vpop.f32.mrf.mxu0 }
 0x43e   : > { %v3943_v24 = vpop.f32.mrf.mxu1  ;;  %v4138_v32 = vpop.f32.mrf.mxu0 }
 0x43f   : > { %v8199_v40 = vadd.f32 %v4138_v32, %v3914_v20  ;;  %v3944_v19 = vadd.f32 %v7984_v6, %v3943_v24 }
 0x440   : > { %v3945_v1 = vpop.f32.mrf.mxu1  ;;  %v4140_v7 = vpop.f32.mrf.mxu0 }
 0x452   : > { %v8203_v48 = vpop.f32.mrf.mxu1  ;;  %v4143_v37 = vpop.f32.mrf.mxu0 }
 0x453   : > { %v8205_v9 = vadd.f32 %v4143_v37, %v3919_v57 }
 0x454   : > { %v3950_v15 = vpop.f32.mrf.mxu1  ;;  %v4145_v22 = vpop.f32.mrf.mxu0 }
 0x456   : > { %v8209_v16 = vpop.f32.mrf.mxu1  ;;  %v4148_v28 = vpop.f32.mrf.mxu0 }
 0x457   : > { %v8211_v29 = vadd.f32 %v4148_v28, %v3924_v56 }
 0x458   : > { %v3955_v55 = vpop.f32.mrf.mxu1  ;;  %v4150_v12 = vpop.f32.mrf.mxu0 }
 0x46a   : > { %v8214_v53 = vpop.f32.mrf.mxu1  ;;  %v4153_v54 = vpop.f32.mrf.mxu0 }
 0x46b   : > { %v8216_v41 = vadd.f32 %v4153_v54, %v3929_v5 }
 0x46c   : > { %v3960_v10 = vpop.f32.mrf.mxu1  ;;  %v4155_v35 = vpop.f32.mrf.mxu0 }
 0x46e   : > { %v8219_v26 = vpop.f32.mrf.mxu1  ;;  %v4158_v42 = vpop.f32.mrf.mxu0 }
 0x46f   : > { %v8221_v8 = vadd.f32 %v4158_v42, %v3934_v3 }
 0x470   : > { %v3965_v45 = vpop.f32.mrf.mxu1  ;;  %v4160_v58 = vpop.f32.mrf.mxu0 }
 0x482   : > { %v8224_v21 = vpop.f32.mrf.mxu1  ;;  %v4163_v60 = vpop.f32.mrf.mxu0 }
 0x483   : > { %v8226_v63 = vadd.f32 %v4163_v60, %v3939_v62 }
 0x484   : > { %v3970_v25 = vpop.f32.mrf.mxu1  ;;  %v4165_v30 = vpop.f32.mrf.mxu0 }
 0x486   : > { %v8229_v59 = vpop.f32.mrf.mxu1  ;;  %v4168_v44 = vpop.f32.mrf.mxu0 }
 0x487   : > { %v8231_v33 = vadd.f32 %v4168_v44, %v3944_v19 }
 0x488   : > { %v3975_v50 = vpop.f32.mrf.mxu1  ;;  %v4170_v0 = vpop.f32.mrf.mxu0 }
 0x49e   : > { %v8233_v14 = vpop.f32.mrf.mxu1  ;;  %v8235_v38 = vpop.f32.mrf.mxu0 }
 0x4a0   : > { %v3980_v17 = vpop.f32.mrf.mxu1  ;;  %v4175_v27 = vpop.f32.mrf.mxu0 }
 0x4a2   : > { %v8237_v52 = vpop.f32.mrf.mxu1  ;;  %v4178_v18 = vpop.f32.mrf.mxu0 }
 0x4a4   : > { %v3985_v20 = vpop.f32.mrf.mxu1  ;;  %v4180_v24 = vpop.f32.mrf.mxu0 }
 0x4ba   : > { %v8239_v32 = vpop.f32.mrf.mxu1  ;;  %v8241_v1 = vpop.f32.mrf.mxu0 }
 0x4bc   : > { %v3990_v7 = vpop.f32.mrf.mxu1  ;;  %v4185_v57 = vpop.f32.mrf.mxu0 }
 0x4be   : > { %v8244_v37 = vpop.f32.mrf.mxu1  ;;  %v8246_v15 = vpop.f32.mrf.mxu0 }
 0x4c0   : > { %v3995_v22 = vpop.f32.mrf.mxu1  ;;  %v4190_v56 = vpop.f32.mrf.mxu0 }
 0x4c2   : > { %v8250_v28 = vpop.f32.mrf.mxu0  ;;  %v5056_v55 = vpop.f32.mrf.mxu1 }
 0x4c3   : > { %v4344_v12 = vadd.f32 %v5056_v55, %v8146_v36 }
 0x4c4   : > { %v4195_v5 = vpop.f32.mrf.mxu0  ;;  %v4338_v54 = vpop.f32.mrf.mxu1 }
 0x4c5   : > { %4458 = vst.msk [vmem:[%s8253_s9 + $0x58] sm:$0xff] %vm2630_vm10, %v4344_v12  ;;  %v4339_v10 = vadd.f32 %v4338_v54, %v8135_v46 }
 0x4c6   : > { %v8258_v35 = vpop.f32.mrf.mxu0  ;;  %v5059_v3 = vpop.f32.mrf.mxu1 }
 0x4c7   : > { %4457 = vst.msk [vmem:[%s8253_s9 + $0x50] sm:$0xff] %vm2630_vm10, %v4339_v10  ;;  %v4354_v36 = vadd.f32 %v5059_v3, %v8187_v61 }
 0x4c8   : > { %v4200_v42 = vpop.f32.mrf.mxu0  ;;  %v4348_v45 = vpop.f32.mrf.mxu1 }
 0x4c9   : > { %4460 = vst.msk [vmem:[%s8253_s9 + $0x68] sm:$0xff] %vm2630_vm10, %v4354_v36  ;;  %v4349_v58 = vadd.f32 %v4348_v45, %v8177_v49  ;;  %v3959_v36 = vadd.f32 %v7984_v6, %v8214_v53 }
 0x4ca   : > { %v8266_v62 = vpop.f32.mrf.mxu0  ;;  %v5062_v60 = vpop.f32.mrf.mxu1 }
 0x4cb   : > { %4459 = vst.msk [vmem:[%s8253_s9 + $0x60] sm:$0xff] %vm2630_vm10, %v4349_v58  ;;  %v4364_v46 = vadd.f32 %v5062_v60, %v8199_v40  ;;  %v4184_v58 = vadd.f32 %v8241_v1, %v3959_v36 }
 0x4cc   : > { %v4205_v25 = vpop.f32.mrf.mxu0  ;;  %v4358_v30 = vpop.f32.mrf.mxu1 }
 0x4cd   : > { %4462 = vst.msk [vmem:[%s8253_s9 + $0x78] sm:$0xff] %vm2630_vm10, %v4364_v46  ;;  %v4359_v61 = vadd.f32 %v4358_v30, %v8195_v13 }
 0x4ce   : > { %v8274_v19 = vpop.f32.mrf.mxu0  ;;  %v5065_v44 = vpop.f32.mrf.mxu1 }
 0x4cf   : > { %4461 = vst.msk [vmem:[%s8253_s9 + $0x70] sm:$0xff] %vm2630_vm10, %v4359_v61  ;;  %v4374_v49 = vadd.f32 %v5065_v44, %v8211_v29 }
 0x4d0   : > { %v4210_v50 = vpop.f32.mrf.mxu0  ;;  %v4368_v0 = vpop.f32.mrf.mxu1 }
 0x4d1   : > { %4464 = vst.msk [vmem:[%s8253_s9 + $0x88] sm:$0xff] %vm2630_vm10, %v4374_v49  ;;  %v4369_v40 = vadd.f32 %v4368_v0, %v8205_v9  ;;  %v3954_v9 = vadd.f32 %v7984_v6, %v8209_v16  ;;  %v3964_v16 = vadd.f32 %v7984_v6, %v8219_v26 }
 0x4d2   : > { %v8282_v17 = vpop.f32.mrf.mxu0  ;;  %v5068_v27 = vpop.f32.mrf.mxu1 }
 0x4d3   : > { %4463 = vst.msk [vmem:[%s8253_s9 + $0x80] sm:$0xff] %vm2630_vm10, %v4369_v40  ;;  %v4384_v13 = vadd.f32 %v5068_v27, %v8221_v8  ;;  %v3949_v8 = vadd.f32 %v7984_v6, %v8203_v48  ;;  %v4179_v12 = vadd.f32 %v4178_v18, %v3954_v9  ;;  %v3994_v27 = vadd.f32 %v7984_v6, %v8244_v37 }
 0x4d4   : > { %v4215_v20 = vpop.f32.mrf.mxu0  ;;  %v4378_v24 = vpop.f32.mrf.mxu1 }
 0x4d5   : > { %4466 = vst.msk [vmem:[%s8253_s9 + $0x98] sm:$0xff] %vm2630_vm10, %v4384_v13  ;;  %v4379_v29 = vadd.f32 %v4378_v24, %v8216_v41  ;;  %v4174_v10 = vadd.f32 %v8235_v38, %v3949_v8  ;;  %v3989_v24 = vadd.f32 %v7984_v6, %v8239_v32 }
 0x4d6   : > { %v8290_v7 = vpop.f32.mrf.mxu0  ;;  %v5071_v57 = vpop.f32.mrf.mxu1 }
 0x4d7   : > { %4465 = vst.msk [vmem:[%s8253_s9 + $0x90] sm:$0xff] %vm2630_vm10, %v4379_v29  ;;  %v4394_v22 = vadd.f32 %v5071_v57, %v8231_v33  ;;  %v4219_v29 = vadd.f32 %v8290_v7, %v3994_v27 }
 0x4d8   : > { %v4220_v56 = vpop.f32.mrf.mxu0  ;;  %v4388_v55 = vpop.f32.mrf.mxu1 }
 0x4d9   : > { %4468 = vst.msk [vmem:[%s8253_s9 + $0xa8] sm:$0xff] %vm2630_vm10, %v4394_v22  ;;  %v4389_v41 = vadd.f32 %v4388_v55, %v8226_v63  ;;  %v4189_v63 = vadd.f32 %v8246_v15, %v3964_v16 }
 0x4da   : > { %v5041_v5 = vpop.f32.mrf.mxu0  ;;  %v5074_v54 = vpop.f32.mrf.mxu1 }
 0x4db   : > { %4467 = vst.msk [vmem:[%s8253_s9 + $0xa0] sm:$0xff] %vm2630_vm10, %v4389_v41  ;;  %v4294_v33 = vadd.f32 %v5041_v5, %v7998_v47  ;;  %v4404_v48 = vadd.f32 %v5074_v54, %v4179_v12  ;;  %v3974_v47 = vadd.f32 %v7984_v6, %v8229_v59 }
 0x4dc   : > { %v4288_v3 = vpop.f32.mrf.mxu0  ;;  %v4398_v18 = vpop.f32.mrf.mxu1 }
 0x4dd   : > { %4448 = vst.msk [vmem:[%s8253_s9 + $0x8] sm:$0xff] %vm2630_vm10, %v4294_v33  ;;  %4470 = vst.msk [vmem:[%s8253_s9 + $0xb8] sm:$0xff] %vm2630_vm10, %v4404_v48  ;;  %v4289_v26 = vadd.f32 %v4288_v3, %v7992_v43  ;;  %v4399_v38 = vadd.f32 %v4398_v18, %v4174_v10  ;;  %v3969_v43 = vadd.f32 %v7984_v6, %v8224_v21 }
 0x4de   : > { %v5044_v42 = vpop.f32.mrf.mxu0  ;;  %v5077_v45 = vpop.f32.mrf.mxu1  ;;  %v4199_v25 = vadd.f32 %v8258_v35, %v3974_v47 }
 0x4df   : > { %4447 = vst.msk [vmem:[%s8253_s9] sm:$0xff] %vm2630_vm10, %v4289_v26  ;;  %4469 = vst.msk [vmem:[%s8253_s9 + $0xb0] sm:$0xff] %vm2630_vm10, %v4399_v38  ;;  %v4304_v53 = vadd.f32 %v5044_v42, %v8025_v2  ;;  %v4414_v15 = vadd.f32 %v5077_v45, %v4189_v63  ;;  %v3984_v2 = vadd.f32 %v7984_v6, %v8237_v52 }
 0x4e0   : > { %v4298_v60 = vpop.f32.mrf.mxu0  ;;  %v4408_v46 = vpop.f32.mrf.mxu1  ;;  %v4194_v44 = vadd.f32 %v8250_v28, %v3969_v43 }
 0x4e1   : > { %4450 = vst.msk [vmem:[%s8253_s9 + $0x18] sm:$0xff] %vm2630_vm10, %v4304_v53  ;;  %4472 = vst.msk [vmem:[%s8253_s9 + $0xc8] sm:$0xff] %vm2630_vm10, %v4414_v15  ;;  %v4299_v59 = vadd.f32 %v4298_v60, %v8011_v4  ;;  %v4409_v1 = vadd.f32 %v4408_v46, %v4184_v58  ;;  %v3979_v4 = vadd.f32 %v7984_v6, %v8233_v14 }
 0x4e2   : > { %v5047_v30 = vpop.f32.mrf.mxu0  ;;  %v5080_v61 = vpop.f32.mrf.mxu1  ;;  %v4209_v0 = vadd.f32 %v8274_v19, %v3984_v2  ;;  %v4214_v6 = vadd.f32 %v8282_v17, %v3989_v24 }
 0x4e3   : > { %4449 = vst.msk [vmem:[%s8253_s9 + $0x10] sm:$0xff] %vm2630_vm10, %v4299_v59  ;;  %4471 = vst.msk [vmem:[%s8253_s9 + $0xc0] sm:$0xff] %vm2630_vm10, %v4409_v1  ;;  %v4314_v21 = vadd.f32 %v5047_v30, %v8053_v31  ;;  %v4424_v35 = vadd.f32 %v5080_v61, %v4199_v25  ;;  %v4204_v13 = vadd.f32 %v8266_v62, %v3979_v4 }
 0x4e4   : > { %v4308_v49 = vpop.f32.mrf.mxu0  ;;  %v4418_v50 = vpop.f32.mrf.mxu1 }
 0x4e5   : > { %4452 = vst.msk [vmem:[%s8253_s9 + $0x28] sm:$0xff] %vm2630_vm10, %v4314_v21  ;;  %4474 = vst.msk [vmem:[%s8253_s9 + $0xd8] sm:$0xff] %vm2630_vm10, %v4424_v35  ;;  %v4309_v52 = vadd.f32 %v4308_v49, %v8039_v51  ;;  %v4419_v28 = vadd.f32 %v4418_v50, %v4194_v44 }
 0x4e6   : > { %v5050_v40 = vpop.f32.mrf.mxu0  ;;  %v5083_v31 = vpop.f32.mrf.mxu1 }
 0x4e7   : > { %4451 = vst.msk [vmem:[%s8253_s9 + $0x20] sm:$0xff] %vm2630_vm10, %v4309_v52  ;;  %4473 = vst.msk [vmem:[%s8253_s9 + $0xd0] sm:$0xff] %vm2630_vm10, %v4419_v28  ;;  %v4324_v14 = vadd.f32 %v5050_v40, %v8073_v39  ;;  %v4434_v19 = vadd.f32 %v5083_v31, %v4209_v0 }
 0x4e8   : > { %v4318_v51 = vpop.f32.mrf.mxu0  ;;  %v4428_v20 = vpop.f32.mrf.mxu1 }
 0x4e9   : > { %4454 = vst.msk [vmem:[%s8253_s9 + $0x38] sm:$0xff] %vm2630_vm10, %v4324_v14  ;;  %4476 = vst.msk [vmem:[%s8253_s9 + $0xe8] sm:$0xff] %vm2630_vm10, %v4434_v19  ;;  %v4319_v37 = vadd.f32 %v4318_v51, %v8059_v34  ;;  %v4429_v62 = vadd.f32 %v4428_v20, %v4204_v13 }
 0x4ea   : > { %v5053_v39 = vpop.f32.mrf.mxu0  ;;  %v5086_v57 = vpop.f32.mrf.mxu1 }
 0x4eb   : > { %4453 = vst.msk [vmem:[%s8253_s9 + $0x30] sm:$0xff] %vm2630_vm10, %v4319_v37  ;;  %4475 = vst.msk [vmem:[%s8253_s9 + $0xe0] sm:$0xff] %vm2630_vm10, %v4429_v62  ;;  %v4334_v32 = vadd.f32 %v5053_v39, %v8093_v23  ;;  %v4444_v7 = vadd.f32 %v5086_v57, %v4219_v29 }
 0x4ec   : > { %v4328_v9 = vpop.f32.mrf.mxu0  ;;  %v4438_v34 = vpop.f32.mrf.mxu1 }
 0x4ed   : > { %4456 = vst.msk [vmem:[%s8253_s9 + $0x48] sm:$0xff] %vm2630_vm10, %v4334_v32  ;;  %4478 = vst.msk [vmem:[%s8253_s9 + $0xf8] sm:$0xff] %vm2630_vm10, %v4444_v7  ;;  %v4329_v17 = vadd.f32 %v4328_v9, %v8087_v11  ;;  %v4439_v22 = vadd.f32 %v4438_v34, %v4214_v6 }
 0x4ef   : > { %4455 = vst.msk [vmem:[%s8253_s9 + $0x40] sm:$0xff] %vm2630_vm10, %v4329_v17  ;;  %4477 = vst.msk [vmem:[%s8253_s9 + $0xf0] sm:$0xff] %vm2630_vm10, %v4439_v22 }
 0x4f0   : > { %5505 = shalt.err (!%p5502_p5)
}
 0x4f1   : > { %s5506_s7 = scalar_lea.hbm %s8375_s15, 4096  ;;  %s5510_s29 = scalar_lea.hbm %s8441_s5, 8192 }
 0x4f2   : > { %p5507_p6 = scmp.ne.s32.totalorder %s8375_s15, %s5506_s7  ;;  %p5511_p10 = scmp.lt.s32.totalorder %s8375_s15, %s8441_s5 }
 0x4f3   : > { %p5512_p11 = scmp.lt.s32.totalorder %s5510_s29, %s5506_s7 }
 0x4f4   : > { %p5508_p7 = pnand %p5507_p6, %p5652_p4 }
 0x4f5   : > { %p5513_p12 = por %p5512_p11, %p5511_p10 }
 0x4f6   : > { %p5509_p9 = pneg %p5508_p7 }
 0x4f8   : > { %p5514_p13 = pnand %p5513_p12, %p5509_p9 }
 0x4fa   : > { %5517 = shalt.err (!%p5514_p13)
}
 0x4fb   : > { %s5581_s24 = smov 128  }
 0x4fc   : > { %5104 = dma.vmem_to_hbm [thread:$0]  (%p5652_p4), %s8382_s14, 4096, %s8375_s15, %s8390_s11, %s5581_s24, %s5581_s24, %s5571_s13  }
 0x4fd PF: > { %p5110_p0 = scmp.ge.s32.totalorder %s5568_s23, 2  ;;  %s4511_s21 = sand.u32 1, %s5548_s18  }
 0x4fe   : > { %s4512_s25 = scalar_lea.sflag [#allocation4], %s4511_s21 }
 0x4ff   : > { %p5107_p1 = pnand %p5110_p0, %p5659_p8 }
 0x501   : > { %p5108_p2 = pneg %p5107_p1 }
 0x503   : > { %5543 = dma.done.wait (%p5108_p2), %s4512_s25, 4096  }
 0x504   : > { %5545 = vsyncadd (%p5108_p2), %s4512_s25, 4294963200  ;;  %s18_s23 = sadd.s32 1, %s5568_s23   ;;  %s8532_s18 = smov %s5552_s19 }
 0x505   : > { %p15_p3 = scmp.ge.s32.totalorder %s18_s23, 4   ;;  %s8533_s19 = smov %s5556_s20 }
 0x506   : > { %s8534_s20 = smov %s5665_s6  ;;  %s8535_s21 = smov %s5564_s22 }
 0x507   : > { %s8536_s22 = smov %s8538_s26  ;;  %17 = sbr.rel (!%p15_p3) target bundleno = 4 (0x4), region = 79 }
 0x50c   :  { %4517 = vsyncpa [#allocation4], 1 }
 0x50d   :  { %4519 = vsyncpa [#allocation4 + $0x1], 1 }

</bundles_post_ra>
